<compile_context>
chip_gen: v6e
topology: v6e:2x2x1
jax: 0.10.0
libtpu: 0.0.40
codegen_flags: <defaults>
</compile_context>

<pallas_src>
import functools
import math

import jax
import jax.numpy as jnp
from jax.experimental import pallas as pl
from jax.experimental.pallas import tpu as pltpu


def _attention_block_kernel(x_ref, gmat_ref, gamma_ref, beta_ref,
                            wqkv_ref, bqkv_ref, wo_ref, bo_ref, o_ref,
                            *, n_head, head_dim, channels, seq, block_b, eps,
                            compute_dtype, approx_recip):
    f32 = jnp.float32
    C, S, hd = channels, seq, head_dim

    x_nchw = x_ref[...].astype(f32)                              # (Bb, C, S); residual kept f32

    # ---- NCHW -> (Bb, S, C) inside the kernel (2-D transposes, dims multiples of 8) ----
    x_seq = jnp.stack([x_nchw[b].T for b in range(block_b)], axis=0)   # (Bb, S, C)

    # ---- GroupNorm(groups, C): per-sample stats via S-reduce + ONE group-average matmul ----
    # gmat[i, j] = 1/(S*cg) if channels i and j share a group, so sums @ gmat is the
    # per-channel group mean directly (no in-kernel mask transpose).
    xsum = jnp.sum(x_seq, axis=1)                                # (Bb, C) sublane reduce
    xsq = jnp.sum(x_seq * x_seq, axis=1)                         # (Bb, C)
    stats = jnp.concatenate([xsum, xsq], axis=0)                 # (2*Bb, C) -> one MXU push
    g = jnp.dot(stats, gmat_ref[...], preferred_element_type=f32)
    mean_c = g[:block_b]                                         # (Bb, C)
    # NOTE: single-pass E[x^2]-E[x]^2 variance (f32); fine for normalized activations.
    var_c = g[block_b:] - mean_c * mean_c
    inv_std = jax.lax.rsqrt(var_c + eps)                         # (Bb, C)
    xn = (x_seq - mean_c[:, None, :]) * inv_std[:, None, :] * gamma_ref[...] + beta_ref[...]

    # ---- fused QKV projection: one (Bb*S, C) @ (C, 3C) matmul (scale folded into Q cols) ----
    bs = block_b * S
    xn2 = xn.reshape(bs, C).astype(compute_dtype)                # leading-dim merge only
    qkv = jnp.dot(xn2, wqkv_ref[...], preferred_element_type=f32) + bqkv_ref[...]   # (bs, 3C) f32

    wo = wo_ref[...]                                             # (C, C)  flat out-proj weight
    bo = bo_ref[...]                                             # (1, C)  f32
    dn_qk = (((2,), (2,)), ((0,), (0,)))                         # q . k^T, batched over heads
    dn_pv = (((2,), (1,)), ((0,), (0,)))                         # p . v,   batched over heads

    for b in range(block_b):                                     # small static loop (see TODO)
        lo = b * S                                               # multiples of S (8-aligned rows)
        qkv_b = qkv[lo:lo + S, :]                                # (S, 3C)

        def heads(base):                                         # -> (n_head, S, hd)
            return jnp.stack(
                [qkv_b[:, base + h * hd: base + (h + 1) * hd] for h in range(n_head)],
                axis=0).astype(compute_dtype)

        qh, kh, vh = heads(0), heads(C), heads(2 * C)

        s = jax.lax.dot_general(qh, kh, dn_qk, preferred_element_type=f32)   # (H, S, S) f32
        s = s - jnp.max(s, axis=-1, keepdims=True)
        p = jnp.exp(s)                                                       # EUP
        denom = jnp.sum(p, axis=-1, keepdims=True)                           # (H, S, 1)

        ob = jax.lax.dot_general(p.astype(compute_dtype), vh, dn_pv,
                                 preferred_element_type=f32)                 # (H, S, hd) f32
        # deferred softmax normalization: O(H*S*hd) multiplies instead of O(H*S*S)
        ob = ob * pl.reciprocal(denom, approx=approx_recip)

        # lane-concat heads back to (S, C) and do ONE K=C output projection (head-sum fused)
        ob_cat = jnp.concatenate([ob[h] for h in range(n_head)], axis=-1)    # (S, C)
        out_b = jnp.dot(ob_cat.astype(compute_dtype), wo,
                        preferred_element_type=f32) + bo                     # (S, C) f32

        out_b = out_b + x_seq[b]                                             # residual in f32
        o_ref[b] = out_b.T.astype(o_ref.dtype)                               # store as (C, S)


def attention_block(x, params, *, n_head=4, groups=8, eps=1e-5,
                    block_b=None, compute_dtype=jnp.float32):
    B, C, H, W = x.shape
    assert H == W, "AttentionBlock assumes square spatial size"
    assert C % groups == 0 and C % n_head == 0
    S = H * W
    hd = C // n_head
    scale = 1.0 / math.sqrt(hd)
    cg = C // groups

    if block_b is None:
        kind = ""
        try:
            kind = jax.devices()[0].device_kind.lower()
        except Exception:
            pass
        # v7x has 2 TensorCores/chip: keep >=2 parallel grid steps.  Single-TC v5e/v6e:
        # whole batch in one grid step (avoids ~0.35us/step overhead, better M-dim fill).
        if "v7" in kind and B % 2 == 0:
            block_b = B // 2
        else:
            block_b = B
    assert B % block_b == 0

    # NCHW -> (B, C, S) is a free reshape; the seq<->channel transpose happens in-kernel.
    x_ncs = x.reshape(B, C, S)

    # Group-averaging matrix: (per-channel sums over S) @ gmat == per-channel group mean.
    gidx = jnp.arange(C) // cg
    gmat = (gidx[:, None] == gidx[None, :]).astype(jnp.float32) / float(S * cg)

    gamma = params["gn_gamma"].reshape(1, C).astype(jnp.float32)
    beta = params["gn_beta"].reshape(1, C).astype(jnp.float32)

    # Fused QKV weight (C, 3C), columns ordered [q | k | v], heads head-major inside each;
    # the 1/sqrt(hd) attention scale is folded into the Q columns and Q bias.
    wqkv_t = params["in_proj_weight"].T                          # (C, 3C)
    qscale = jnp.concatenate([jnp.full((C,), scale, jnp.float32),
                              jnp.ones((2 * C,), jnp.float32)])
    wqkv = (wqkv_t * qscale[None, :]).astype(compute_dtype)
    bqkv = (params["in_proj_bias"].reshape(1, 3 * C) * qscale[None, :]).astype(jnp.float32)

    wo = params["out_proj_weight"].T.astype(compute_dtype)       # (C, C) flat (head-sum fused)
    bo = params["out_proj_bias"].reshape(1, C).astype(jnp.float32)

    kernel = functools.partial(
        _attention_block_kernel, n_head=n_head, head_dim=hd, channels=C, seq=S,
        block_b=block_b, eps=eps, compute_dtype=compute_dtype,
        approx_recip=(jnp.dtype(compute_dtype) != jnp.dtype(jnp.float32)))

    out_ncs = pl.pallas_call(
        kernel,
        out_shape=jax.ShapeDtypeStruct((B, C, S), x.dtype),
        grid=(B // block_b,),
        in_specs=[
            pl.BlockSpec((block_b, C, S), lambda b: (b, 0, 0)),   # x (NCHW batch tile)
            pl.BlockSpec((C, C), lambda b: (0, 0)),               # group-average matrix
            pl.BlockSpec((1, C), lambda b: (0, 0)),               # gn gamma
            pl.BlockSpec((1, C), lambda b: (0, 0)),               # gn beta
            pl.BlockSpec((C, 3 * C), lambda b: (0, 0)),           # fused W_qkv (Q pre-scaled)
            pl.BlockSpec((1, 3 * C), lambda b: (0, 0)),           # fused b_qkv (Q pre-scaled)
            pl.BlockSpec((C, C), lambda b: (0, 0)),               # W_out (flat)
            pl.BlockSpec((1, C), lambda b: (0, 0)),               # b_out
        ],
        out_specs=pl.BlockSpec((block_b, C, S), lambda b: (b, 0, 0)),
        compiler_params=pltpu.CompilerParams(dimension_semantics=("parallel",)),
    )(x_ncs, gmat, gamma, beta, wqkv, bqkv, wo, bo)

    return out_ncs.reshape(B, C, H, W)


def _reference(x, params, *, n_head=4, groups=8, eps=1e-5):
    """Pure-JAX replica of the PyTorch forward (eval mode), for verification."""
    B, C, H, W = x.shape
    S = H * W
    hd = C // n_head
    xg = x.reshape(B, groups, C // groups, H, W)
    mean = xg.mean(axis=(2, 3, 4), keepdims=True)
    var = xg.var(axis=(2, 3, 4), keepdims=True)
    xn = (xg - mean) / jnp.sqrt(var + eps)
    xn = xn.reshape(B, C, H, W) * params["gn_gamma"][None, :, None, None] \
        + params["gn_beta"][None, :, None, None]
    xs = xn.reshape(B, C, S).transpose(0, 2, 1)                  # (B, S, C)
    qkv = xs @ params["in_proj_weight"].T + params["in_proj_bias"]
    q, k, v = jnp.split(qkv, 3, axis=-1)
    heads = lambda t: t.reshape(B, S, n_head, hd).transpose(0, 2, 1, 3)
    qh, kh, vh = heads(q), heads(k), heads(v)
    s = jnp.einsum("bhqd,bhkd->bhqk", qh, kh) / math.sqrt(hd)
    p = jax.nn.softmax(s, axis=-1)
    o = jnp.einsum("bhqk,bhkd->bhqd", p, vh)
    o = o.transpose(0, 2, 1, 3).reshape(B, S, C)
    o = o @ params["out_proj_weight"].T + params["out_proj_bias"]
    return o.transpose(0, 2, 1).reshape(B, C, H, W) + x


if __name__ == "__main__":
    B, C, size, n_head = 2, 32, 8, 4          # channels divisible by 8 (GroupNorm) and by n_head
    key = jax.random.PRNGKey(0)
    ks = jax.random.split(key, 7)
    x = jax.random.normal(ks[0], (B, C, size, size), jnp.float32)
    params = {
        "gn_gamma": 1.0 + 0.1 * jax.random.normal(ks[1], (C,), jnp.float32),
        "gn_beta": 0.1 * jax.random.normal(ks[2], (C,), jnp.float32),
        "in_proj_weight": jax.random.normal(ks[3], (3 * C, C), jnp.float32) / math.sqrt(C),
        "in_proj_bias": 0.02 * jax.random.normal(ks[4], (3 * C,), jnp.float32),
        "out_proj_weight": jax.random.normal(ks[5], (C, C), jnp.float32) / math.sqrt(C),
        "out_proj_bias": 0.02 * jax.random.normal(ks[6], (C,), jnp.float32),
    }

    ref = _reference(x, params, n_head=n_head)

    # 1) f32, chip-aware default block_b (whole batch on v5e/v6e, split on v7x)
    out = jax.block_until_ready(attention_block(x, params, n_head=n_head))
    assert out.shape == x.shape
    assert jnp.allclose(out, ref, rtol=2e-4, atol=2e-4), \
        f"f32 max abs err {float(jnp.max(jnp.abs(out - ref)))}"

    # 2) f32, explicit block_b=1 (2 parallel grid steps — v7x-style blocking)
    out2 = jax.block_until_ready(
        attention_block(x, params, n_head=n_head, block_b=1, compute_dtype=jnp.float32))
    assert jnp.allclose(out2, ref, rtol=2e-4, atol=2e-4), \
        f"blocked f32 max abs err {float(jnp.max(jnp.abs(out2 - ref)))}"

    # 3) bf16 MXU operands (stats / softmax / residual stay f32) -- mixed-precision tolerance
    out3 = jax.block_until_ready(
        attention_block(x, params, n_head=n_head, compute_dtype=jnp.bfloat16))
    assert jnp.allclose(out3, ref, rtol=1e-1, atol=1e-1), \
        f"bf16 max abs err {float(jnp.max(jnp.abs(out3 - ref)))}"

    print("KERNEL_OK")
</pallas_src>

<mosaic_0001>
module attributes {stable_mosaic.version = 11 : i64} {
  func.func @_attention_block_kernel(%arg0: i32, %arg1: memref<2x32x64xf32, #tpu.memory_space<vmem>>, %arg2: memref<32x32xf32, #tpu.memory_space<vmem>>, %arg3: memref<1x32xf32, #tpu.memory_space<vmem>>, %arg4: memref<1x32xf32, #tpu.memory_space<vmem>>, %arg5: memref<32x96xf32, #tpu.memory_space<vmem>>, %arg6: memref<1x96xf32, #tpu.memory_space<vmem>>, %arg7: memref<32x32xf32, #tpu.memory_space<vmem>>, %arg8: memref<1x32xf32, #tpu.memory_space<vmem>>, %arg9: memref<2x32x64xf32, #tpu.memory_space<vmem>>) attributes {dimension_semantics = [#tpu.dimension_semantics<parallel>], iteration_bounds = array<i64: 1>, scalar_prefetch = 0 : i64, scratch_operands = 0 : i64, tpu.core_type = #tpu.core_type<tc>, window_params = [{transform_indices = @transform_0, window_bounds = array<i64: 2, 32, 64>}, {pipeline_mode = #tpu.pipeline_mode<synchronous>, transform_indices = @transform_1, window_bounds = array<i64: 32, 32>}, {pipeline_mode = #tpu.pipeline_mode<synchronous>, transform_indices = @transform_2, window_bounds = array<i64: 1, 32>}, {pipeline_mode = #tpu.pipeline_mode<synchronous>, transform_indices = @transform_3, window_bounds = array<i64: 1, 32>}, {pipeline_mode = #tpu.pipeline_mode<synchronous>, transform_indices = @transform_4, window_bounds = array<i64: 32, 96>}, {pipeline_mode = #tpu.pipeline_mode<synchronous>, transform_indices = @transform_5, window_bounds = array<i64: 1, 96>}, {pipeline_mode = #tpu.pipeline_mode<synchronous>, transform_indices = @transform_6, window_bounds = array<i64: 32, 32>}, {pipeline_mode = #tpu.pipeline_mode<synchronous>, transform_indices = @transform_7, window_bounds = array<i64: 1, 32>}, {transform_indices = @transform_8, window_bounds = array<i64: 2, 32, 64>}]} {
    %c0 = arith.constant 0 : index
    %c0_0 = arith.constant 0 : index
    %c0_1 = arith.constant 0 : index
    %0 = vector.load %arg1[%c0, %c0_0, %c0_1] : memref<2x32x64xf32, #tpu.memory_space<vmem>>, vector<2x32x64xf32>
    %1 = vector.extract_strided_slice %0 {offsets = [0, 0, 0], sizes = [1, 32, 64], strides = [1, 1, 1]} : vector<2x32x64xf32> to vector<1x32x64xf32>
    %2 = vector.shape_cast %1 : vector<1x32x64xf32> to vector<32x64xf32>
    %3 = tpu.transpose %2, [1, 0] : vector<32x64xf32> -> vector<64x32xf32>
    %4 = vector.extract_strided_slice %0 {offsets = [1, 0, 0], sizes = [1, 32, 64], strides = [1, 1, 1]} : vector<2x32x64xf32> to vector<1x32x64xf32>
    %5 = vector.shape_cast %4 : vector<1x32x64xf32> to vector<32x64xf32>
    %6 = tpu.transpose %5, [1, 0] : vector<32x64xf32> -> vector<64x32xf32>
    %7 = vector.shape_cast %3 : vector<64x32xf32> to vector<1x64x32xf32>
    %8 = vector.shape_cast %6 : vector<64x32xf32> to vector<1x64x32xf32>
    %9 = tpu.concatenate %7, %8 in 0 : vector<1x64x32xf32>, vector<1x64x32xf32> -> vector<2x64x32xf32>
    %cst = arith.constant dense<0.000000e+00> : vector<2x32xf32>
    %10 = vector.multi_reduction <add>, %9, %cst [1] : vector<2x64x32xf32> to vector<2x32xf32>
    %11 = arith.mulf %9, %9 : vector<2x64x32xf32>
    %cst_2 = arith.constant dense<0.000000e+00> : vector<2x32xf32>
    %12 = vector.multi_reduction <add>, %11, %cst_2 [1] : vector<2x64x32xf32> to vector<2x32xf32>
    %13 = tpu.concatenate %10, %12 in 0 : vector<2x32xf32>, vector<2x32xf32> -> vector<4x32xf32>
    %c0_3 = arith.constant 0 : index
    %c0_4 = arith.constant 0 : index
    %14 = vector.load %arg2[%c0_3, %c0_4] : memref<32x32xf32, #tpu.memory_space<vmem>>, vector<32x32xf32>
    %cst_5 = arith.constant dense<0.000000e+00> : vector<4x32xf32>
    %15 = tpu.matmul %13, %14, %cst_5 {dimension_numbers = #tpu.dot_dimension_numbers<[1], [0], [0], [1], [0, 0, 1, 1], [], []>} : vector<4x32xf32>, vector<32x32xf32>, vector<4x32xf32> -> vector<4x32xf32>
    %16 = vector.extract_strided_slice %15 {offsets = [0, 0], sizes = [2, 32], strides = [1, 1]} : vector<4x32xf32> to vector<2x32xf32>
    %17 = vector.extract_strided_slice %15 {offsets = [2, 0], sizes = [2, 32], strides = [1, 1]} : vector<4x32xf32> to vector<2x32xf32>
    %18 = arith.mulf %16, %16 : vector<2x32xf32>
    %19 = arith.subf %17, %18 : vector<2x32xf32>
    %cst_6 = arith.constant 9.99999974E-6 : f32
    %20 = vector.broadcast %cst_6 : f32 to vector<2x32xf32>
    %21 = arith.addf %19, %20 : vector<2x32xf32>
    %22 = math.rsqrt %21 : vector<2x32xf32>
    %23 = vector.shape_cast %16 : vector<2x32xf32> to vector<2x1x32xf32>
    %24 = vector.broadcast %23 : vector<2x1x32xf32> to vector<2x64x32xf32>
    %25 = arith.subf %9, %24 : vector<2x64x32xf32>
    %26 = vector.shape_cast %22 : vector<2x32xf32> to vector<2x1x32xf32>
    %27 = vector.broadcast %26 : vector<2x1x32xf32> to vector<2x64x32xf32>
    %28 = arith.mulf %25, %27 : vector<2x64x32xf32>
    %c0_7 = arith.constant 0 : index
    %c0_8 = arith.constant 0 : index
    %29 = vector.load %arg3[%c0_7, %c0_8] : memref<1x32xf32, #tpu.memory_space<vmem>>, vector<1x32xf32>
    %30 = vector.shape_cast %29 : vector<1x32xf32> to vector<1x1x32xf32>
    %31 = vector.broadcast %30 : vector<1x1x32xf32> to vector<2x64x32xf32>
    %32 = arith.mulf %28, %31 : vector<2x64x32xf32>
    %c0_9 = arith.constant 0 : index
    %c0_10 = arith.constant 0 : index
    %33 = vector.load %arg4[%c0_9, %c0_10] : memref<1x32xf32, #tpu.memory_space<vmem>>, vector<1x32xf32>
    %34 = vector.shape_cast %33 : vector<1x32xf32> to vector<1x1x32xf32>
    %35 = vector.broadcast %34 : vector<1x1x32xf32> to vector<2x64x32xf32>
    %36 = arith.addf %32, %35 : vector<2x64x32xf32>
    %37 = vector.shape_cast %36 : vector<2x64x32xf32> to vector<128x32xf32>
    %c0_11 = arith.constant 0 : index
    %c0_12 = arith.constant 0 : index
    %38 = vector.load %arg5[%c0_11, %c0_12] : memref<32x96xf32, #tpu.memory_space<vmem>>, vector<32x96xf32>
    %cst_13 = arith.constant dense<0.000000e+00> : vector<128x96xf32>
    %39 = tpu.matmul %37, %38, %cst_13 {dimension_numbers = #tpu.dot_dimension_numbers<[1], [0], [0], [1], [0, 0, 1, 1], [], []>} : vector<128x32xf32>, vector<32x96xf32>, vector<128x96xf32> -> vector<128x96xf32>
    %c0_14 = arith.constant 0 : index
    %c0_15 = arith.constant 0 : index
    %40 = vector.load %arg6[%c0_14, %c0_15] : memref<1x96xf32, #tpu.memory_space<vmem>>, vector<1x96xf32>
    %41 = vector.broadcast %40 : vector<1x96xf32> to vector<128x96xf32>
    %42 = arith.addf %39, %41 : vector<128x96xf32>
    %c0_16 = arith.constant 0 : index
    %c0_17 = arith.constant 0 : index
    %43 = vector.load %arg7[%c0_16, %c0_17] : memref<32x32xf32, #tpu.memory_space<vmem>>, vector<32x32xf32>
    %c0_18 = arith.constant 0 : index
    %c0_19 = arith.constant 0 : index
    %44 = vector.load %arg8[%c0_18, %c0_19] : memref<1x32xf32, #tpu.memory_space<vmem>>, vector<1x32xf32>
    %45 = vector.extract_strided_slice %42 {offsets = [0, 0], sizes = [64, 96], strides = [1, 1]} : vector<128x96xf32> to vector<64x96xf32>
    %46 = vector.extract_strided_slice %45 {offsets = [0, 0], sizes = [64, 8], strides = [1, 1]} : vector<64x96xf32> to vector<64x8xf32>
    %47 = vector.extract_strided_slice %45 {offsets = [0, 8], sizes = [64, 8], strides = [1, 1]} : vector<64x96xf32> to vector<64x8xf32>
    %48 = vector.extract_strided_slice %45 {offsets = [0, 16], sizes = [64, 8], strides = [1, 1]} : vector<64x96xf32> to vector<64x8xf32>
    %49 = vector.extract_strided_slice %45 {offsets = [0, 24], sizes = [64, 8], strides = [1, 1]} : vector<64x96xf32> to vector<64x8xf32>
    %50 = vector.shape_cast %46 : vector<64x8xf32> to vector<1x64x8xf32>
    %51 = vector.shape_cast %47 : vector<64x8xf32> to vector<1x64x8xf32>
    %52 = vector.shape_cast %48 : vector<64x8xf32> to vector<1x64x8xf32>
    %53 = vector.shape_cast %49 : vector<64x8xf32> to vector<1x64x8xf32>
    %54 = tpu.concatenate %50, %51, %52, %53 in 0 : vector<1x64x8xf32>, vector<1x64x8xf32>, vector<1x64x8xf32>, vector<1x64x8xf32> -> vector<4x64x8xf32>
    %55 = vector.extract_strided_slice %45 {offsets = [0, 32], sizes = [64, 8], strides = [1, 1]} : vector<64x96xf32> to vector<64x8xf32>
    %56 = vector.extract_strided_slice %45 {offsets = [0, 40], sizes = [64, 8], strides = [1, 1]} : vector<64x96xf32> to vector<64x8xf32>
    %57 = vector.extract_strided_slice %45 {offsets = [0, 48], sizes = [64, 8], strides = [1, 1]} : vector<64x96xf32> to vector<64x8xf32>
    %58 = vector.extract_strided_slice %45 {offsets = [0, 56], sizes = [64, 8], strides = [1, 1]} : vector<64x96xf32> to vector<64x8xf32>
    %59 = vector.shape_cast %55 : vector<64x8xf32> to vector<1x64x8xf32>
    %60 = vector.shape_cast %56 : vector<64x8xf32> to vector<1x64x8xf32>
    %61 = vector.shape_cast %57 : vector<64x8xf32> to vector<1x64x8xf32>
    %62 = vector.shape_cast %58 : vector<64x8xf32> to vector<1x64x8xf32>
    %63 = tpu.concatenate %59, %60, %61, %62 in 0 : vector<1x64x8xf32>, vector<1x64x8xf32>, vector<1x64x8xf32>, vector<1x64x8xf32> -> vector<4x64x8xf32>
    %64 = vector.extract_strided_slice %45 {offsets = [0, 64], sizes = [64, 8], strides = [1, 1]} : vector<64x96xf32> to vector<64x8xf32>
    %65 = vector.extract_strided_slice %45 {offsets = [0, 72], sizes = [64, 8], strides = [1, 1]} : vector<64x96xf32> to vector<64x8xf32>
    %66 = vector.extract_strided_slice %45 {offsets = [0, 80], sizes = [64, 8], strides = [1, 1]} : vector<64x96xf32> to vector<64x8xf32>
    %67 = vector.extract_strided_slice %45 {offsets = [0, 88], sizes = [64, 8], strides = [1, 1]} : vector<64x96xf32> to vector<64x8xf32>
    %68 = vector.shape_cast %64 : vector<64x8xf32> to vector<1x64x8xf32>
    %69 = vector.shape_cast %65 : vector<64x8xf32> to vector<1x64x8xf32>
    %70 = vector.shape_cast %66 : vector<64x8xf32> to vector<1x64x8xf32>
    %71 = vector.shape_cast %67 : vector<64x8xf32> to vector<1x64x8xf32>
    %72 = tpu.concatenate %68, %69, %70, %71 in 0 : vector<1x64x8xf32>, vector<1x64x8xf32>, vector<1x64x8xf32>, vector<1x64x8xf32> -> vector<4x64x8xf32>
    %cst_20 = arith.constant dense<0.000000e+00> : vector<4x64x64xf32>
    %73 = tpu.matmul %54, %63, %cst_20 {dimension_numbers = #tpu.dot_dimension_numbers<[2], [2], [1], [1], [0, 0, 0, 1, 1, 1], [0], [0]>} : vector<4x64x8xf32>, vector<4x64x8xf32>, vector<4x64x64xf32> -> vector<4x64x64xf32>
    %cst_21 = arith.constant dense<0xFF800000> : vector<4x64xf32>
    %74 = vector.multi_reduction <maximumf>, %73, %cst_21 [2] : vector<4x64x64xf32> to vector<4x64xf32>
    %75 = vector.shape_cast %74 : vector<4x64xf32> to vector<4x64x1xf32>
    %76 = vector.broadcast %75 : vector<4x64x1xf32> to vector<4x64x64xf32>
    %77 = arith.subf %73, %76 : vector<4x64x64xf32>
    %78 = math.exp %77 : vector<4x64x64xf32>
    %cst_22 = arith.constant dense<0.000000e+00> : vector<4x64xf32>
    %79 = vector.multi_reduction <add>, %78, %cst_22 [2] : vector<4x64x64xf32> to vector<4x64xf32>
    %80 = vector.shape_cast %79 : vector<4x64xf32> to vector<4x64x1xf32>
    %cst_23 = arith.constant dense<0.000000e+00> : vector<4x64x8xf32>
    %81 = tpu.matmul %78, %72, %cst_23 {dimension_numbers = #tpu.dot_dimension_numbers<[2], [1], [1], [2], [0, 0, 0, 1, 1, 2], [0], [0]>} : vector<4x64x64xf32>, vector<4x64x8xf32>, vector<4x64x8xf32> -> vector<4x64x8xf32>
    %82 = tpu.reciprocal %80 : vector<4x64x1xf32> -> vector<4x64x1xf32>
    %83 = vector.broadcast %82 : vector<4x64x1xf32> to vector<4x64x8xf32>
    %84 = arith.mulf %81, %83 : vector<4x64x8xf32>
    %85 = vector.extract_strided_slice %84 {offsets = [0, 0, 0], sizes = [1, 64, 8], strides = [1, 1, 1]} : vector<4x64x8xf32> to vector<1x64x8xf32>
    %86 = vector.shape_cast %85 : vector<1x64x8xf32> to vector<64x8xf32>
    %87 = vector.extract_strided_slice %84 {offsets = [1, 0, 0], sizes = [1, 64, 8], strides = [1, 1, 1]} : vector<4x64x8xf32> to vector<1x64x8xf32>
    %88 = vector.shape_cast %87 : vector<1x64x8xf32> to vector<64x8xf32>
    %89 = vector.extract_strided_slice %84 {offsets = [2, 0, 0], sizes = [1, 64, 8], strides = [1, 1, 1]} : vector<4x64x8xf32> to vector<1x64x8xf32>
    %90 = vector.shape_cast %89 : vector<1x64x8xf32> to vector<64x8xf32>
    %91 = vector.extract_strided_slice %84 {offsets = [3, 0, 0], sizes = [1, 64, 8], strides = [1, 1, 1]} : vector<4x64x8xf32> to vector<1x64x8xf32>
    %92 = vector.shape_cast %91 : vector<1x64x8xf32> to vector<64x8xf32>
    %93 = tpu.concatenate %86, %88, %90, %92 in 1 : vector<64x8xf32>, vector<64x8xf32>, vector<64x8xf32>, vector<64x8xf32> -> vector<64x32xf32>
    %cst_24 = arith.constant dense<0.000000e+00> : vector<64x32xf32>
    %94 = tpu.matmul %93, %43, %cst_24 {dimension_numbers = #tpu.dot_dimension_numbers<[1], [0], [0], [1], [0, 0, 1, 1], [], []>} : vector<64x32xf32>, vector<32x32xf32>, vector<64x32xf32> -> vector<64x32xf32>
    %95 = vector.broadcast %44 : vector<1x32xf32> to vector<64x32xf32>
    %96 = arith.addf %94, %95 : vector<64x32xf32>
    %97 = vector.extract_strided_slice %9 {offsets = [0, 0, 0], sizes = [1, 64, 32], strides = [1, 1, 1]} : vector<2x64x32xf32> to vector<1x64x32xf32>
    %98 = vector.shape_cast %97 : vector<1x64x32xf32> to vector<64x32xf32>
    %99 = arith.addf %96, %98 : vector<64x32xf32>
    %100 = tpu.transpose %99, [1, 0] : vector<64x32xf32> -> vector<32x64xf32>
    %c0_25 = arith.constant 0 : index
    %c0_26 = arith.constant 0 : index
    %c0_27 = arith.constant 0 : index
    %101 = vector.load %arg9[%c0_25, %c0_26, %c0_27] : memref<2x32x64xf32, #tpu.memory_space<vmem>>, vector<1x32x64xf32>
    %102 = vector.shape_cast %101 : vector<1x32x64xf32> to vector<32x64xf32>
    %103 = vector.shape_cast %100 : vector<32x64xf32> to vector<1x32x64xf32>
    tpu.vector_store %arg9[%c0_25, %c0_26, %c0_27], %103 {strides = array<i32>} : memref<2x32x64xf32, #tpu.memory_space<vmem>>, vector<1x32x64xf32>,
    %104 = vector.extract_strided_slice %42 {offsets = [64, 0], sizes = [64, 96], strides = [1, 1]} : vector<128x96xf32> to vector<64x96xf32>
    %105 = vector.extract_strided_slice %104 {offsets = [0, 0], sizes = [64, 8], strides = [1, 1]} : vector<64x96xf32> to vector<64x8xf32>
    %106 = vector.extract_strided_slice %104 {offsets = [0, 8], sizes = [64, 8], strides = [1, 1]} : vector<64x96xf32> to vector<64x8xf32>
    %107 = vector.extract_strided_slice %104 {offsets = [0, 16], sizes = [64, 8], strides = [1, 1]} : vector<64x96xf32> to vector<64x8xf32>
    %108 = vector.extract_strided_slice %104 {offsets = [0, 24], sizes = [64, 8], strides = [1, 1]} : vector<64x96xf32> to vector<64x8xf32>
    %109 = vector.shape_cast %105 : vector<64x8xf32> to vector<1x64x8xf32>
    %110 = vector.shape_cast %106 : vector<64x8xf32> to vector<1x64x8xf32>
    %111 = vector.shape_cast %107 : vector<64x8xf32> to vector<1x64x8xf32>
    %112 = vector.shape_cast %108 : vector<64x8xf32> to vector<1x64x8xf32>
    %113 = tpu.concatenate %109, %110, %111, %112 in 0 : vector<1x64x8xf32>, vector<1x64x8xf32>, vector<1x64x8xf32>, vector<1x64x8xf32> -> vector<4x64x8xf32>
    %114 = vector.extract_strided_slice %104 {offsets = [0, 32], sizes = [64, 8], strides = [1, 1]} : vector<64x96xf32> to vector<64x8xf32>
    %115 = vector.extract_strided_slice %104 {offsets = [0, 40], sizes = [64, 8], strides = [1, 1]} : vector<64x96xf32> to vector<64x8xf32>
    %116 = vector.extract_strided_slice %104 {offsets = [0, 48], sizes = [64, 8], strides = [1, 1]} : vector<64x96xf32> to vector<64x8xf32>
    %117 = vector.extract_strided_slice %104 {offsets = [0, 56], sizes = [64, 8], strides = [1, 1]} : vector<64x96xf32> to vector<64x8xf32>
    %118 = vector.shape_cast %114 : vector<64x8xf32> to vector<1x64x8xf32>
    %119 = vector.shape_cast %115 : vector<64x8xf32> to vector<1x64x8xf32>
    %120 = vector.shape_cast %116 : vector<64x8xf32> to vector<1x64x8xf32>
    %121 = vector.shape_cast %117 : vector<64x8xf32> to vector<1x64x8xf32>
    %122 = tpu.concatenate %118, %119, %120, %121 in 0 : vector<1x64x8xf32>, vector<1x64x8xf32>, vector<1x64x8xf32>, vector<1x64x8xf32> -> vector<4x64x8xf32>
    %123 = vector.extract_strided_slice %104 {offsets = [0, 64], sizes = [64, 8], strides = [1, 1]} : vector<64x96xf32> to vector<64x8xf32>
    %124 = vector.extract_strided_slice %104 {offsets = [0, 72], sizes = [64, 8], strides = [1, 1]} : vector<64x96xf32> to vector<64x8xf32>
    %125 = vector.extract_strided_slice %104 {offsets = [0, 80], sizes = [64, 8], strides = [1, 1]} : vector<64x96xf32> to vector<64x8xf32>
    %126 = vector.extract_strided_slice %104 {offsets = [0, 88], sizes = [64, 8], strides = [1, 1]} : vector<64x96xf32> to vector<64x8xf32>
    %127 = vector.shape_cast %123 : vector<64x8xf32> to vector<1x64x8xf32>
    %128 = vector.shape_cast %124 : vector<64x8xf32> to vector<1x64x8xf32>
    %129 = vector.shape_cast %125 : vector<64x8xf32> to vector<1x64x8xf32>
    %130 = vector.shape_cast %126 : vector<64x8xf32> to vector<1x64x8xf32>
    %131 = tpu.concatenate %127, %128, %129, %130 in 0 : vector<1x64x8xf32>, vector<1x64x8xf32>, vector<1x64x8xf32>, vector<1x64x8xf32> -> vector<4x64x8xf32>
    %cst_28 = arith.constant dense<0.000000e+00> : vector<4x64x64xf32>
    %132 = tpu.matmul %113, %122, %cst_28 {dimension_numbers = #tpu.dot_dimension_numbers<[2], [2], [1], [1], [0, 0, 0, 1, 1, 1], [0], [0]>} : vector<4x64x8xf32>, vector<4x64x8xf32>, vector<4x64x64xf32> -> vector<4x64x64xf32>
    %cst_29 = arith.constant dense<0xFF800000> : vector<4x64xf32>
    %133 = vector.multi_reduction <maximumf>, %132, %cst_29 [2] : vector<4x64x64xf32> to vector<4x64xf32>
    %134 = vector.shape_cast %133 : vector<4x64xf32> to vector<4x64x1xf32>
    %135 = vector.broadcast %134 : vector<4x64x1xf32> to vector<4x64x64xf32>
    %136 = arith.subf %132, %135 : vector<4x64x64xf32>
    %137 = math.exp %136 : vector<4x64x64xf32>
    %cst_30 = arith.constant dense<0.000000e+00> : vector<4x64xf32>
    %138 = vector.multi_reduction <add>, %137, %cst_30 [2] : vector<4x64x64xf32> to vector<4x64xf32>
    %139 = vector.shape_cast %138 : vector<4x64xf32> to vector<4x64x1xf32>
    %cst_31 = arith.constant dense<0.000000e+00> : vector<4x64x8xf32>
    %140 = tpu.matmul %137, %131, %cst_31 {dimension_numbers = #tpu.dot_dimension_numbers<[2], [1], [1], [2], [0, 0, 0, 1, 1, 2], [0], [0]>} : vector<4x64x64xf32>, vector<4x64x8xf32>, vector<4x64x8xf32> -> vector<4x64x8xf32>
    %141 = tpu.reciprocal %139 : vector<4x64x1xf32> -> vector<4x64x1xf32>
    %142 = vector.broadcast %141 : vector<4x64x1xf32> to vector<4x64x8xf32>
    %143 = arith.mulf %140, %142 : vector<4x64x8xf32>
    %144 = vector.extract_strided_slice %143 {offsets = [0, 0, 0], sizes = [1, 64, 8], strides = [1, 1, 1]} : vector<4x64x8xf32> to vector<1x64x8xf32>
    %145 = vector.shape_cast %144 : vector<1x64x8xf32> to vector<64x8xf32>
    %146 = vector.extract_strided_slice %143 {offsets = [1, 0, 0], sizes = [1, 64, 8], strides = [1, 1, 1]} : vector<4x64x8xf32> to vector<1x64x8xf32>
    %147 = vector.shape_cast %146 : vector<1x64x8xf32> to vector<64x8xf32>
    %148 = vector.extract_strided_slice %143 {offsets = [2, 0, 0], sizes = [1, 64, 8], strides = [1, 1, 1]} : vector<4x64x8xf32> to vector<1x64x8xf32>
    %149 = vector.shape_cast %148 : vector<1x64x8xf32> to vector<64x8xf32>
    %150 = vector.extract_strided_slice %143 {offsets = [3, 0, 0], sizes = [1, 64, 8], strides = [1, 1, 1]} : vector<4x64x8xf32> to vector<1x64x8xf32>
    %151 = vector.shape_cast %150 : vector<1x64x8xf32> to vector<64x8xf32>
    %152 = tpu.concatenate %145, %147, %149, %151 in 1 : vector<64x8xf32>, vector<64x8xf32>, vector<64x8xf32>, vector<64x8xf32> -> vector<64x32xf32>
    %cst_32 = arith.constant dense<0.000000e+00> : vector<64x32xf32>
    %153 = tpu.matmul %152, %43, %cst_32 {dimension_numbers = #tpu.dot_dimension_numbers<[1], [0], [0], [1], [0, 0, 1, 1], [], []>} : vector<64x32xf32>, vector<32x32xf32>, vector<64x32xf32> -> vector<64x32xf32>
    %154 = vector.broadcast %44 : vector<1x32xf32> to vector<64x32xf32>
    %155 = arith.addf %153, %154 : vector<64x32xf32>
    %156 = vector.extract_strided_slice %9 {offsets = [1, 0, 0], sizes = [1, 64, 32], strides = [1, 1, 1]} : vector<2x64x32xf32> to vector<1x64x32xf32>
    %157 = vector.shape_cast %156 : vector<1x64x32xf32> to vector<64x32xf32>
    %158 = arith.addf %155, %157 : vector<64x32xf32>
    %159 = tpu.transpose %158, [1, 0] : vector<64x32xf32> -> vector<32x64xf32>
    %c1 = arith.constant 1 : index
    %c0_33 = arith.constant 0 : index
    %c0_34 = arith.constant 0 : index
    %160 = vector.load %arg9[%c1, %c0_33, %c0_34] : memref<2x32x64xf32, #tpu.memory_space<vmem>>, vector<1x32x64xf32>
    %161 = vector.shape_cast %160 : vector<1x32x64xf32> to vector<32x64xf32>
    %162 = vector.shape_cast %159 : vector<32x64xf32> to vector<1x32x64xf32>
    tpu.vector_store %arg9[%c1, %c0_33, %c0_34], %162 {strides = array<i32>} : memref<2x32x64xf32, #tpu.memory_space<vmem>>, vector<1x32x64xf32>,
    return
  }
  func.func @transform_0(%arg0: i32) -> (i32, i32, i32) {
    %c0_i32 = arith.constant 0 : i32
    %c0_i32_0 = arith.constant 0 : i32
    %c0_i32_1 = arith.constant 0 : i32
    return %arg0, %c0_i32, %c0_i32_0 : i32, i32, i32
  }
  func.func @transform_1(%arg0: i32) -> (i32, i32) {
    %c0_i32 = arith.constant 0 : i32
    %c0_i32_0 = arith.constant 0 : i32
    %c0_i32_1 = arith.constant 0 : i32
    return %c0_i32, %c0_i32_0 : i32, i32
  }
  func.func @transform_2(%arg0: i32) -> (i32, i32) {
    %c0_i32 = arith.constant 0 : i32
    %c0_i32_0 = arith.constant 0 : i32
    %c0_i32_1 = arith.constant 0 : i32
    return %c0_i32, %c0_i32_0 : i32, i32
  }
  func.func @transform_3(%arg0: i32) -> (i32, i32) {
    %c0_i32 = arith.constant 0 : i32
    %c0_i32_0 = arith.constant 0 : i32
    %c0_i32_1 = arith.constant 0 : i32
    return %c0_i32, %c0_i32_0 : i32, i32
  }
  func.func @transform_4(%arg0: i32) -> (i32, i32) {
    %c0_i32 = arith.constant 0 : i32
    %c0_i32_0 = arith.constant 0 : i32
    %c0_i32_1 = arith.constant 0 : i32
    return %c0_i32, %c0_i32_0 : i32, i32
  }
  func.func @transform_5(%arg0: i32) -> (i32, i32) {
    %c0_i32 = arith.constant 0 : i32
    %c0_i32_0 = arith.constant 0 : i32
    %c0_i32_1 = arith.constant 0 : i32
    return %c0_i32, %c0_i32_0 : i32, i32
  }
  func.func @transform_6(%arg0: i32) -> (i32, i32) {
    %c0_i32 = arith.constant 0 : i32
    %c0_i32_0 = arith.constant 0 : i32
    %c0_i32_1 = arith.constant 0 : i32
    return %c0_i32, %c0_i32_0 : i32, i32
  }
  func.func @transform_7(%arg0: i32) -> (i32, i32) {
    %c0_i32 = arith.constant 0 : i32
    %c0_i32_0 = arith.constant 0 : i32
    %c0_i32_1 = arith.constant 0 : i32
    return %c0_i32, %c0_i32_0 : i32, i32
  }
  func.func @transform_8(%arg0: i32) -> (i32, i32, i32) {
    %c0_i32 = arith.constant 0 : i32
    %c0_i32_0 = arith.constant 0 : i32
    %c0_i32_1 = arith.constant 0 : i32
    return %arg0, %c0_i32, %c0_i32_0 : i32, i32, i32
  }
}

</mosaic_0001>

<bundles_post_ra>
// kernel: tpu_custom_call.1
= control target key start
LH: loop header
LB: loop body
LE: loop exit
PB: predicated region body
PF: predicated region fallthrough
CT: control target
= control target key end

     0   :  { %13 = vsyncpa [#allocation3], 0  ;;  %s8173_s0 = inlined_call_operand.hbm [shape: f32[2,32,64], index: 0, kind: input, shape index: {}]   ;;  %s8174_s1 = inlined_call_operand.hbm [shape: f32[32,32], index: 1, kind: input, shape index: {}]   ;;  %s8175_s2 = inlined_call_operand.vmem [shape: f32[1,32], index: 2, kind: input, shape index: {}]   ;;  %s8176_s3 = inlined_call_operand.vmem [shape: f32[1,32], index: 3, kind: input, shape index: {}]   ;;  %s8177_s4 = inlined_call_operand.hbm [shape: f32[32,96], index: 4, kind: input, shape index: {}]   ;;  %s8178_s5 = inlined_call_operand.vmem [shape: f32[1,96], index: 5, kind: input, shape index: {}]   ;;  %s8179_s6 = inlined_call_operand.hbm [shape: f32[32,32], index: 6, kind: input, shape index: {}]   ;;  %s8180_s7 = inlined_call_operand.vmem [shape: f32[1,32], index: 7, kind: input, shape index: {}]   ;;  %s8181_s8 = inlined_call_operand.hbm [shape: f32[2,32,64], index: 8, kind: output, shape index: {}]  }
   0x1   :  { %14 = vsyncpa [#allocation6], 0 }
   0x2   :  { %15 = vsyncpa [#allocation9], 0 }
   0x3   :  { %16 = vsyncpa [#allocation4], 0  ;;  %s6041_s27 = smov [#allocation5]   ;;  %s6042_s29 = smov [#allocation2]  }
   0x4   :  { %s34_s28 = sshll.u32 %s6041_s27, 4  ;;  %s22_s30 = sshll.u32 %s6042_s29, 4  ;;  %s35_s28 = int_to_ptr.vmem [resolvable:$true] %s34_s28  ;;  %s23_s30 = int_to_ptr.vmem [resolvable:$true] %s22_s30 }
   0x5   :  { %s5941_s9 = scalar_lea.vmem %s35_s28, 512  ;;  %p5946_p1 = scmp.lt.s32.totalorder %s35_s28, %s35_s28 }
   0x6   :  { %p5942_p0 = scmp.ne.s32.totalorder %s35_s28, %s5941_s9  ;;  %p5947_p2 = scmp.lt.s32.totalorder %s5941_s9, %s5941_s9 }
   0x8   :  { %p5948_p3 = por %p5947_p2, %p5946_p1 }
   0xa   :  { %p5949_p4 = pnand %p5948_p3, %p5942_p0 }
   0xc   :  { %5952 = shalt.err (!%p5949_p4)
}
   0xd   :  { %s6043_s10 = smov 128   ;;  %s6044_s11 = smov 8  }
   0xe   :  { %40 = dma.hbm_to_vmem [thread:$0]  %s8174_s1, 512, %s35_s28, [#allocation6], %s6043_s10, %s6043_s10, %s6044_s11  }
   0xf   :  { %s5961_s14 = scalar_lea.vmem %s23_s30, 1024  ;;  %p5966_p6 = scmp.lt.s32.totalorder %s23_s30, %s23_s30 }
  0x10   :  { %p5962_p5 = scmp.ne.s32.totalorder %s23_s30, %s5961_s14  ;;  %p5967_p7 = scmp.lt.s32.totalorder %s5961_s14, %s5961_s14 }
  0x12   :  { %p5968_p8 = por %p5967_p7, %p5966_p6 }
  0x14   :  { %p5969_p9 = pnand %p5968_p8, %p5962_p5 }
  0x16   :  { %5972 = shalt.err (!%p5969_p9)
}
  0x17   :  { %28 = dma.hbm_to_vmem [thread:$0]  %s8173_s0, 1024, %s23_s30, [#allocation3], %s6043_s10, %s6043_s10, %s6044_s11  }
  0x18   :  { %s6045_s17 = smov [#allocation7]   ;;  %s6046_s19 = smov [#allocation8]  }
  0x19   :  { %s50_s18 = sshll.u32 %s6045_s17, 4  ;;  %s64_s20 = sshll.u32 %s6046_s19, 4  ;;  %s51_s18 = int_to_ptr.vmem [resolvable:$true] %s50_s18  ;;  %s65_s20 = int_to_ptr.vmem [resolvable:$true] %s64_s20 }
  0x1a   :  { %s5981_s1 = scalar_lea.vmem %s51_s18, 512  ;;  %p5986_p11 = scmp.lt.s32.totalorder %s51_s18, %s51_s18 }
  0x1b   :  { %p5982_p10 = scmp.ne.s32.totalorder %s51_s18, %s5981_s1  ;;  %p5987_p12 = scmp.lt.s32.totalorder %s5981_s1, %s5981_s1 }
  0x1d   :  { %p5988_p13 = por %p5987_p12, %p5986_p11 }
  0x1f   :  { %p5989_p0 = pnand %p5988_p13, %p5982_p10 }
  0x21   :  { %5992 = shalt.err (!%p5989_p0)
}
  0x22   :  { %56 = dma.hbm_to_vmem [thread:$0]  %s8177_s4, 512, %s51_s18, [#allocation6], %s6043_s10, %s6043_s10, %s6044_s11  }
  0x23   :  { %s6001_s0 = scalar_lea.vmem %s65_s20, 512  ;;  %p6006_p2 = scmp.lt.s32.totalorder %s65_s20, %s65_s20 }
  0x24   :  { %p6002_p1 = scmp.ne.s32.totalorder %s65_s20, %s6001_s0  ;;  %p6007_p3 = scmp.lt.s32.totalorder %s6001_s0, %s6001_s0 }
  0x26   :  { %p6008_p4 = por %p6007_p3, %p6006_p2 }
  0x28   :  { %p6009_p5 = pnand %p6008_p4, %p6002_p1 }
  0x2a   :  { %6012 = shalt.err (!%p6009_p5)
}
  0x2b   :  { %70 = dma.hbm_to_vmem [thread:$0]  %s8179_s6, 512, %s65_s20, [#allocation9], %s6043_s10, %s6043_s10, %s6044_s11  }
  0x2c   :  { %6033 = dma.done.wait [#allocation3], 1024  }
  0x2d   :  { %6034 = vsyncadd [#allocation3], 4294966272 }
  0x2e   :  { %6035 = dma.done.wait [#allocation6], 1024  }
  0x2f   :  { %6036 = vsyncadd [#allocation6], 4294966272 }
  0x30   :  { %6037 = dma.done.wait [#allocation9], 512  }
  0x31   :  { %6038 = vsyncadd [#allocation9], 4294966784  ;;  %v89_v0 = vld [vmem:[#allocation2 + $0x20] sm:$0xff]  ;;  %v90_v2 = vld [vmem:[#allocation2 + $0x28] sm:$0xff]  ;;  %v6047_v9 = vmov 0.0   ;;  %vm6048_vm0 = vmmov 0  }
  0x32   :  { %v85_v1 = vld [vmem:[#allocation2] sm:$0xff]  ;;  %125 = vxpose.xlu1.b32.start [1/4] (short) (narrow) %v89_v0, 64  ;;  %v86_v3 = vld [vmem:[#allocation2 + $0x8] sm:$0xff]  ;;  %v91_v4 = vld [vmem:[#allocation2 + $0x30] sm:$0xff]  ;;  %5123 = vmatprep.subr.mxu0 %v6047_v9  ;;  %vm157_vm1 = vcmask 261120   ;;  %vm260_vm2 = vcmask 1041409  }
  0x33   :  { %93 = vxpose.xlu0.b32.start [1/4] (short) (narrow) %v85_v1, 64  ;;  %v87_v5 = vld [vmem:[#allocation2 + $0x10] sm:$0xff]  ;;  %v92_v6 = vld [vmem:[#allocation2 + $0x38] sm:$0xff]  ;;  %5131 = vmatprep.mubr.msk.f32.mxu0 %vm6048_vm0, %v6047_v9  ;;  %v271_v11 = vld [vmem:[#allocation5 + $0x8] sm:$0xff]  ;;  %vm265_vm3 = vcmask 1043459   ;;  %vm268_vm4 = vcmask 1041408  }
  0x34   :  { %v88_v7 = vld [vmem:[#allocation2 + $0x18] sm:$0xff]  ;;  %v272_v10 = vld [vmem:[#allocation5 + $0x10] sm:$0xff]  ;;  %v270_v12 = vld [vmem:[#allocation5] sm:$0xff]  ;;  %vm781_vm5 = vcmask 64512   ;;  %s6051_s27 = smov 104   ;;  %s6052_s28 = smov 112  }
  0x35   :  { %v273_v8 = vld [vmem:[#allocation5 + $0x18] sm:$0xff]  ;;  %s6053_s29 = smov 96   ;;  %s6054_s30 = smov 64   ;;  %vm1378_vm6 = vcmask 523264   ;;  %vm2447_vm7 = vcmask 130048   ;;  %vm2456_vm8 = vcmask 195584  }
  0x36   :  { %126 = vxpose.xlu1.b32.cont [2/4] (short) (narrow) %v90_v2, 64  ;;  %5124 = vmatpush3.msra.mxu0 %v273_v8  ;;  %s6055_s9 = smov 16   ;;  %s6056_s12 = smov 24  }
  0x37   :  { %94 = vxpose.xlu0.b32.cont [2/4] (short) (narrow) %v86_v3, 64  ;;  %5125 = vmatprep.subr.mxu0 %v6047_v9 }
  0x38   :  { %5126 = vmatpush3.msra.mxu0 %v272_v10 }
  0x39   :  { %5127 = vmatprep.subr.mxu0 %v6047_v9 }
  0x3a   :  { %127 = vxpose.xlu1.b32.cont [3/4] (short) (narrow) %v91_v4, 64  ;;  %5128 = vmatpush3.msra.mxu0 %v271_v11 }
  0x3b   :  { %95 = vxpose.xlu0.b32.cont [3/4] (short) (narrow) %v87_v5, 64  ;;  %5129 = vmatprep.subr.mxu0 %v6047_v9 }
  0x3c   :  { %5130 = vmatpush3.msra.mxu0 %v270_v12 }
  0x3e   :  { %128 = vxpose.xlu1.b32.end [4/4] (short) (narrow) %v92_v6, 64 }
  0x3f   :  { %96 = vxpose.xlu0.b32.end [4/4] (short) (narrow) %v88_v7, 64 }
  0xae   :  { %v6127_v13 = vpop.trf.xlu1 }
  0xaf   :  { %8209 = vst [vmem:[#allocation15_spill] sm:$0xff] %v6127_v13  ;;  %v6129_v14 = vpop.trf.xlu0  ;;  %v208_v21 = vmul.f32 %v6127_v13, %v6127_v13  ;;  %v179_v29 = vsel %vm157_vm1, %v6127_v13, 0.0 }
  0xb0   :  { %8210 = vst [vmem:[#allocation16_spill] sm:$0xff] %v6129_v14  ;;  %v200_v22 = vmul.f32 %v6129_v14, %v6129_v14  ;;  %v158_v30 = vsel %vm157_vm1, %v6129_v14, 0.0 }
  0xb1   :  { %v237_v35 = vsel %vm157_vm1, %v208_v21, 0.0 }
  0xb2   :  { %v6131_v15 = vpop.trf.xlu1  ;;  %v216_v36 = vsel %vm157_vm1, %v200_v22, 0.0 }
  0xb3   :  { %8211 = vst [vmem:[#allocation17_spill] sm:$0xff] %v6131_v15  ;;  %v6133_v16 = vpop.trf.xlu0  ;;  %v209_v19 = vmul.f32 %v6131_v15, %v6131_v15  ;;  %v180_v25 = vsel %vm157_vm1, %v6131_v15, 0.0 }
  0xb4   :  { %8212 = vst [vmem:[#allocation18_spill] sm:$0xff] %v6133_v16  ;;  %v201_v20 = vmul.f32 %v6133_v16, %v6133_v16  ;;  %v159_v26 = vsel %vm157_vm1, %v6133_v16, 0.0  ;;  %v181_v37 = vadd.f32 %v180_v25, %v179_v29 }
  0xb5   :  { %v238_v31 = vsel %vm157_vm1, %v209_v19, 0.0  ;;  %v160_v38 = vadd.f32 %v159_v26, %v158_v30 }
  0xb6   :  { %v6135_v17 = vpop.trf.xlu1  ;;  %v217_v32 = vsel %vm157_vm1, %v201_v20, 0.0  ;;  %v239_v45 = vadd.f32 %v238_v31, %v237_v35 }
  0xb7   :  { %8213 = vst [vmem:[#allocation19_spill] sm:$0xff] %v6135_v17  ;;  %v6137_v18 = vpop.trf.xlu0  ;;  %v210_v27 = vmul.f32 %v6135_v17, %v6135_v17  ;;  %v182_v41 = vsel %vm157_vm1, %v6135_v17, 0.0  ;;  %v218_v46 = vadd.f32 %v217_v32, %v216_v36 }
  0xb8   :  { %8214 = vst [vmem:[#allocation20_spill] sm:$0xff] %v6137_v18  ;;  %v202_v28 = vmul.f32 %v6137_v18, %v6137_v18  ;;  %v161_v43 = vsel %vm157_vm1, %v6137_v18, 0.0  ;;  %v183_v53 = vadd.f32 %v182_v41, %v181_v37 }
  0xb9   :  { %v240_v42 = vsel %vm157_vm1, %v210_v27, 0.0  ;;  %v162_v55 = vadd.f32 %v161_v43, %v160_v38 }
  0xba   :  { %v6147_v23 = vpop.trf.xlu1  ;;  %v219_v44 = vsel %vm157_vm1, %v202_v28, 0.0  ;;  %v241_v54 = vadd.f32 %v240_v42, %v239_v45 }
  0xbb   :  { %8215 = vst [vmem:[#allocation21_spill] sm:$0xff] %v6147_v23  ;;  %v6149_v24 = vpop.trf.xlu0  ;;  %v211_v33 = vmul.f32 %v6147_v23, %v6147_v23  ;;  %v184_v47 = vsel %vm157_vm1, %v6147_v23, 0.0  ;;  %v220_v56 = vadd.f32 %v219_v44, %v218_v46 }
  0xbc   :  { %8216 = vst [vmem:[#allocation22_spill] sm:$0xff] %v6149_v24  ;;  %v203_v34 = vmul.f32 %v6149_v24, %v6149_v24  ;;  %v163_v48 = vsel %vm157_vm1, %v6149_v24, 0.0  ;;  %v185_v63 = vadd.f32 %v184_v47, %v183_v53 }
  0xbd   :  { %v242_v49 = vsel %vm157_vm1, %v211_v33, 0.0  ;;  %v164_v1 = vadd.f32 %v163_v48, %v162_v55 }
  0xbe   :  { %v6171_v39 = vpop.trf.xlu1  ;;  %v221_v50 = vsel %vm157_vm1, %v203_v34, 0.0  ;;  %v243_v0 = vadd.f32 %v242_v49, %v241_v54 }
  0xbf   :  { %8217 = vst [vmem:[#allocation23_spill] sm:$0xff] %v6171_v39  ;;  %v6173_v40 = vpop.trf.xlu0  ;;  %v212_v51 = vmul.f32 %v6171_v39, %v6171_v39  ;;  %v186_v59 = vsel %vm157_vm1, %v6171_v39, 0.0  ;;  %v222_v2 = vadd.f32 %v221_v50, %v220_v56 }
  0xc0   :  { %8218 = vst [vmem:[#allocation24_spill] sm:$0xff] %v6173_v40  ;;  %v204_v52 = vmul.f32 %v6173_v40, %v6173_v40  ;;  %v165_v60 = vsel %vm157_vm1, %v6173_v40, 0.0  ;;  %v187_v7 = vadd.f32 %v186_v59, %v185_v63 }
  0xc1   :  { %v244_v3 = vsel %vm157_vm1, %v212_v51, 0.0  ;;  %v166_v8 = vadd.f32 %v165_v60, %v164_v1 }
  0xc2   :  { %v6191_v57 = vpop.trf.xlu1  ;;  %v223_v4 = vsel %vm157_vm1, %v204_v52, 0.0  ;;  %v245_v25 = vadd.f32 %v244_v3, %v243_v0 }
  0xc3   :  { %8219 = vst [vmem:[#allocation25_spill] sm:$0xff] %v6191_v57  ;;  %v6193_v58 = vpop.trf.xlu0  ;;  %v213_v61 = vmul.f32 %v6191_v57, %v6191_v57  ;;  %v188_v5 = vsel %vm157_vm1, %v6191_v57, 0.0  ;;  %v224_v26 = vadd.f32 %v223_v4, %v222_v2 }
  0xc4   :  { %8220 = vst [vmem:[#allocation26_spill] sm:$0xff] %v6193_v58  ;;  %v205_v62 = vmul.f32 %v6193_v58, %v6193_v58  ;;  %v167_v6 = vsel %vm157_vm1, %v6193_v58, 0.0  ;;  %v189_v27 = vadd.f32 %v188_v5, %v187_v7 }
  0xc5   :  { %v246_v9 = vsel %vm157_vm1, %v213_v61, 0.0  ;;  %v168_v28 = vadd.f32 %v167_v6, %v166_v8 }
  0xc6   :  { %v225_v10 = vsel %vm157_vm1, %v205_v62, 0.0  ;;  %v6211_v11 = vpop.trf.xlu1  ;;  %v247_v31 = vadd.f32 %v246_v9, %v245_v25 }
  0xc7   :  { %8221 = vst [vmem:[#allocation27_spill] sm:$0xff] %v6211_v11  ;;  %v6213_v12 = vpop.trf.xlu0  ;;  %v190_v19 = vsel %vm157_vm1, %v6211_v11, 0.0  ;;  %v214_v20 = vmul.f32 %v6211_v11, %v6211_v11  ;;  %v226_v32 = vadd.f32 %v225_v10, %v224_v26  ;;  %v503_v26 = vld [vmem:[#allocation7 + $0x18] sm:$0xff] }
  0xc8   :  { %8222 = vst [vmem:[#allocation28_spill] sm:$0xff] %v6213_v12  ;;  %v169_v21 = vsel %vm157_vm1, %v6213_v12, 0.0  ;;  %v206_v22 = vmul.f32 %v6213_v12, %v6213_v12  ;;  %v191_v33 = vadd.f32 %v190_v19, %v189_v27  ;;  %5134 = vmatprep.subr.mxu1 %v503_v26  ;;  %v502_v27 = vld [vmem:[#allocation7 + $0x10] sm:$0xff] }
  0xc9   :  { %v248_v29 = vsel %vm157_vm1, %v214_v20, 0.0  ;;  %v170_v34 = vadd.f32 %v169_v21, %v168_v28  ;;  %5135 = vmatpush3.msra.mxu1 %v503_v26  ;;  %v501_v28 = vld [vmem:[#allocation7 + $0x8] sm:$0xff] }
  0xca   :  { %v227_v30 = vsel %vm157_vm1, %v206_v22, 0.0  ;;  %v6225_v35 = vpop.trf.xlu1  ;;  %v249_v43 = vadd.f32 %v248_v29, %v247_v31  ;;  %5136 = vmatprep.subr.mxu1 %v502_v27  ;;  %v500_v29 = vld [vmem:[#allocation7] sm:$0xff] }
  0xcb   :  { %8223 = vst [vmem:[#allocation29_spill] sm:$0xff] %v6225_v35  ;;  %v6227_v36 = vpop.trf.xlu0  ;;  %v192_v37 = vsel %vm157_vm1, %v6225_v35, 0.0  ;;  %v215_v38 = vmul.f32 %v6225_v35, %v6225_v35  ;;  %v228_v44 = vadd.f32 %v227_v30, %v226_v32  ;;  %5137 = vmatpush3.msra.mxu1 %v502_v27 }
  0xcc   :  { %8224 = vst [vmem:[#allocation30_spill] sm:$0xff] %v6227_v36  ;;  %v171_v41 = vsel %vm157_vm1, %v6227_v36, 0.0  ;;  %v207_v42 = vmul.f32 %v6227_v36, %v6227_v36  ;;  %v193_v45 = vadd.f32 %v192_v37, %v191_v33  ;;  %5138 = vmatprep.subr.mxu1 %v501_v28  ;;  %v6049_v37 = vmov 1966171168  }
  0xcd   :  { %v172_v46 = vadd.f32 %v171_v41, %v170_v34  ;;  %v250_v47 = vsel %vm157_vm1, %v215_v38, 0.0  ;;  %5139 = vmatpush3.msra.mxu1 %v501_v28  ;;  %v356_v38 = vunpack.c.l.s4 %v6049_v37  ;;  %v358_v41 = vlaneseq }
  0xce   :  { %v229_v48 = vsel %vm157_vm1, %v207_v42, 0.0  ;;  %v194_v49 = vrot.slane %v193_v45, 4  ;;  %v251_v50 = vadd.f32 %v250_v47, %v249_v43  ;;  %5140 = vmatprep.subr.mxu1 %v500_v29 }
  0xcf   :  { %v173_v51 = vrot.slane %v172_v46, 4  ;;  %v230_v52 = vadd.f32 %v229_v48, %v228_v44  ;;  %5141 = vmatpush3.msra.mxu1 %v500_v29  ;;  %v357_v43 = vunpack.c.0.s8 %v356_v38  ;;  %v359_v44 = vshrl.u32 %v358_v41, 7 }
  0xd0   :  { %v195_v53 = vadd.f32 %v194_v49, %v193_v45  ;;  %v252_v54 = vrot.slane %v251_v50, 4 }
  0xd1   :  { %v174_v55 = vadd.f32 %v173_v51, %v172_v46  ;;  %v231_v56 = vrot.slane %v230_v52, 4  ;;  %v360_v45 = vsub.s32 %v357_v43, %v359_v44  ;;  %v379_v48 = vsub.s32 0, %v359_v44 }
  0xd2   :  { %v196_v59 = vrot.slane %v195_v53, 2  ;;  %v253_v60 = vadd.f32 %v252_v54, %v251_v50 }
  0xd3   :  { %v175_v61 = vrot.slane %v174_v55, 2  ;;  %v232_v62 = vadd.f32 %v231_v56, %v230_v52 }
  0xd4   :  { %v197_v0 = vadd.f32 %v196_v59, %v195_v53  ;;  %v254_v2 = vrot.slane %v253_v60, 2 }
  0xd5   :  { %v176_v63 = vadd.f32 %v175_v61, %v174_v55  ;;  %v233_v1 = vrot.slane %v232_v62, 2 }
  0xd6   :  { %v198_v4 = vrot.slane %v197_v0, 1  ;;  %v255_v6 = vadd.f32 %v254_v2, %v253_v60 }
  0xd7   :  { %v177_v3 = vrot.slane %v176_v63, 1  ;;  %v234_v5 = vadd.f32 %v233_v1, %v232_v62 }
  0xd8   :  { %v199_v8 = vadd.f32 %v198_v4, %v197_v0  ;;  %v256_v10 = vrot.slane %v255_v6, 1  ;;  %v6246_v0 = vld [vmem:[%s8175_s2] ss:$0 sm:$0xff] }
  0xd9   :  { %v178_v7 = vadd.f32 %v177_v3, %v176_v63  ;;  %v235_v9 = vrot.slane %v234_v5, 1 }
  0xda   :  { %v257_v20 = vadd.f32 %v256_v10, %v255_v6 }
  0xdb   :  { %v236_v19 = vadd.f32 %v235_v9, %v234_v5  ;;  %v261_v21 = vsel %vm260_vm2, %v199_v8, %v178_v7  ;;  %v6253_v7 = vld [vmem:[%s8176_s3] ss:$0 sm:$0xff] }
  0xdd   :  { %v266_v22 = vsel %vm265_vm3, %v257_v20, %v236_v19 }
  0xde   :  { %v269_v25 = vsel %vm268_vm4, %v261_v21, %v266_v22 }
  0xdf   :  { %5132 = vmatmul.mubr.msk.f32.vlgmr.msra.gmra.mxu0 %vm157_vm1, %v269_v25 }
 0x19f   :  { %v343_v30 = vpop.f32.mrf.mxu0 }
 0x1a0   :  { %v347_v31 = vmul.f32 %v343_v30, %v343_v30  ;;  %v361_v46 = vrot.slane %v343_v30, %v360_v45 }
 0x1a1   :  { %v5133_v32 = vpop.f32.mrf.mxu0 }
 0x1a2   :  { %v349_v33 = vrot.slane %v347_v31, 6  ;;  %v369_v47 = vrot.slane %v361_v46, %v360_v45  ;;  %v362_v54 = vcombine.high %v361_v46, %v361_v46 }
 0x1a4   :  { %v351_v34 = vsub.f32 %v343_v30, %v349_v33  ;;  %v380_v51 = vrot.slane %v369_v47, %v379_v48  ;;  %v376_v63 = vrot.slane %v362_v54, %v360_v45 }
 0x1a6   :  { %v352_v42 = vadd.f32 1e-05, %v351_v34  ;;  %v387_v60 = vsub.f32 %v6129_v14, %v380_v51  ;;  %v388_v61 = vsub.f32 %v6133_v16, %v380_v51  ;;  %v389_v62 = vsub.f32 %v6137_v18, %v380_v51 }
 0x1a7   :  { %v390_v1 = vsub.f32 %v6149_v24, %v380_v51  ;;  %v391_v5 = vsub.f32 %v6173_v40, %v380_v51  ;;  %v392_v21 = vsub.f32 %v6193_v58, %v380_v51  ;;  %v384_v22 = vrot.slane %v376_v63, %v379_v48 }
 0x1a8   :  { %5671 = vrsqrt.f32 %v352_v42  ;;  %v393_v27 = vsub.f32 %v6213_v12, %v380_v51  ;;  %v394_v34 = vsub.f32 %v6227_v36, %v380_v51 }
 0x1a9   :  { %v395_v37 = vsub.f32 %v6127_v13, %v384_v22  ;;  %v396_v46 = vsub.f32 %v6131_v15, %v384_v22  ;;  %v397_v47 = vsub.f32 %v6135_v17, %v384_v22  ;;  %v398_v54 = vsub.f32 %v6147_v23, %v384_v22 }
 0x1b5   :  { %v5672_v49 = vpop.eup %5671 }
 0x1b6   :  { %v410_v50 = vrot.slane %v5672_v49, %v360_v45 }
 0x1b8   :  { %v411_v52 = vcombine.high %v410_v50, %v410_v50  ;;  %v418_v53 = vrot.slane %v410_v50, %v360_v45 }
 0x1ba   :  { %v426_v55 = vcombine.high %v418_v53, %v418_v53  ;;  %v425_v56 = vrot.slane %v411_v52, %v360_v45 }
 0x1bc   :  { %v431_v59 = vrot.slane %v426_v55, %v379_v48  ;;  %v427_v6 = vcombine.high %v425_v56, %v425_v56  ;;  %v399_v55 = vsub.f32 %v6171_v39, %v384_v22 }
 0x1be   :  { %v438_v2 = vmul.f32 %v431_v59, %v387_v60  ;;  %v439_v3 = vmul.f32 %v431_v59, %v388_v61  ;;  %v440_v4 = vmul.f32 %v431_v59, %v389_v62  ;;  %v441_v8 = vmul.f32 %v431_v59, %v390_v1 }
 0x1bf   :  { %v442_v20 = vmul.f32 %v431_v59, %v391_v5  ;;  %v443_v29 = vmul.f32 %v431_v59, %v392_v21  ;;  %v435_v30 = vrot.slane %v427_v6, %v379_v48  ;;  %v444_v33 = vmul.f32 %v431_v59, %v393_v27 }
 0x1c0   :  { %v461_v9 = vmul.f32 %v6246_v0, %v438_v2  ;;  %v462_v10 = vmul.f32 %v6246_v0, %v439_v3  ;;  %v463_v19 = vmul.f32 %v6246_v0, %v440_v4  ;;  %v464_v28 = vmul.f32 %v6246_v0, %v441_v8 }
 0x1c1   :  { %v465_v32 = vmul.f32 %v6246_v0, %v442_v20  ;;  %v466_v41 = vmul.f32 %v6246_v0, %v443_v29  ;;  %v445_v42 = vmul.f32 %v431_v59, %v394_v34  ;;  %v467_v44 = vmul.f32 %v6246_v0, %v444_v33 }
 0x1c2   :  { %v484_v25 = vadd.f32 %v6253_v7, %v461_v9  ;;  %v485_v26 = vadd.f32 %v6253_v7, %v462_v10  ;;  %v486_v31 = vadd.f32 %v6253_v7, %v463_v19  ;;  %v487_v38 = vadd.f32 %v6253_v7, %v464_v28 }
 0x1c3   :  { %v488_v43 = vadd.f32 %v6253_v7, %v465_v32  ;;  %v446_v45 = vmul.f32 %v435_v30, %v395_v37  ;;  %v489_v48 = vadd.f32 %v6253_v7, %v466_v41  ;;  %v468_v49 = vmul.f32 %v6246_v0, %v445_v42 }
 0x1c4   :  { %5142 = vmatprep.mubr.msk.f32.mxu1 %vm157_vm1, %v484_v25  ;;  %v447_v50 = vmul.f32 %v435_v30, %v396_v46  ;;  %v490_v51 = vadd.f32 %v6253_v7, %v467_v44  ;;  %v448_v53 = vmul.f32 %v435_v30, %v397_v47  ;;  %v449_v60 = vmul.f32 %v435_v30, %v398_v54 }
 0x1c5   :  { %5143 = vmatmul.mubr.msk.f32.vlgmr.msra.gmra.mxu1 %vm157_vm1, %v485_v26  ;;  %v469_v52 = vmul.f32 %v6246_v0, %v446_v45  ;;  %v491_v56 = vadd.f32 %v6253_v7, %v468_v49  ;;  %v450_v63 = vmul.f32 %v435_v30, %v399_v55  ;;  %v400_v1 = vsub.f32 %v6191_v57, %v384_v22 }
 0x1c6   :  { %5145 = vmatprep.mubr.msk.f32.mxu1 %vm157_vm1, %v486_v31  ;;  %v470_v59 = vmul.f32 %v6246_v0, %v447_v50  ;;  %v471_v62 = vmul.f32 %v6246_v0, %v448_v53  ;;  %v401_v2 = vsub.f32 %v6211_v11, %v384_v22  ;;  %v472_v4 = vmul.f32 %v6246_v0, %v449_v60  ;;  %v6317_v31 = vld [vmem:[%s8178_s5] ss:$0 sm:$0xff]  ;;  %s6050_s5 = smov 120  }
 0x1c7   :  { %v492_v61 = vadd.f32 %v6253_v7, %v469_v52  ;;  %v451_v5 = vmul.f32 %v435_v30, %v400_v1  ;;  %v473_v8 = vmul.f32 %v6246_v0, %v450_v63  ;;  %v402_v10 = vsub.f32 %v6225_v35, %v384_v22 }
 0x1c8   :  { %v493_v3 = vadd.f32 %v6253_v7, %v470_v59  ;;  %v494_v6 = vadd.f32 %v6253_v7, %v471_v62  ;;  %v452_v9 = vmul.f32 %v435_v30, %v401_v2  ;;  %v495_v19 = vadd.f32 %v6253_v7, %v472_v4 }
 0x1c9   :  { %5146 = vmatmul.mubr.msk.f32.gmra.mxu1 %vm157_vm1, %v487_v38  ;;  %v474_v20 = vmul.f32 %v6246_v0, %v451_v5  ;;  %v453_v21 = vmul.f32 %v435_v30, %v402_v10  ;;  %v496_v25 = vadd.f32 %v6253_v7, %v473_v8 }
 0x1ca   :  { %5148 = vmatprep.mubr.msk.f32.mxu1 %vm157_vm1, %v488_v43  ;;  %v475_v26 = vmul.f32 %v6246_v0, %v452_v9 }
 0x1cb   :  { %v497_v27 = vadd.f32 %v6253_v7, %v474_v20  ;;  %v476_v28 = vmul.f32 %v6246_v0, %v453_v21 }
 0x1cc   :  { %v498_v22 = vadd.f32 %v6253_v7, %v475_v26 }
 0x1cd   :  { %5149 = vmatmul.mubr.msk.f32.gmra.mxu1 %vm157_vm1, %v489_v48  ;;  %v499_v29 = vadd.f32 %v6253_v7, %v476_v28 }
 0x1ce   :  { %5151 = vmatprep.mubr.msk.f32.mxu1 %vm157_vm1, %v490_v51 }
 0x1d1   :  { %5152 = vmatmul.mubr.msk.f32.gmra.mxu1 %vm157_vm1, %v491_v56 }
 0x1d2   :  { %5154 = vmatprep.mubr.msk.f32.mxu1 %vm157_vm1, %v492_v61 }
 0x1d5   :  { %5155 = vmatmul.mubr.msk.f32.gmra.mxu1 %vm157_vm1, %v493_v3 }
 0x1d6   :  { %5157 = vmatprep.mubr.msk.f32.mxu1 %vm157_vm1, %v494_v6 }
 0x1d9   :  { %5158 = vmatmul.mubr.msk.f32.gmra.mxu1 %vm157_vm1, %v495_v19 }
 0x1da   :  { %5160 = vmatprep.mubr.msk.f32.mxu1 %vm157_vm1, %v496_v25 }
 0x1dd   :  { %5161 = vmatmul.mubr.msk.f32.gmra.mxu1 %vm157_vm1, %v497_v27 }
 0x1de   :  { %5163 = vmatprep.mubr.msk.f32.mxu1 %vm157_vm1, %v498_v22 }
 0x1e1   :  { %5164 = vmatmul.mubr.msk.f32.gmra.mxu1 %vm157_vm1, %v499_v29 }
 0x285   :  { %v5144_v30 = vpop.f32.mrf.mxu1 }
 0x286   :  { %v6365_v52 = vadd.f32 %v5144_v30, %v6317_v31 }
 0x287   :  { %v625_v32 = vpop.f32.mrf.mxu1 }
 0x288   :  { %v6320_v0 = vadd.f32 %v6317_v31, %v625_v32 }
 0x289   :  { %v5147_v33 = vpop.f32.mrf.mxu1 }
 0x28a   :  { %5182 = vmatprep.mubr.msk.f32.mxu0 %vm781_vm5, %v6320_v0  ;;  %v6358_v51 = vadd.f32 %v5147_v33, %v6317_v31 }
 0x28b   :  { %v635_v34 = vpop.f32.mrf.mxu1 }
 0x28c   :  { %v6333_v45 = vadd.f32 %v6317_v31, %v635_v34 }
 0x28d   :  { %v5150_v37 = vpop.f32.mrf.mxu1 }
 0x28e   :  { %v6341_v48 = vadd.f32 %v5150_v37, %v6317_v31 }
 0x28f   :  { %v645_v7 = vpop.f32.mrf.mxu1 }
 0x290   :  { %v6351_v50 = vadd.f32 %v6317_v31, %v645_v7 }
 0x291   :  { %v5153_v38 = vpop.f32.mrf.mxu1 }
 0x292   :  { %v6325_v41 = vadd.f32 %v5153_v38, %v6317_v31 }
 0x293   :  { %v655_v42 = vpop.f32.mrf.mxu1 }
 0x294   :  { %v6328_v43 = vadd.f32 %v6317_v31, %v655_v42  ;;  %731 = vrot.lane.b32.xlu0 %v6325_v41, %s6050_s5 }
 0x295   :  { %v5156_v44 = vpop.f32.mrf.mxu1 }
 0x296   :  { %v6336_v46 = vadd.f32 %v5156_v44, %v6317_v31  ;;  %729 = vrot.lane.b32.xlu1 %v6328_v43, %s6050_s5 }
 0x297   :  { %v665_v47 = vpop.f32.mrf.mxu1 }
 0x298   :  { %v6344_v49 = vadd.f32 %v6317_v31, %v665_v47  ;;  %721 = vrot.lane.b32.xlu0 %v6333_v45, %s6050_s5 }
 0x29a   :  { %727 = vrot.lane.b32.xlu1 %v6341_v48, %s6050_s5 }
 0x29c   :  { %717 = vrot.lane.b32.xlu0 %v6320_v0, %s6050_s5 }
 0x29e   :  { %725 = vrot.lane.b32.xlu1 %v6351_v50, %s6050_s5 }
 0x2a0   :  { %763 = vrot.lane.b32.xlu0 %v6325_v41, %s6051_s27 }
 0x2a2   :  { %723 = vrot.lane.b32.xlu1 %v6358_v51, %s6050_s5 }
 0x2a4   :  { %759 = vrot.lane.b32.xlu0 %v6341_v48, %s6051_s27 }
 0x2a6   :  { %719 = vrot.lane.b32.xlu1 %v6365_v52, %s6050_s5 }
 0x2a8   :  { %761 = vrot.lane.b32.xlu0 %v6328_v43, %s6051_s27 }
 0x2aa   :  { %747 = vrot.lane.b32.xlu1 %v6325_v41, %s6052_s28 }
 0x2ac   :  { %757 = vrot.lane.b32.xlu0 %v6351_v50, %s6051_s27 }
 0x2ae   :  { %743 = vrot.lane.b32.xlu1 %v6341_v48, %s6052_s28 }
 0x2b0   :  { %755 = vrot.lane.b32.xlu0 %v6358_v51, %s6051_s27 }
 0x2b2   :  { %745 = vrot.lane.b32.xlu1 %v6328_v43, %s6052_s28 }
 0x2b4   :  { %753 = vrot.lane.b32.xlu0 %v6333_v45, %s6051_s27 }
 0x2b6   :  { %741 = vrot.lane.b32.xlu1 %v6351_v50, %s6052_s28 }
 0x2b8   :  { %751 = vrot.lane.b32.xlu0 %v6365_v52, %s6051_s27 }
 0x2ba   :  { %739 = vrot.lane.b32.xlu1 %v6358_v51, %s6052_s28 }
 0x2bc   :  { %749 = vrot.lane.b32.xlu0 %v6320_v0, %s6051_s27 }
 0x2be   :  { %737 = vrot.lane.b32.xlu1 %v6333_v45, %s6052_s28 }
 0x2c2   :  { %735 = vrot.lane.b32.xlu1 %v6365_v52, %s6052_s28 }
 0x2c6   :  { %779 = vrot.lane.b32.xlu1 %v6325_v41, %s6053_s29 }
 0x2ca   :  { %733 = vrot.lane.b32.xlu1 %v6320_v0, %s6052_s28 }
 0x2ce   :  { %777 = vrot.lane.b32.xlu1 %v6328_v43, %s6053_s29 }
 0x2d2   :  { %775 = vrot.lane.b32.xlu1 %v6341_v48, %s6053_s29 }
 0x2d6   :  { %773 = vrot.lane.b32.xlu1 %v6351_v50, %s6053_s29 }
 0x2da   :  { %771 = vrot.lane.b32.xlu1 %v6358_v51, %s6053_s29 }
 0x2de   :  { %769 = vrot.lane.b32.xlu1 %v6333_v45, %s6053_s29 }
 0x2e2   :  { %767 = vrot.lane.b32.xlu1 %v6365_v52, %s6053_s29 }
 0x2e6   :  { %765 = vrot.lane.b32.xlu1 %v6320_v0, %s6053_s29 }
 0x306   :  { %v6415_v53 = vpop.permute.xlu0 %731 }
 0x307   :  { %933 = vrot.lane.b32.xlu0 %v6415_v53, %s6053_s29 }
 0x308   :  { %v6419_v54 = vpop.permute.xlu1 %729 }
 0x30a   :  { %v6421_v55 = vpop.permute.xlu0 %721 }
 0x30b   :  { %931 = vrot.lane.b32.xlu0 %v6419_v54, %s6053_s29 }
 0x30c   :  { %v6425_v56 = vpop.permute.xlu1 %727 }
 0x30e   :  { %v6427_v59 = vpop.permute.xlu0 %717 }
 0x30f   :  { %929 = vrot.lane.b32.xlu0 %v6425_v56, %s6053_s29  ;;  %5210 = vmatprep.mubr.msk.f32.mxu1 %vm781_vm5, %v6427_v59 }
 0x310   :  { %v6433_v60 = vpop.permute.xlu1 %725 }
 0x312   :  { %v6441_v62 = vpop.permute.xlu0 %763 }
 0x313   :  { %927 = vrot.lane.b32.xlu0 %v6433_v60, %s6053_s29 }
 0x314   :  { %v6437_v61 = vpop.permute.xlu1 %723 }
 0x316   :  { %v6451_v2 = vpop.permute.xlu0 %759 }
 0x317   :  { %925 = vrot.lane.b32.xlu0 %v6437_v61, %s6053_s29 }
 0x318   :  { %v6443_v63 = vpop.permute.xlu1 %719 }
 0x31a   :  { %v6459_v4 = vpop.permute.xlu0 %761 }
 0x31b   :  { %923 = vrot.lane.b32.xlu0 %v6421_v55, %s6053_s29 }
 0x31c   :  { %v6447_v1 = vpop.permute.xlu1 %747 }
 0x31d   :  { %1086 = vrot.lane.b32.xlu1 %v6447_v1, %s6053_s29 }
 0x31e   :  { %v6471_v8 = vpop.permute.xlu0 %757 }
 0x31f   :  { %921 = vrot.lane.b32.xlu0 %v6443_v63, %s6053_s29 }
 0x320   :  { %v6455_v3 = vpop.permute.xlu1 %743 }
 0x322   :  { %v6481_v10 = vpop.permute.xlu0 %755 }
 0x323   :  { %919 = vrot.lane.b32.xlu0 %v6427_v59, %s6053_s29 }
 0x324   :  { %v6461_v5 = vpop.permute.xlu1 %745 }
 0x325   :  { %1084 = vrot.lane.b32.xlu1 %v6461_v5, %s6053_s29 }
 0x326   :  { %v6493_v21 = vpop.permute.xlu0 %753 }
 0x327   :  { %1239 = vrot.lane.b32.xlu0 %v6441_v62, %s6053_s29 }
 0x328   :  { %v6467_v6 = vpop.permute.xlu1 %741 }
 0x329   :  { %1082 = vrot.lane.b32.xlu1 %v6455_v3, %s6053_s29 }
 0x32a   :  { %v6503_v26 = vpop.permute.xlu0 %751 }
 0x32b   :  { %1237 = vrot.lane.b32.xlu0 %v6459_v4, %s6053_s29 }
 0x32c   :  { %v6475_v9 = vpop.permute.xlu1 %739 }
 0x32d   :  { %1080 = vrot.lane.b32.xlu1 %v6467_v6, %s6053_s29 }
 0x32e   :  { %v6514_v22 = vpop.permute.xlu0 %749 }
 0x32f   :  { %1235 = vrot.lane.b32.xlu0 %v6451_v2, %s6053_s29 }
 0x330   :  { %v6483_v19 = vpop.permute.xlu1 %737 }
 0x331   :  { %1078 = vrot.lane.b32.xlu1 %v6475_v9, %s6053_s29 }
 0x333   :  { %1233 = vrot.lane.b32.xlu0 %v6471_v8, %s6053_s29 }
 0x334   :  { %v6489_v20 = vpop.permute.xlu1 %735 }
 0x335   :  { %1076 = vrot.lane.b32.xlu1 %v6483_v19, %s6053_s29 }
 0x337   :  { %1231 = vrot.lane.b32.xlu0 %v6481_v10, %s6053_s29 }
 0x338   :  { %v780_v25 = vpop.permute.xlu1 %779 }
 0x339   :  { %5166 = vmatprep.subr.msk.mxu0 %vm781_vm5, %v780_v25  ;;  %1074 = vrot.lane.b32.xlu1 %v6489_v20, %s6053_s29 }
 0x33a   :  { %5167 = vmatpush3.xpose.msk.msra.mxu0 %vm781_vm5, %v780_v25 }
 0x33b   :  { %1229 = vrot.lane.b32.xlu0 %v6493_v21, %s6053_s29 }
 0x33c   :  { %v6505_v27 = vpop.permute.xlu1 %733 }
 0x33d   :  { %1072 = vrot.lane.b32.xlu1 %v6505_v27, %s6053_s29 }
 0x33f   :  { %1227 = vrot.lane.b32.xlu0 %v6503_v26, %s6053_s29 }
 0x340   :  { %v778_v28 = vpop.permute.xlu1 %777 }
 0x341   :  { %1834 = vrot.lane.b32.xlu1 %v6415_v53, %s6054_s30  ;;  %5168 = vmatprep.subr.msk.mxu0 %vm781_vm5, %v778_v28 }
 0x342   :  { %5169 = vmatpush3.xpose.msk.msra.mxu0 %vm781_vm5, %v778_v28 }
 0x343   :  { %1225 = vrot.lane.b32.xlu0 %v6514_v22, %s6053_s29 }
 0x344   :  { %v776_v29 = vpop.permute.xlu1 %775 }
 0x345   :  { %1675 = vrot.lane.b32.xlu1 %v6351_v50, %s6054_s30  ;;  %5170 = vmatprep.subr.msk.mxu0 %vm781_vm5, %v776_v29 }
 0x346   :  { %5171 = vmatpush3.xpose.msk.msra.mxu0 %vm781_vm5, %v776_v29 }
 0x347   :  { %1681 = vrot.lane.b32.xlu0 %v6325_v41, %s6054_s30 }
 0x348   :  { %v774_v30 = vpop.permute.xlu1 %773 }
 0x349   :  { %1673 = vrot.lane.b32.xlu1 %v6358_v51, %s6054_s30  ;;  %5172 = vmatprep.subr.msk.mxu0 %vm781_vm5, %v774_v30 }
 0x34a   :  { %5173 = vmatpush3.xpose.msk.msra.mxu0 %vm781_vm5, %v774_v30 }
 0x34b   :  { %1679 = vrot.lane.b32.xlu0 %v6328_v43, %s6054_s30 }
 0x34c   :  { %v772_v32 = vpop.permute.xlu1 %771 }
 0x34d   :  { %1671 = vrot.lane.b32.xlu1 %v6333_v45, %s6054_s30  ;;  %5174 = vmatprep.subr.msk.mxu0 %vm781_vm5, %v772_v32 }
 0x34e   :  { %5175 = vmatpush3.xpose.msk.msra.mxu0 %vm781_vm5, %v772_v32 }
 0x34f   :  { %1677 = vrot.lane.b32.xlu0 %v6341_v48, %s6054_s30 }
 0x350   :  { %v770_v33 = vpop.permute.xlu1 %769 }
 0x351   :  { %1669 = vrot.lane.b32.xlu1 %v6365_v52, %s6054_s30  ;;  %5176 = vmatprep.subr.msk.mxu0 %vm781_vm5, %v770_v33 }
 0x352   :  { %5177 = vmatpush3.xpose.msk.msra.mxu0 %vm781_vm5, %v770_v33 }
 0x353   :  { %1830 = vrot.lane.b32.xlu0 %v6425_v56, %s6054_s30 }
 0x354   :  { %v768_v34 = vpop.permute.xlu1 %767 }
 0x355   :  { %1667 = vrot.lane.b32.xlu1 %v6320_v0, %s6054_s30  ;;  %5178 = vmatprep.subr.msk.mxu0 %vm781_vm5, %v768_v34  ;;  %v5159_v0 = vpop.f32.mrf.mxu1 }
 0x356   :  { %5179 = vmatpush3.xpose.msk.msra.mxu0 %vm781_vm5, %v768_v34 }
 0x357   :  { %1828 = vrot.lane.b32.xlu0 %v6433_v60, %s6054_s30  ;;  %v675_v7 = vpop.f32.mrf.mxu1 }
 0x358   :  { %v766_v37 = vpop.permute.xlu1 %765 }
 0x359   :  { %1987 = vrot.lane.b32.xlu1 %v6447_v1, %s6054_s30  ;;  %5180 = vmatprep.subr.msk.mxu0 %vm781_vm5, %v766_v37  ;;  %v5162_v38 = vpop.f32.mrf.mxu1 }
 0x35a   :  { %5181 = vmatpush3.xpose.msk.msra.mxu0 %vm781_vm5, %v766_v37  ;;  %v6606_v47 = vadd.f32 %v5162_v38, %v6317_v31 }
 0x35b   :  { %1826 = vrot.lane.b32.xlu0 %v6437_v61, %s6054_s30  ;;  %v685_v42 = vpop.f32.mrf.mxu1 }
 0x35d   :  { %1983 = vrot.lane.b32.xlu1 %v6455_v3, %s6054_s30  ;;  %5183 = vmatmul.mubr.msk.f32.vlgmr.msra.gmra.mxu0 %vm781_vm5, %v6365_v52 }
 0x35e   :  { %5185 = vmatprep.mubr.msk.f32.mxu0 %vm781_vm5, %v6333_v45 }
 0x35f   :  { %1824 = vrot.lane.b32.xlu0 %v6421_v55, %s6054_s30 }
 0x361   :  { %2136 = vrot.lane.b32.xlu1 %v6451_v2, %s6054_s30  ;;  %5186 = vmatmul.mubr.msk.f32.gmra.mxu0 %vm781_vm5, %v6358_v51 }
 0x362   :  { %5188 = vmatprep.mubr.msk.f32.mxu0 %vm781_vm5, %v6351_v50  ;;  %v6615_v50 = vadd.f32 %v5159_v0, %v6317_v31 }
 0x363   :  { %1822 = vrot.lane.b32.xlu0 %v6443_v63, %s6054_s30 }
 0x365   :  { %2134 = vrot.lane.b32.xlu1 %v6471_v8, %s6054_s30  ;;  %5189 = vmatmul.mubr.msk.f32.gmra.mxu0 %vm781_vm5, %v6341_v48 }
 0x366   :  { %5191 = vmatprep.mubr.msk.f32.mxu0 %vm781_vm5, %v6328_v43  ;;  %v5165_v43 = vpop.f32.mrf.mxu1 }
 0x367   :  { %1820 = vrot.lane.b32.xlu0 %v6427_v59, %s6054_s30  ;;  %v6621_v51 = vadd.f32 %v5165_v43, %v6317_v31  ;;  %v6630_v59 = vadd.f32 %v6317_v31, %v685_v42 }
 0x369   :  { %2132 = vrot.lane.b32.xlu1 %v6481_v10, %s6054_s30  ;;  %5192 = vmatmul.mubr.msk.f32.gmra.mxu0 %vm781_vm5, %v6325_v41  ;;  %v695_v41 = vpop.f32.mrf.mxu1 }
 0x36a   :  { %5238 = vmatprep.mubr.msk.f32.mxu0 %vm781_vm5, %v6505_v27  ;;  %v6598_v44 = vadd.f32 %v6317_v31, %v695_v41 }
 0x36b   :  { %2140 = vrot.lane.b32.xlu0 %v6441_v62, %s6054_s30 }
 0x36d   :  { %2130 = vrot.lane.b32.xlu1 %v6493_v21, %s6054_s30 }
 0x36f   :  { %1981 = vrot.lane.b32.xlu0 %v6467_v6, %s6054_s30 }
 0x371   :  { %2128 = vrot.lane.b32.xlu1 %v6503_v26, %s6054_s30 }
 0x373   :  { %1979 = vrot.lane.b32.xlu0 %v6475_v9, %s6054_s30 }
 0x375   :  { %2126 = vrot.lane.b32.xlu1 %v6514_v22, %s6054_s30 }
 0x377   :  { %1977 = vrot.lane.b32.xlu0 %v6483_v19, %s6054_s30 }
 0x379   :  { %v934_v45 = vpop.permute.xlu0 %933  ;;  %2664 = vrot.lane.b32.xlu1 %v6598_v44, %s6050_s5 }
 0x37a   :  { %5194 = vmatprep.subr.msk.mxu1 %vm781_vm5, %v934_v45 }
 0x37b   :  { %1975 = vrot.lane.b32.xlu0 %v6489_v20, %s6054_s30  ;;  %5195 = vmatpush3.xpose.msk.msra.mxu1 %vm781_vm5, %v934_v45 }
 0x37d   :  { %v932_v48 = vpop.permute.xlu0 %931  ;;  %2662 = vrot.lane.b32.xlu1 %v6606_v47, %s6050_s5 }
 0x37e   :  { %5196 = vmatprep.subr.msk.mxu1 %vm781_vm5, %v932_v48 }
 0x37f   :  { %1973 = vrot.lane.b32.xlu0 %v6505_v27, %s6054_s30  ;;  %5197 = vmatpush3.xpose.msk.msra.mxu1 %vm781_vm5, %v932_v48  ;;  %v6639_v27 = vadd.f32 %v6317_v31, %v675_v7 }
 0x381   :  { %v930_v52 = vpop.permute.xlu0 %929  ;;  %2658 = vrot.lane.b32.xlu1 %v6615_v50, %s6050_s5 }
 0x382   :  { %5198 = vmatprep.subr.msk.mxu1 %vm781_vm5, %v930_v52 }
 0x383   :  { %5199 = vmatpush3.xpose.msk.msra.mxu1 %vm781_vm5, %v930_v52  ;;  %2666 = vrot.lane.b32.xlu0 %v6621_v51, %s6050_s5 }
 0x385   :  { %v928_v25 = vpop.permute.xlu0 %927  ;;  %1832 = vrot.lane.b32.xlu1 %v6419_v54, %s6054_s30 }
 0x386   :  { %5200 = vmatprep.subr.msk.mxu1 %vm781_vm5, %v928_v25 }
 0x387   :  { %5201 = vmatpush3.xpose.msk.msra.mxu1 %vm781_vm5, %v928_v25  ;;  %2660 = vrot.lane.b32.xlu0 %v6630_v59, %s6050_s5 }
 0x389   :  { %v926_v28 = vpop.permute.xlu0 %925  ;;  %1985 = vrot.lane.b32.xlu1 %v6461_v5, %s6054_s30 }
 0x38a   :  { %5202 = vmatprep.subr.msk.mxu1 %vm781_vm5, %v926_v28 }
 0x38b   :  { %5203 = vmatpush3.xpose.msk.msra.mxu1 %vm781_vm5, %v926_v28  ;;  %2656 = vrot.lane.b32.xlu0 %v6639_v27, %s6050_s5 }
 0x38d   :  { %v924_v29 = vpop.permute.xlu0 %923 }
 0x38e   :  { %5204 = vmatprep.subr.msk.mxu1 %vm781_vm5, %v924_v29 }
 0x38f   :  { %v1087_v30 = vpop.permute.xlu1 %1086  ;;  %5205 = vmatpush3.xpose.msk.msra.mxu1 %vm781_vm5, %v924_v29  ;;  %2138 = vrot.lane.b32.xlu0 %v6459_v4, %s6054_s30 }
 0x390   :  { %5222 = vmatprep.subr.msk.mxu0 %vm781_vm5, %v1087_v30 }
 0x391   :  { %v922_v31 = vpop.permute.xlu0 %921  ;;  %5223 = vmatpush3.xpose.msk.msra.mxu0 %vm781_vm5, %v1087_v30 }
 0x392   :  { %5206 = vmatprep.subr.msk.mxu1 %vm781_vm5, %v922_v31 }
 0x393   :  { %5207 = vmatpush3.xpose.msk.msra.mxu1 %vm781_vm5, %v922_v31 }
 0x395   :  { %v920_v32 = vpop.permute.xlu0 %919 }
 0x396   :  { %5208 = vmatprep.subr.msk.mxu1 %vm781_vm5, %v920_v32 }
 0x397   :  { %v1085_v33 = vpop.permute.xlu1 %1084  ;;  %5209 = vmatpush3.xpose.msk.msra.mxu1 %vm781_vm5, %v920_v32 }
 0x398   :  { %5224 = vmatprep.subr.msk.mxu0 %vm781_vm5, %v1085_v33 }
 0x399   :  { %v1240_v34 = vpop.permute.xlu0 %1239  ;;  %5225 = vmatpush3.xpose.msk.msra.mxu0 %vm781_vm5, %v1085_v33 }
 0x39a   :  { %5211 = vmatmul.mubr.msk.f32.vlgmr.msra.gmra.mxu1 %vm781_vm5, %v6443_v63  ;;  %5250 = vmatprep.subr.msk.mxu1 %vm781_vm5, %v1240_v34 }
 0x39b   :  { %v1083_v37 = vpop.permute.xlu1 %1082  ;;  %5213 = vmatprep.mubr.msk.f32.mxu1 %vm781_vm5, %v6421_v55  ;;  %5251 = vmatpush3.xpose.msk.msra.mxu1 %vm781_vm5, %v1240_v34 }
 0x39c   :  { %5226 = vmatprep.subr.msk.mxu0 %vm781_vm5, %v1083_v37 }
 0x39d   :  { %v1238_v0 = vpop.permute.xlu0 %1237  ;;  %5227 = vmatpush3.xpose.msk.msra.mxu0 %vm781_vm5, %v1083_v37 }
 0x39e   :  { %5214 = vmatmul.mubr.msk.f32.gmra.mxu1 %vm781_vm5, %v6437_v61  ;;  %5252 = vmatprep.subr.msk.mxu1 %vm781_vm5, %v1238_v0 }
 0x39f   :  { %v1081_v7 = vpop.permute.xlu1 %1080  ;;  %5216 = vmatprep.mubr.msk.f32.mxu1 %vm781_vm5, %v6433_v60  ;;  %5253 = vmatpush3.xpose.msk.msra.mxu1 %vm781_vm5, %v1238_v0 }
 0x3a0   :  { %5228 = vmatprep.subr.msk.mxu0 %vm781_vm5, %v1081_v7 }
 0x3a1   :  { %v1236_v55 = vpop.permute.xlu0 %1235  ;;  %5229 = vmatpush3.xpose.msk.msra.mxu0 %vm781_vm5, %v1081_v7 }
 0x3a2   :  { %5217 = vmatmul.mubr.msk.f32.gmra.mxu1 %vm781_vm5, %v6425_v56  ;;  %5254 = vmatprep.subr.msk.mxu1 %vm781_vm5, %v1236_v55 }
 0x3a3   :  { %v1079_v63 = vpop.permute.xlu1 %1078  ;;  %5219 = vmatprep.mubr.msk.f32.mxu1 %vm781_vm5, %v6419_v54  ;;  %5255 = vmatpush3.xpose.msk.msra.mxu1 %vm781_vm5, %v1236_v55 }
 0x3a4   :  { %5230 = vmatprep.subr.msk.mxu0 %vm781_vm5, %v1079_v63 }
 0x3a5   :  { %v1234_v60 = vpop.permute.xlu0 %1233  ;;  %5231 = vmatpush3.xpose.msk.msra.mxu0 %vm781_vm5, %v1079_v63 }
 0x3a6   :  { %5220 = vmatmul.mubr.msk.f32.gmra.mxu1 %vm781_vm5, %v6415_v53  ;;  %5256 = vmatprep.subr.msk.mxu1 %vm781_vm5, %v1234_v60 }
 0x3a7   :  { %v1077_v61 = vpop.permute.xlu1 %1076  ;;  %5257 = vmatpush3.xpose.msk.msra.mxu1 %vm781_vm5, %v1234_v60  ;;  %5266 = vmatprep.mubr.msk.f32.mxu1 %vm781_vm5, %v6514_v22 }
 0x3a8   :  { %5232 = vmatprep.subr.msk.mxu0 %vm781_vm5, %v1077_v61 }
 0x3a9   :  { %v1232_v54 = vpop.permute.xlu0 %1231  ;;  %5233 = vmatpush3.xpose.msk.msra.mxu0 %vm781_vm5, %v1077_v61 }
 0x3aa   :  { %5258 = vmatprep.subr.msk.mxu1 %vm781_vm5, %v1232_v54 }
 0x3ab   :  { %v1075_v56 = vpop.permute.xlu1 %1074  ;;  %5259 = vmatpush3.xpose.msk.msra.mxu1 %vm781_vm5, %v1232_v54 }
 0x3ac   :  { %5234 = vmatprep.subr.msk.mxu0 %vm781_vm5, %v1075_v56 }
 0x3ad   :  { %v1230_v53 = vpop.permute.xlu0 %1229  ;;  %5235 = vmatpush3.xpose.msk.msra.mxu0 %vm781_vm5, %v1075_v56 }
 0x3ae   :  { %5260 = vmatprep.subr.msk.mxu1 %vm781_vm5, %v1230_v53 }
 0x3af   :  { %v1073_v38 = vpop.permute.xlu1 %1072  ;;  %5261 = vmatpush3.xpose.msk.msra.mxu1 %vm781_vm5, %v1230_v53 }
 0x3b0   :  { %5236 = vmatprep.subr.msk.mxu0 %vm781_vm5, %v1073_v38 }
 0x3b1   :  { %v1228_v22 = vpop.permute.xlu0 %1227  ;;  %5237 = vmatpush3.xpose.msk.msra.mxu0 %vm781_vm5, %v1073_v38 }
 0x3b2   :  { %5262 = vmatprep.subr.msk.mxu1 %vm781_vm5, %v1228_v22 }
 0x3b3   :  { %v1835_v42 = vpop.permute.xlu1 %1834  ;;  %5263 = vmatpush3.xpose.msk.msra.mxu1 %vm781_vm5, %v1228_v22 }
 0x3b4   :  { %5239 = vmatmul.mubr.msk.f32.vlgmr.msra.gmra.mxu0 %vm781_vm5, %v6489_v20 }
 0x3b5   :  { %v1226_v43 = vpop.permute.xlu0 %1225  ;;  %5241 = vmatprep.mubr.msk.f32.mxu0 %vm781_vm5, %v6483_v19 }
 0x3b6   :  { %5264 = vmatprep.subr.msk.mxu1 %vm781_vm5, %v1226_v43 }
 0x3b7   :  { %v1676_v41 = vpop.permute.xlu1 %1675  ;;  %5265 = vmatpush3.xpose.msk.msra.mxu1 %vm781_vm5, %v1226_v43 }
 0x3b8   :  { %5242 = vmatmul.mubr.msk.f32.gmra.mxu0 %vm781_vm5, %v6475_v9  ;;  %5306 = vmatprep.subr.mxu1 %v1835_v42 }
 0x3b9   :  { %v1682_v45 = vpop.permute.xlu0 %1681  ;;  %5244 = vmatprep.mubr.msk.f32.mxu0 %vm781_vm5, %v6467_v6 }
 0x3ba   :  { %5267 = vmatmul.mubr.msk.f32.vlgmr.msra.gmra.mxu1 %vm781_vm5, %v6503_v26  ;;  %5278 = vmatprep.subr.mxu0 %v1682_v45 }
 0x3bb   :  { %v1674_v20 = vpop.permute.xlu1 %1673  ;;  %5269 = vmatprep.mubr.msk.f32.mxu1 %vm781_vm5, %v6493_v21  ;;  %5279 = vmatpush3.msra.mxu0 %v1682_v45 }
 0x3bc   :  { %5307 = vmatpush3.msra.mxu1 %v1835_v42  ;;  %5245 = vmatmul.mubr.msk.f32.gmra.mxu0 %vm781_vm5, %v6455_v3 }
 0x3bd   :  { %v1680_v19 = vpop.permute.xlu0 %1679  ;;  %5247 = vmatprep.mubr.msk.f32.mxu0 %vm781_vm5, %v6461_v5 }
 0x3be   :  { %5270 = vmatmul.mubr.msk.f32.gmra.mxu1 %vm781_vm5, %v6481_v10  ;;  %5280 = vmatprep.subr.mxu0 %v1680_v19 }
 0x3bf   :  { %v1672_v6 = vpop.permute.xlu1 %1671  ;;  %5272 = vmatprep.mubr.msk.f32.mxu1 %vm781_vm5, %v6471_v8  ;;  %5281 = vmatpush3.msra.mxu0 %v1680_v19 }
 0x3c0   :  { %5248 = vmatmul.mubr.msk.f32.gmra.mxu0 %vm781_vm5, %v6447_v1 }
 0x3c1   :  { %v1678_v9 = vpop.permute.xlu0 %1677 }
 0x3c2   :  { %5273 = vmatmul.mubr.msk.f32.gmra.mxu1 %vm781_vm5, %v6451_v2  ;;  %5282 = vmatprep.subr.mxu0 %v1678_v9 }
 0x3c3   :  { %v1670_v3 = vpop.permute.xlu1 %1669  ;;  %5275 = vmatprep.mubr.msk.f32.mxu1 %vm781_vm5, %v6459_v4  ;;  %5283 = vmatpush3.msra.mxu0 %v1678_v9 }
 0x3c4   :  { %5284 = vmatprep.subr.mxu0 %v1676_v41 }
 0x3c5   :  { %5285 = vmatpush3.msra.mxu0 %v1676_v41  ;;  %v1831_v21 = vpop.permute.xlu0 %1830 }
 0x3c6   :  { %5276 = vmatmul.mubr.msk.f32.gmra.mxu1 %vm781_vm5, %v6441_v62  ;;  %5286 = vmatprep.subr.mxu0 %v1674_v20 }
 0x3c7   :  { %v1668_v5 = vpop.permute.xlu1 %1667  ;;  %5287 = vmatpush3.msra.mxu0 %v1674_v20 }
 0x3c8   :  { %5288 = vmatprep.subr.mxu0 %v1672_v6 }
 0x3c9   :  { %5289 = vmatpush3.msra.mxu0 %v1672_v6  ;;  %v1829_v48 = vpop.permute.xlu0 %1828 }
 0x3ca   :  { %5290 = vmatprep.subr.mxu0 %v1670_v3 }
 0x3cb   :  { %v6731_v1 = vpop.permute.xlu1 %1987  ;;  %5291 = vmatpush3.msra.mxu0 %v1670_v3 }
 0x3cc   :  { %5292 = vmatprep.subr.mxu0 %v1668_v5 }
 0x3cd   :  { %5293 = vmatpush3.msra.mxu0 %v1668_v5  ;;  %v1827_v28 = vpop.permute.xlu0 %1826 }
 0x3ce   :  { %5334 = vmatprep.subr.mxu0 %v6731_v1 }
 0x3cf   :  { %v6734_v2 = vpop.permute.xlu1 %1983 }
 0x3d1   :  { %v1825_v30 = vpop.permute.xlu0 %1824 }
 0x3d3   :  { %v6736_v4 = vpop.permute.xlu1 %2136 }
 0x3d5   :  { %v1823_v33 = vpop.permute.xlu0 %1822 }
 0x3d7   :  { %v6738_v8 = vpop.permute.xlu1 %2134 }
 0x3d9   :  { %v1821_v34 = vpop.permute.xlu0 %1820 }
 0x3db   :  { %v6740_v62 = vpop.permute.xlu1 %2132 }
 0x3dd   :  { %v6754_v37 = vpop.permute.xlu0 %2140 }
 0x3df   :  { %v6742_v10 = vpop.permute.xlu1 %2130 }
 0x3e0   :  { %8225 = vst [vmem:[#allocation31_spill] sm:$0xff] %v6742_v10 }
 0x3e3   :  { %v6744_v26 = vpop.permute.xlu1 %2128 }
 0x3e4   :  { %8226 = vst [vmem:[#allocation32_spill] sm:$0xff] %v6744_v26 }
 0x3e7   :  { %v6746_v52 = vpop.permute.xlu1 %2126 }
 0x3e8   :  { %8227 = vst [vmem:[#allocation33_spill] sm:$0xff] %v6746_v52 }
 0x3eb   :  { %v6748_v25 = vpop.permute.xlu1 %2664 }
 0x3ef   :  { %v6750_v29 = vpop.permute.xlu1 %2662 }
 0x3f3   :  { %v6752_v31 = vpop.permute.xlu1 %2658 }
 0x3f4   :  { %8228 = vst [vmem:[#allocation34_spill] sm:$0xff] %v6752_v31 }
 0x3f7   :  { %v1833_v32 = vpop.permute.xlu1 %1832 }
 0x3f8   :  { %5308 = vmatprep.subr.mxu1 %v1833_v32 }
 0x3f9   :  { %5309 = vmatpush3.msra.mxu1 %v1833_v32 }
 0x3fa   :  { %5310 = vmatprep.subr.mxu1 %v1831_v21 }
 0x3fb   :  { %5311 = vmatpush3.msra.mxu1 %v1831_v21  ;;  %v6799_v21 = vpop.permute.xlu0 %1981  ;;  %v1986_v31 = vpop.permute.xlu1 %1985 }
 0x3fc   :  { %5312 = vmatprep.subr.mxu1 %v1829_v48 }
 0x3fd   :  { %5313 = vmatpush3.msra.mxu1 %v1829_v48 }
 0x3fe   :  { %5314 = vmatprep.subr.mxu1 %v1827_v28 }
 0x3ff   :  { %5315 = vmatpush3.msra.mxu1 %v1827_v28 }
 0x400   :  { %5316 = vmatprep.subr.mxu1 %v1825_v30 }
 0x401   :  { %5317 = vmatpush3.msra.mxu1 %v1825_v30 }
 0x402   :  { %5318 = vmatprep.subr.mxu1 %v1823_v33 }
 0x403   :  { %5319 = vmatpush3.msra.mxu1 %v1823_v33 }
 0x404   :  { %5320 = vmatprep.subr.mxu1 %v1821_v34 }
 0x405   :  { %5321 = vmatpush3.msra.mxu1 %v1821_v34 }
 0x406   :  { %5362 = vmatprep.subr.mxu1 %v6754_v37 }
 0x41d   :  { %v6757_v0 = vpop.f32.mrf.mxu0 }
 0x41e   :  { %v1382_v7 = vsel %vm1378_vm6, %v6757_v0, -inf }
 0x41f   :  { %1383 = vmax.xlane.f32.xlu0 %v1382_v7  ;;  %v6761_v55 = vpop.f32.mrf.mxu0  ;;  %v6813_v7 = vpop.permute.xlu0 %1979 }
 0x420   :  { %v1379_v63 = vsel %vm1378_vm6, %v6761_v55, -inf }
 0x421   :  { %1380 = vmax.xlane.f32.xlu1 %v1379_v63  ;;  %v6765_v60 = vpop.f32.mrf.mxu0 }
 0x422   :  { %v1388_v54 = vsel %vm1378_vm6, %v6765_v60, -inf }
 0x423   :  { %v6767_v61 = vpop.f32.mrf.mxu0 }
 0x424   :  { %v1385_v56 = vsel %vm1378_vm6, %v6767_v61, -inf }
 0x425   :  { %1389 = vmax.xlane.f32.xlu1 %v1388_v54  ;;  %1386 = vmax.xlane.f32.xlu0 %v1385_v56  ;;  %v6773_v53 = vpop.f32.mrf.mxu0 }
 0x426   :  { %v1394_v22 = vsel %vm1378_vm6, %v6773_v53, -inf }
 0x427   :  { %v6775_v38 = vpop.f32.mrf.mxu0 }
 0x428   :  { %v1391_v42 = vsel %vm1378_vm6, %v6775_v38, -inf }
 0x429   :  { %1395 = vmax.xlane.f32.xlu1 %v1394_v22  ;;  %1392 = vmax.xlane.f32.xlu0 %v1391_v42  ;;  %v6781_v43 = vpop.f32.mrf.mxu0 }
 0x42a   :  { %v1400_v45 = vsel %vm1378_vm6, %v6781_v43, -inf }
 0x42b   :  { %v6783_v41 = vpop.f32.mrf.mxu0 }
 0x42c   :  { %v1397_v20 = vsel %vm1378_vm6, %v6783_v41, -inf }
 0x42d   :  { %1401 = vmax.xlane.f32.xlu1 %v1400_v45  ;;  %1398 = vmax.xlane.f32.xlu0 %v1397_v20  ;;  %v6827_v20 = vpop.permute.xlu0 %1977 }
 0x45a   :  { %v6789_v19 = vpop.f32.mrf.mxu1 }
 0x45b   :  { %v1406_v6 = vsel %vm1378_vm6, %v6789_v19, -inf }
 0x45c   :  { %1407 = vmax.xlane.f32.xlu1 %v1406_v6  ;;  %v6793_v9 = vpop.f32.mrf.mxu1 }
 0x45d   :  { %v1403_v63 = vsel %vm1378_vm6, %v6793_v9, -inf }
 0x45e   :  { %v6795_v3 = vpop.f32.mrf.mxu1 }
 0x45f   :  { %v1412_v56 = vsel %vm1378_vm6, %v6795_v3, -inf }
 0x460   :  { %v6797_v5 = vpop.f32.mrf.mxu1 }
 0x461   :  { %v1409_v42 = vsel %vm1378_vm6, %v6797_v5, -inf }
 0x462   :  { %v6801_v48 = vpop.f32.mrf.mxu1 }
 0x463   :  { %v1418_v35 = vsel %vm1378_vm6, %v6801_v48, -inf }
 0x464   :  { %v6811_v34 = vpop.f32.mrf.mxu1 }
 0x465   :  { %v1415_v11 = vsel %vm1378_vm6, %v6811_v34, -inf }
 0x466   :  { %v6821_v22 = vpop.f32.mrf.mxu1 }
 0x467   :  { %v1424_v17 = vsel %vm1378_vm6, %v6821_v22, -inf }
 0x474   :  { %v6803_v28 = vpop.f32.mrf.mxu0 }
 0x475   :  { %v1430_v30 = vsel %vm1378_vm6, %v6803_v28, -inf }
 0x476   :  { %1431 = vmax.xlane.f32.xlu0 %v1430_v30  ;;  %v6807_v32 = vpop.f32.mrf.mxu0  ;;  %v6831_v30 = vpop.f32.mrf.mxu1 }
 0x477   :  { %v1427_v33 = vsel %vm1378_vm6, %v6807_v32, -inf }
 0x478   :  { %1428 = vmax.xlane.f32.xlu1 %v1427_v33  ;;  %v6817_v54 = vpop.f32.mrf.mxu0 }
 0x479   :  { %v1436_v6 = vsel %vm1378_vm6, %v6817_v54, -inf }
 0x47a   :  { %1404 = vmax.xlane.f32.xlu0 %v1403_v63  ;;  %v6825_v45 = vpop.f32.mrf.mxu0  ;;  %v6835_v63 = vpop.f32.mrf.mxu1 }
 0x47b   :  { %v1433_v33 = vsel %vm1378_vm6, %v6825_v45, -inf }
 0x47c   :  { %1413 = vmax.xlane.f32.xlu1 %v1412_v56  ;;  %v6837_v56 = vpop.f32.mrf.mxu0  ;;  %v6845_v57 = vpop.f32.mrf.mxu1 }
 0x47d   :  { %8229 = vst [vmem:[#allocation35_spill] sm:$0xff] %v6845_v57  ;;  %v1442_v39 = vsel %vm1378_vm6, %v6837_v56, -inf }
 0x47e   :  { %1410 = vmax.xlane.f32.xlu0 %v1409_v42  ;;  %v6841_v42 = vpop.permute.xlu0 %1975  ;;  %v6853_v23 = vpop.f32.mrf.mxu1 }
 0x47f   :  { %8230 = vst [vmem:[#allocation36_spill] sm:$0xff] %v6853_v23 }
 0x480   :  { %1437 = vmax.xlane.f32.xlu1 %v1436_v6  ;;  %v6847_v6 = vpop.f32.mrf.mxu0  ;;  %v6863_v13 = vpop.f32.mrf.mxu1 }
 0x481   :  { %v1457_v40 = vsel %vm1378_vm6, %v6863_v13, -inf }
 0x482   :  { %1434 = vmax.xlane.f32.xlu0 %v1433_v33  ;;  %v1439_v33 = vsel %vm1378_vm6, %v6847_v6, -inf  ;;  %v6859_v15 = vpop.permute.xlu0 %1973  ;;  %v6873_v58 = vpop.f32.mrf.mxu1 }
 0x483   :  { %8231 = vst [vmem:[#allocation37_spill] sm:$0xff] %v6873_v58  ;;  %v1466_v16 = vsel %vm1378_vm6, %v6873_v58, -inf }
 0x484   :  { %1419 = vmax.xlane.f32.xlu1 %v1418_v35  ;;  %v6855_v35 = vpop.f32.mrf.mxu0 }
 0x485   :  { %v1448_v36 = vsel %vm1378_vm6, %v6855_v35, -inf }
 0x486   :  { %1416 = vmax.xlane.f32.xlu0 %v1415_v11  ;;  %v1421_v11 = vsel %vm1378_vm6, %v6831_v30, -inf  ;;  %v6871_v12 = vpop.permute.xlu0 %2666 }
 0x488   :  { %1443 = vmax.xlane.f32.xlu1 %v1442_v39  ;;  %v6865_v39 = vpop.f32.mrf.mxu0 }
 0x48a   :  { %1440 = vmax.xlane.f32.xlu0 %v1439_v33  ;;  %v1445_v33 = vsel %vm1378_vm6, %v6865_v39, -inf  ;;  %v6883_v24 = vpop.permute.xlu0 %2660 }
 0x48c   :  { %1425 = vmax.xlane.f32.xlu1 %v1424_v17  ;;  %v1454_v17 = vsel %vm1378_vm6, %v6835_v63, -inf }
 0x48e   :  { %1422 = vmax.xlane.f32.xlu0 %v1421_v11  ;;  %v6879_v11 = vpop.f32.mrf.mxu1 }
 0x48f   :  { %8232 = vst [vmem:[#allocation38_spill] sm:$0xff] %v6879_v11  ;;  %v1463_v18 = vsel %vm1378_vm6, %v6879_v11, -inf }
 0x490   :  { %1449 = vmax.xlane.f32.xlu1 %v1448_v36  ;;  %v1451_v36 = vsel %vm1378_vm6, %v6845_v57, -inf }
 0x492   :  { %1446 = vmax.xlane.f32.xlu0 %v1445_v33  ;;  %v1460_v33 = vsel %vm1378_vm6, %v6853_v23, -inf }
 0x494   :  { %1455 = vmax.xlane.f32.xlu1 %v1454_v17  ;;  %v6889_v17 = vpop.permute.xlu0 %2656 }
 0x495   :  { %8233 = vst [vmem:[#allocation39_spill] sm:$0xff] %v6889_v17 }
 0x496   :  { %1458 = vmax.xlane.f32.xlu0 %v1457_v40  ;;  %v6893_v40 = vpop.f32.mrf.mxu1 }
 0x497   :  { %8234 = vst [vmem:[#allocation40_spill] sm:$0xff] %v6893_v40  ;;  %v1472_v14 = vsel %vm1378_vm6, %v6893_v40, -inf }
 0x498   :  { %1452 = vmax.xlane.f32.xlu1 %v1451_v36  ;;  %v6897_v36 = vpop.permute.xlu0 %2138 }
 0x49a   :  { %1464 = vmax.xlane.f32.xlu0 %v1463_v18 }
 0x49c   :  { %1461 = vmax.xlane.f32.xlu1 %v1460_v33 }
 0x4a0   :  { %1467 = vmax.xlane.f32.xlu1 %v1466_v16 }
 0x4a4   :  { %1473 = vmax.xlane.f32.xlu1 %v1472_v14 }
 0x4a8   :  { %v1384_v18 = vpop.xlane.xlu0 %1383 }
 0x4a9   :  { %v1476_v52 = vsub.f32 %v6757_v0, %v1384_v18 }
 0x4aa   :  { %v1381_v23 = vpop.xlane.xlu1 %1380 }
 0x4ab   :  { %v1475_v33 = vsub.f32 %v6761_v55, %v1381_v23  ;;  %v1509_v17 = vmul.f32 1.442695, %v1476_v52 }
 0x4ad   :  { %v1507_v11 = vmul.f32 1.442695, %v1475_v33 }
 0x4ae   :  { %v1390_v26 = vpop.xlane.xlu1 %1389  ;;  %v1387_v58 = vpop.xlane.xlu0 %1386 }
 0x4af   :  { %5673 = vpow2.f32 %v1507_v11  ;;  %v1478_v16 = vsub.f32 %v6765_v60, %v1390_v26  ;;  %v1477_v57 = vsub.f32 %v6767_v61, %v1387_v58 }
 0x4b0   :  { %5675 = vpow2.f32 %v1509_v17  ;;  %2652 = vrot.lane.b32.xlu0 %v6344_v49, %s6050_s5 }
 0x4b1   :  { %v1513_v14 = vmul.f32 1.442695, %v1478_v16  ;;  %v1511_v40 = vmul.f32 1.442695, %v1477_v57 }
 0x4b2   :  { %v1396_v10 = vpop.xlane.xlu1 %1395  ;;  %v1393_v0 = vpop.xlane.xlu0 %1392 }
 0x4b3   :  { %5677 = vpow2.f32 %v1513_v14  ;;  %v1480_v23 = vsub.f32 %v6773_v53, %v1396_v10  ;;  %v1479_v52 = vsub.f32 %v6775_v38, %v1393_v0  ;;  %v707_v14 = vld [vmem:[#allocation8 + $0x18] sm:$0xff] }
 0x4b4   :  { %5679 = vpow2.f32 %v1511_v40  ;;  %2698 = vrot.lane.b32.xlu0 %v6621_v51, %s6051_s27 }
 0x4b5   :  { %v1517_v26 = vmul.f32 1.442695, %v1480_v23  ;;  %v1515_v55 = vmul.f32 1.442695, %v1479_v52  ;;  %2654 = vrot.lane.b32.xlu1 %v6336_v46, %s6050_s5 }
 0x4b6   :  { %v1402_v58 = vpop.xlane.xlu1 %1401  ;;  %v1399_v60 = vpop.xlane.xlu0 %1398 }
 0x4b7   :  { %5681 = vpow2.f32 %v1517_v26  ;;  %v1482_v57 = vsub.f32 %v6781_v43, %v1402_v58  ;;  %v1481_v61 = vsub.f32 %v6783_v41, %v1399_v60 }
 0x4b8   :  { %5683 = vpow2.f32 %v1515_v55  ;;  %2696 = vrot.lane.b32.xlu0 %v6598_v44, %s6051_s27 }
 0x4b9   :  { %v1521_v10 = vmul.f32 1.442695, %v1482_v57  ;;  %v1519_v53 = vmul.f32 1.442695, %v1481_v61 }
 0x4bb   :  { %5685 = vpow2.f32 %v1521_v10 }
 0x4bc   :  { %v5674_v38 = vpop.eup %5673  ;;  %5687 = vpow2.f32 %v1519_v53  ;;  %2694 = vrot.lane.b32.xlu0 %v6606_v47, %s6051_s27 }
 0x4bd   :  { %v5676_v11 = vpop.eup %5675  ;;  %5294 = vmatprep.mubr.msk.f32.mxu0 %vm1378_vm6, %v5674_v38 }
 0x4be   :  { %5295 = vmatmul.mubr.msk.f32.vlgmr.msra.gmra.mxu0 %vm1378_vm6, %v5676_v11 }
 0x4bf   :  { %5335 = vmatpush3.msra.mxu0 %v6731_v1 }
 0x4c0   :  { %v6920_v43 = vpop.eup %5677  ;;  %5336 = vmatprep.subr.mxu0 %v1986_v31  ;;  %2692 = vrot.lane.b32.xlu0 %v6630_v59, %s6051_s27 }
 0x4c1   :  { %v6924_v41 = vpop.eup %5679  ;;  %5337 = vmatpush3.msra.mxu0 %v1986_v31 }
 0x4c2   :  { %5297 = vmatprep.mubr.msk.f32.mxu0 %vm1378_vm6, %v6924_v41  ;;  %5338 = vmatprep.subr.mxu0 %v6734_v2 }
 0x4c3   :  { %5298 = vmatmul.mubr.msk.f32.gmra.mxu0 %vm1378_vm6, %v6920_v43 }
 0x4c4   :  { %v6931_v17 = vpop.eup %5681  ;;  %5339 = vmatpush3.msra.mxu0 %v6734_v2  ;;  %2674 = vrot.lane.b32.xlu0 %v6615_v50, %s6052_s28 }
 0x4c5   :  { %v6936_v1 = vpop.eup %5683  ;;  %5340 = vmatprep.subr.mxu0 %v6799_v21 }
 0x4c6   :  { %5341 = vmatpush3.msra.mxu0 %v6799_v21  ;;  %5300 = vmatprep.mubr.msk.f32.mxu0 %vm1378_vm6, %v6936_v1  ;;  %v1574_v21 = vsel %vm1378_vm6, %v5676_v11, 0.0 }
 0x4c7   :  { %5342 = vmatprep.subr.mxu0 %v6813_v7  ;;  %5301 = vmatmul.mubr.msk.f32.gmra.mxu0 %vm1378_vm6, %v6931_v17 }
 0x4c8   :  { %v6945_v31 = vpop.eup %5685  ;;  %5343 = vmatpush3.msra.mxu0 %v6813_v7  ;;  %2672 = vrot.lane.b32.xlu0 %v6639_v27, %s6052_s28  ;;  %v1571_v7 = vsel %vm1378_vm6, %v5674_v38, 0.0 }
 0x4c9   :  { %v6950_v2 = vpop.eup %5687  ;;  %5344 = vmatprep.subr.mxu0 %v6827_v20 }
 0x4ca   :  { %5345 = vmatpush3.msra.mxu0 %v6827_v20  ;;  %5303 = vmatprep.mubr.msk.f32.mxu0 %vm1378_vm6, %v6950_v2  ;;  %v6964_v20 = vpop.f32.mrf.mxu1 }
 0x4cb   :  { %5346 = vmatprep.subr.mxu0 %v6841_v42  ;;  %5304 = vmatmul.mubr.msk.f32.gmra.mxu0 %vm1378_vm6, %v6945_v31  ;;  %v1469_v40 = vsel %vm1378_vm6, %v6964_v20, -inf }
 0x4cc   :  { %5347 = vmatpush3.msra.mxu0 %v6841_v42 }
 0x4cd   :  { %5348 = vmatprep.subr.mxu0 %v6859_v15 }
 0x4ce   :  { %5349 = vmatpush3.msra.mxu0 %v6859_v15 }
 0x4cf   :  { %5390 = vmatprep.subr.mxu0 %v707_v14 }
 0x4d9   :  { %1575 = vadd.xlane.f32.xlu1 %v1574_v21 }
 0x4e5   :  { %v1408_v15 = vpop.xlane.xlu1 %1407 }
 0x4e6   :  { %v1484_v33 = vsub.f32 %v6789_v19, %v1408_v15 }
 0x4e7   :  { %1572 = vadd.xlane.f32.xlu0 %v1571_v7 }
 0x4e8   :  { %v1525_v58 = vmul.f32 1.442695, %v1484_v33 }
 0x4ea   :  { %2682 = vrot.lane.b32.xlu1 %v6621_v51, %s6052_s28 }
 0x4eb   :  { %1470 = vmax.xlane.f32.xlu0 %v1469_v40 }
 0x4ee   :  { %2680 = vrot.lane.b32.xlu1 %v6598_v44, %s6052_s28 }
 0x4f2   :  { %2678 = vrot.lane.b32.xlu1 %v6606_v47, %s6052_s28 }
 0x4f6   :  { %2676 = vrot.lane.b32.xlu1 %v6630_v59, %s6052_s28 }
 0x4fa   :  { %2690 = vrot.lane.b32.xlu1 %v6615_v50, %s6051_s27 }
 0x4fe   :  { %2865 = vrot.lane.b32.xlu1 %v6748_v25, %s6053_s29 }
 0x4ff   :  { %v1432_v42 = vpop.xlane.xlu0 %1431 }
 0x500   :  { %v1492_v18 = vsub.f32 %v6803_v28, %v1432_v42 }
 0x501   :  { %v1429_v16 = vpop.xlane.xlu1 %1428  ;;  %2688 = vrot.lane.b32.xlu0 %v6639_v27, %s6051_s27 }
 0x502   :  { %v1491_v0 = vsub.f32 %v6807_v32, %v1429_v16  ;;  %2863 = vrot.lane.b32.xlu1 %v6750_v29, %s6053_s29  ;;  %v1541_v23 = vmul.f32 1.442695, %v1492_v18 }
 0x503   :  { %v1405_v52 = vpop.xlane.xlu0 %1404 }
 0x504   :  { %v1539_v26 = vmul.f32 1.442695, %v1491_v0  ;;  %v1483_v55 = vsub.f32 %v6793_v9, %v1405_v52 }
 0x505   :  { %v1414_v28 = vpop.xlane.xlu1 %1413  ;;  %2670 = vrot.lane.b32.xlu0 %v6336_v46, %s6052_s28 }
 0x506   :  { %5689 = vpow2.f32 %v1539_v26  ;;  %v1523_v19 = vmul.f32 1.442695, %v1483_v55  ;;  %v1486_v60 = vsub.f32 %v6795_v3, %v1414_v28  ;;  %2861 = vrot.lane.b32.xlu1 %v6883_v24, %s6053_s29 }
 0x507   :  { %5691 = vpow2.f32 %v1541_v23  ;;  %v1411_v32 = vpop.xlane.xlu0 %1410 }
 0x508   :  { %5693 = vpow2.f32 %v1523_v19  ;;  %v1485_v57 = vsub.f32 %v6797_v5, %v1411_v32  ;;  %v1529_v61 = vmul.f32 1.442695, %v1486_v60 }
 0x509   :  { %5695 = vpow2.f32 %v1525_v58  ;;  %v1438_v9 = vpop.xlane.xlu1 %1437  ;;  %2686 = vrot.lane.b32.xlu0 %v6336_v46, %s6051_s27 }
 0x50a   :  { %v1527_v10 = vmul.f32 1.442695, %v1485_v57  ;;  %v1494_v53 = vsub.f32 %v6817_v54, %v1438_v9 }
 0x50b   :  { %v1435_v38 = vpop.xlane.xlu0 %1434 }
 0x50c   :  { %5697 = vpow2.f32 %v1527_v10  ;;  %v1493_v3 = vsub.f32 %v6825_v45, %v1435_v38  ;;  %v1545_v11 = vmul.f32 1.442695, %v1494_v53 }
 0x50d   :  { %5699 = vpow2.f32 %v1529_v61  ;;  %v1420_v21 = vpop.xlane.xlu1 %1419  ;;  %2714 = vrot.lane.b32.xlu0 %v6621_v51, %s6053_s29 }
 0x50e   :  { %v1543_v5 = vmul.f32 1.442695, %v1493_v3  ;;  %v1488_v7 = vsub.f32 %v6801_v48, %v1420_v21 }
 0x50f   :  { %v1417_v40 = vpop.xlane.xlu0 %1416 }
 0x510   :  { %5701 = vpow2.f32 %v1543_v5  ;;  %v1487_v15 = vsub.f32 %v6811_v34, %v1417_v40  ;;  %v1533_v42 = vmul.f32 1.442695, %v1488_v7  ;;  %v706_v34 = vld [vmem:[#allocation8 + $0x10] sm:$0xff]  ;;  %v8236_v5 = vld [vmem:[#allocation35_spill] sm:$0xff] }
 0x511   :  { %5703 = vpow2.f32 %v1545_v11  ;;  %v1444_v54 = vpop.xlane.xlu1 %1443  ;;  %2867 = vrot.lane.b32.xlu0 %v6871_v12, %s6053_s29 }
 0x512   :  { %v1531_v45 = vmul.f32 1.442695, %v1487_v15  ;;  %v1496_v18 = vsub.f32 %v6837_v56, %v1444_v54  ;;  %v8238_v54 = vld [vmem:[#allocation38_spill] sm:$0xff] }
 0x513   :  { %v7005_v33 = vpop.eup %5689  ;;  %v1441_v16 = vpop.xlane.xlu0 %1440 }
 0x514   :  { %v7007_v0 = vpop.eup %5691  ;;  %5705 = vpow2.f32 %v1531_v45  ;;  %v1495_v48 = vsub.f32 %v6847_v6, %v1441_v16  ;;  %5350 = vmatprep.mubr.msk.f32.mxu0 %vm1378_vm6, %v7005_v33  ;;  %v1549_v52 = vmul.f32 1.442695, %v1496_v18  ;;  %v8239_v16 = vld [vmem:[#allocation33_spill] sm:$0xff] }
 0x515   :  { %v7012_v23 = vpop.eup %5693  ;;  %5707 = vpow2.f32 %v1533_v42  ;;  %5351 = vmatmul.mubr.msk.f32.vlgmr.msra.gmra.mxu0 %vm1378_vm6, %v7007_v0  ;;  %v1426_v56 = vpop.xlane.xlu1 %1425  ;;  %2668 = vrot.lane.b32.xlu0 %v6344_v49, %s6052_s28 }
 0x516   :  { %v7018_v26 = vpop.eup %5695  ;;  %v1547_v55 = vmul.f32 1.442695, %v1495_v48  ;;  %v1490_v6 = vsub.f32 %v6821_v22, %v1426_v56  ;;  %5322 = vmatprep.mubr.msk.f32.mxu1 %vm1378_vm6, %v7012_v23  ;;  %5391 = vmatpush3.msra.mxu0 %v707_v14  ;;  %v705_v14 = vld [vmem:[#allocation8 + $0x8] sm:$0xff] }
 0x517   :  { %5323 = vmatmul.mubr.msk.f32.vlgmr.msra.gmra.mxu1 %vm1378_vm6, %v7018_v26  ;;  %v1423_v58 = vpop.xlane.xlu0 %1422  ;;  %5392 = vmatprep.subr.mxu0 %v706_v34 }
 0x518   :  { %5709 = vpow2.f32 %v1547_v55  ;;  %5363 = vmatpush3.msra.mxu1 %v6754_v37  ;;  %v1489_v28 = vsub.f32 %v6831_v30, %v1423_v58  ;;  %5393 = vmatpush3.msra.mxu0 %v706_v34  ;;  %v1537_v60 = vmul.f32 1.442695, %v1490_v6 }
 0x519   :  { %v7027_v19 = vpop.eup %5697  ;;  %5711 = vpow2.f32 %v1549_v52  ;;  %5364 = vmatprep.subr.mxu1 %v6897_v36  ;;  %v1450_v22 = vpop.xlane.xlu1 %1449  ;;  %2684 = vrot.lane.b32.xlu0 %v6344_v49, %s6051_s27  ;;  %v8240_v52 = vld [vmem:[#allocation36_spill] sm:$0xff] }
 0x51a   :  { %v7032_v32 = vpop.eup %5699  ;;  %v1535_v57 = vmul.f32 1.442695, %v1489_v28  ;;  %5365 = vmatpush3.msra.mxu1 %v6897_v36  ;;  %v1498_v37 = vsub.f32 %v6855_v35, %v1450_v22  ;;  %5325 = vmatprep.mubr.msk.f32.mxu1 %vm1378_vm6, %v7027_v19 }
 0x51b   :  { %5366 = vmatprep.subr.mxu1 %v6736_v4  ;;  %5326 = vmatmul.mubr.msk.f32.gmra.mxu1 %vm1378_vm6, %v7032_v32  ;;  %v1447_v30 = vpop.xlane.xlu0 %1446 }
 0x51c   :  { %5713 = vpow2.f32 %v1535_v57  ;;  %5367 = vmatpush3.msra.mxu1 %v6736_v4  ;;  %v1497_v61 = vsub.f32 %v6865_v39, %v1447_v30  ;;  %5394 = vmatprep.subr.mxu0 %v705_v14  ;;  %v1553_v36 = vmul.f32 1.442695, %v1498_v37 }
 0x51d   :  { %v7043_v9 = vpop.eup %5701  ;;  %5715 = vpow2.f32 %v1537_v60  ;;  %5368 = vmatprep.subr.mxu1 %v6738_v8  ;;  %v1456_v35 = vpop.xlane.xlu1 %1455  ;;  %2712 = vrot.lane.b32.xlu0 %v6598_v44, %s6053_s29  ;;  %v1577_v60 = vsel %vm1378_vm6, %v6924_v41, 0.0  ;;  %v1592_v41 = vsel %vm1378_vm6, %v6945_v31, 0.0 }
 0x51e   :  { %v7048_v10 = vpop.eup %5703  ;;  %v1551_v53 = vmul.f32 1.442695, %v1497_v61  ;;  %5369 = vmatpush3.msra.mxu1 %v6738_v8  ;;  %5353 = vmatprep.mubr.msk.f32.mxu0 %vm1378_vm6, %v7043_v9  ;;  %v1500_v4 = vsub.f32 %v6835_v63, %v1456_v35  ;;  %v8235_v8 = vld [vmem:[#allocation31_spill] sm:$0xff]  ;;  %v1586_v61 = vsel %vm1378_vm6, %v6931_v17, 0.0  ;;  %v1598_v17 = vsel %vm1378_vm6, %v7018_v26, 0.0 }
 0x51f   :  { %5370 = vmatprep.subr.mxu1 %v6740_v62  ;;  %5354 = vmatmul.mubr.msk.f32.gmra.mxu0 %vm1378_vm6, %v7048_v10  ;;  %v1459_v39 = vpop.xlane.xlu0 %1458  ;;  %v704_v63 = vld [vmem:[#allocation8] sm:$0xff]  ;;  %v1628_v26 = vsel %vm1378_vm6, %v7048_v10, 0.0 }
 0x520   :  { %5717 = vpow2.f32 %v1551_v53  ;;  %5371 = vmatpush3.msra.mxu1 %v6740_v62  ;;  %v1501_v38 = vsub.f32 %v6863_v13, %v1459_v39  ;;  %5395 = vmatpush3.msra.mxu0 %v705_v14  ;;  %v1557_v13 = vmul.f32 1.442695, %v1500_v4  ;;  %v8237_v62 = vld [vmem:[#allocation32_spill] sm:$0xff]  ;;  %v8241_v14 = vld [vmem:[#allocation37_spill] sm:$0xff] }
 0x521   :  { %v7059_v3 = vpop.eup %5705  ;;  %5719 = vpow2.f32 %v1553_v36  ;;  %5372 = vmatprep.subr.mxu1 %v8235_v8  ;;  %v1453_v11 = vpop.xlane.xlu1 %1452  ;;  %2710 = vrot.lane.b32.xlu0 %v6606_v47, %s6053_s29 }
 0x522   :  { %v7064_v21 = vpop.eup %5707  ;;  %5373 = vmatpush3.msra.mxu1 %v8235_v8  ;;  %v1499_v7 = vsub.f32 %v8236_v5, %v1453_v11  ;;  %5328 = vmatprep.mubr.msk.f32.mxu1 %vm1378_vm6, %v7059_v3  ;;  %v1559_v15 = vmul.f32 1.442695, %v1501_v38  ;;  %v1604_v38 = vsel %vm1378_vm6, %v7032_v32, 0.0  ;;  %v1580_v32 = vsel %vm1378_vm6, %v6920_v43, 0.0 }
 0x523   :  { %5374 = vmatprep.subr.mxu1 %v8237_v62  ;;  %5329 = vmatmul.mubr.msk.f32.gmra.mxu1 %vm1378_vm6, %v7064_v21  ;;  %v1465_v40 = vpop.xlane.xlu0 %1464  ;;  %v1610_v11 = vsel %vm1378_vm6, %v7064_v21, 0.0  ;;  %v1583_v5 = vsel %vm1378_vm6, %v6936_v1, 0.0  ;;  %v1589_v21 = vsel %vm1378_vm6, %v6950_v2, 0.0  ;;  %v1619_v2 = vsel %vm1378_vm6, %v7005_v33, 0.0 }
 0x524   :  { %v1555_v42 = vmul.f32 1.442695, %v1499_v7  ;;  %5375 = vmatpush3.msra.mxu1 %v8237_v62  ;;  %v1503_v45 = vsub.f32 %v8238_v54, %v1465_v40  ;;  %5396 = vmatprep.subr.mxu0 %v704_v63  ;;  %v1622_v62 = vsel %vm1378_vm6, %v7007_v0, 0.0  ;;  %v1595_v40 = vsel %vm1378_vm6, %v7012_v23, 0.0  ;;  %v8243_v23 = vld [vmem:[#allocation34_spill] sm:$0xff] }
 0x525   :  { %v7075_v18 = vpop.eup %5709  ;;  %5376 = vmatprep.subr.mxu1 %v8239_v16  ;;  %v1462_v48 = vpop.xlane.xlu1 %1461  ;;  %2708 = vrot.lane.b32.xlu0 %v6630_v59, %s6053_s29  ;;  %v1601_v54 = vsel %vm1378_vm6, %v7027_v19, 0.0  ;;  %v1625_v0 = vsel %vm1378_vm6, %v7043_v9, 0.0 }
 0x526   :  { %v5712_v34 = vpop.eup %5711  ;;  %5721 = vpow2.f32 %v1555_v42  ;;  %5377 = vmatpush3.msra.mxu1 %v8239_v16  ;;  %v1502_v56 = vsub.f32 %v8240_v52, %v1462_v48  ;;  %5356 = vmatprep.mubr.msk.f32.mxu0 %vm1378_vm6, %v7075_v18  ;;  %v1563_v55 = vmul.f32 1.442695, %v1503_v45  ;;  %v1607_v16 = vsel %vm1378_vm6, %v7059_v3, 0.0  ;;  %v8244_v3 = vld [vmem:[#allocation40_spill] sm:$0xff] }
 0x527   :  { %5723 = vpow2.f32 %v1557_v13  ;;  %5357 = vmatmul.mubr.msk.f32.gmra.mxu0 %vm1378_vm6, %v5712_v34  ;;  %v7136_v7 = vpop.permute.xlu0 %2652  ;;  %v1631_v48 = vsel %vm1378_vm6, %v7075_v18, 0.0 }
 0x528   :  { %5725 = vpow2.f32 %v1559_v15  ;;  %v1561_v6 = vmul.f32 1.442695, %v1502_v56  ;;  %5397 = vmatpush3.msra.mxu0 %v704_v63  ;;  %v1634_v63 = vsel %vm1378_vm6, %v5712_v34, 0.0 }
 0x529   :  { %v7085_v58 = vpop.eup %5713  ;;  %v1468_v28 = vpop.xlane.xlu1 %1467 }
 0x52a   :  { %v5716_v22 = vpop.eup %5715  ;;  %5727 = vpow2.f32 %v1561_v6  ;;  %v1504_v57 = vsub.f32 %v8241_v14, %v1468_v28  ;;  %5331 = vmatprep.mubr.msk.f32.mxu1 %vm1378_vm6, %v7085_v58  ;;  %1578 = vadd.xlane.f32.xlu1 %v1577_v60  ;;  %v1613_v19 = vsel %vm1378_vm6, %v7085_v58, 0.0 }
 0x52b   :  { %5332 = vmatmul.mubr.msk.f32.gmra.mxu1 %vm1378_vm6, %v5716_v22  ;;  %5729 = vpow2.f32 %v1563_v55  ;;  %v1616_v10 = vsel %vm1378_vm6, %v5716_v22, 0.0  ;;  %v7142_v43 = vpop.permute.xlu0 %2698 }
 0x52c   :  { %v1565_v37 = vmul.f32 1.442695, %v1504_v57  ;;  %8242 = vst [vmem:[#allocation31_spill] sm:$0xff] %v7142_v43 }
 0x52d   :  { %v7093_v30 = vpop.eup %5717  ;;  %v1474_v34 = vpop.xlane.xlu1 %1473 }
 0x52e   :  { %v5720_v36 = vpop.eup %5719  ;;  %5731 = vpow2.f32 %v1565_v37  ;;  %1587 = vadd.xlane.f32.xlu1 %v1586_v61  ;;  %5359 = vmatprep.mubr.msk.f32.mxu0 %vm1378_vm6, %v7093_v30  ;;  %v1637_v52 = vsel %vm1378_vm6, %v7093_v30, 0.0  ;;  %v1506_v55 = vsub.f32 %v8244_v3, %v1474_v34 }
 0x52f   :  { %5360 = vmatmul.mubr.msk.f32.gmra.mxu0 %vm1378_vm6, %v5720_v36  ;;  %v1640_v13 = vsel %vm1378_vm6, %v5720_v36, 0.0  ;;  %v7149_v15 = vpop.permute.xlu0 %2696 }
 0x530   :  { %v1569_v58 = vmul.f32 1.442695, %v1506_v55 }
 0x531   :  { %v7183_v14 = vpop.permute.xlu1 %2654 }
 0x532   :  { %1593 = vadd.xlane.f32.xlu1 %v1592_v41 }
 0x533   :  { %v7102_v35 = vpop.eup %5721  ;;  %v7153_v42 = vpop.permute.xlu0 %2694 }
 0x534   :  { %v5724_v53 = vpop.eup %5723  ;;  %5378 = vmatprep.mubr.msk.f32.mxu1 %vm1378_vm6, %v7102_v35  ;;  %v1643_v6 = vsel %vm1378_vm6, %v7102_v35, 0.0 }
 0x535   :  { %v7106_v4 = vpop.eup %5725  ;;  %5379 = vmatmul.mubr.msk.f32.vlgmr.msra.gmra.mxu1 %vm1378_vm6, %v5724_v53  ;;  %v1646_v1 = vsel %vm1378_vm6, %v5724_v53, 0.0 }
 0x536   :  { %1599 = vadd.xlane.f32.xlu1 %v1598_v17  ;;  %5381 = vmatprep.mubr.msk.f32.mxu1 %vm1378_vm6, %v7106_v4 }
 0x537   :  { %v7113_v39 = vpop.eup %5727  ;;  %v7159_v45 = vpop.permute.xlu0 %2692 }
 0x538   :  { %v7115_v31 = vpop.eup %5729  ;;  %v1652_v41 = vsel %vm1378_vm6, %v7113_v39, 0.0 }
 0x539   :  { %5382 = vmatmul.mubr.msk.f32.gmra.mxu1 %vm1378_vm6, %v7113_v39 }
 0x53a   :  { %1605 = vadd.xlane.f32.xlu1 %v1604_v38  ;;  %5384 = vmatprep.mubr.msk.f32.mxu1 %vm1378_vm6, %v7115_v31 }
 0x53b   :  { %v7123_v8 = vpop.eup %5731  ;;  %v7165_v33 = vpop.permute.xlu0 %2674 }
 0x53c   :  { %v1658_v17 = vsel %vm1378_vm6, %v7123_v8, 0.0 }
 0x53d   :  { %5385 = vmatmul.mubr.msk.f32.gmra.mxu1 %vm1378_vm6, %v7123_v8 }
 0x53e   :  { %1629 = vadd.xlane.f32.xlu1 %v1628_v26 }
 0x53f   :  { %v7171_v9 = vpop.permute.xlu0 %2672 }
 0x542   :  { %1611 = vadd.xlane.f32.xlu1 %v1610_v11 }
 0x544   :  { %1581 = vadd.xlane.f32.xlu0 %v1580_v32 }
 0x546   :  { %1635 = vadd.xlane.f32.xlu1 %v1634_v63 }
 0x548   :  { %1584 = vadd.xlane.f32.xlu0 %v1583_v5 }
 0x54a   :  { %1617 = vadd.xlane.f32.xlu1 %v1616_v10 }
 0x54c   :  { %1590 = vadd.xlane.f32.xlu0 %v1589_v21 }
 0x54e   :  { %1641 = vadd.xlane.f32.xlu1 %v1640_v13 }
 0x550   :  { %1623 = vadd.xlane.f32.xlu0 %v1622_v62  ;;  %v8245_v62 = vld [vmem:[#allocation39_spill] sm:$0xff] }
 0x552   :  { %1647 = vadd.xlane.f32.xlu1 %v1646_v1  ;;  %v1649_v1 = vsel %vm1378_vm6, %v7106_v4, 0.0 }
 0x554   :  { %1596 = vadd.xlane.f32.xlu0 %v1595_v40 }
 0x558   :  { %1620 = vadd.xlane.f32.xlu0 %v1619_v2  ;;  %v1655_v2 = vsel %vm1378_vm6, %v7115_v31, 0.0 }
 0x55c   :  { %1602 = vadd.xlane.f32.xlu0 %v1601_v54 }
 0x560   :  { %1626 = vadd.xlane.f32.xlu0 %v1625_v0 }
 0x562   :  { %v7187_v37 = vpop.xlane.xlu1 %1575 }
 0x563   :  { %2859 = vrot.lane.b32.xlu1 %v8243_v23, %s6053_s29 }
 0x564   :  { %1608 = vadd.xlane.f32.xlu0 %v1607_v16 }
 0x566   :  { %v7191_v36 = vpop.permute.xlu1 %2682 }
 0x568   :  { %1632 = vadd.xlane.f32.xlu0 %v1631_v48 }
 0x56a   :  { %v7209_v39 = vpop.permute.xlu1 %2680 }
 0x56c   :  { %1614 = vadd.xlane.f32.xlu0 %v1613_v19 }
 0x56e   :  { %v7216_v32 = vpop.permute.xlu1 %2678 }
 0x570   :  { %1638 = vadd.xlane.f32.xlu0 %v1637_v52  ;;  %v7175_v56 = vpop.xlane.xlu0 %1572 }
 0x572   :  { %v7220_v5 = vpop.permute.xlu1 %2676 }
 0x574   :  { %1644 = vadd.xlane.f32.xlu0 %v1643_v6  ;;  %v1471_v18 = vpop.xlane.xlu0 %1470 }
 0x575   :  { %v1505_v28 = vsub.f32 %v6964_v20, %v1471_v18 }
 0x576   :  { %v7224_v21 = vpop.permute.xlu1 %2690 }
 0x577   :  { %v1567_v60 = vmul.f32 1.442695, %v1505_v28 }
 0x578   :  { %v7181_v22 = vpop.permute.xlu0 %2688 }
 0x579   :  { %5733 = vpow2.f32 %v1567_v60 }
 0x57a   :  { %5735 = vpow2.f32 %v1569_v58  ;;  %v7230_v13 = vpop.permute.xlu1 %2865 }
 0x57c   :  { %v7185_v57 = vpop.permute.xlu0 %2670 }
 0x57e   :  { %v7236_v40 = vpop.permute.xlu1 %2863  ;;  %v7249_v52 = vpop.f32.mrf.mxu0 }
 0x580   :  { %v7189_v30 = vpop.permute.xlu0 %2686  ;;  %v7251_v55 = vpop.f32.mrf.mxu0 }
 0x582   :  { %v7240_v54 = vpop.permute.xlu1 %2861 }
 0x583   :  { %v7255_v6 = vpop.f32.mrf.mxu0 }
 0x584   :  { %v2715_v61 = vpop.permute.xlu0 %2714  ;;  %8248 = vst [vmem:[#allocation38_spill] sm:$0xff] %v7255_v6 }
 0x585   :  { %5410 = vmatprep.subr.msk.mxu1 %vm781_vm5, %v2715_v61  ;;  %v7259_v58 = vpop.f32.mrf.mxu0 }
 0x586   :  { %v5734_v20 = vpop.eup %5733  ;;  %5411 = vmatpush3.xpose.msk.msra.mxu1 %vm781_vm5, %v2715_v61  ;;  %8250 = vst [vmem:[#allocation36_spill] sm:$0xff] %v7259_v58 }
 0x587   :  { %v5736_v35 = vpop.eup %5735  ;;  %1653 = vadd.xlane.f32.xlu1 %v1652_v41  ;;  %5387 = vmatprep.mubr.msk.f32.mxu1 %vm1378_vm6, %v5734_v20  ;;  %v1661_v0 = vsel %vm1378_vm6, %v5734_v20, 0.0 }
 0x588   :  { %5388 = vmatmul.mubr.msk.f32.gmra.mxu1 %vm1378_vm6, %v5736_v35  ;;  %v7199_v53 = vpop.permute.xlu0 %2867  ;;  %v1664_v26 = vsel %vm1378_vm6, %v5736_v35, 0.0 }
 0x589   :  { %5426 = vmatprep.mubr.msk.f32.mxu1 %vm781_vm5, %v6344_v49  ;;  %5438 = vmatprep.subr.msk.mxu0 %vm781_vm5, %v7199_v53 }
 0x58a   :  { %2706 = vrot.lane.b32.xlu0 %v6615_v50, %s6053_s29 }
 0x58b   :  { %1659 = vadd.xlane.f32.xlu1 %v1658_v17  ;;  %v7263_v17 = vpop.f32.mrf.mxu0 }
 0x58c   :  { %v7211_v38 = vpop.permute.xlu0 %2668  ;;  %8252 = vst [vmem:[#allocation34_spill] sm:$0xff] %v7263_v17 }
 0x58f   :  { %1665 = vadd.xlane.f32.xlu1 %v1664_v26 }
 0x590   :  { %v7214_v11 = vpop.permute.xlu0 %2684 }
 0x594   :  { %v2713_v63 = vpop.permute.xlu0 %2712 }
 0x595   :  { %5412 = vmatprep.subr.msk.mxu1 %vm781_vm5, %v2713_v63 }
 0x596   :  { %5413 = vmatpush3.xpose.msk.msra.mxu1 %vm781_vm5, %v2713_v63  ;;  %v7266_v63 = vpop.f32.mrf.mxu0 }
 0x597   :  { %8253 = vst [vmem:[#allocation40_spill] sm:$0xff] %v7266_v63 }
 0x598   :  { %v2711_v8 = vpop.permute.xlu0 %2710 }
 0x599   :  { %5414 = vmatprep.subr.msk.mxu1 %vm781_vm5, %v2711_v8 }
 0x59a   :  { %5415 = vmatpush3.xpose.msk.msra.mxu1 %vm781_vm5, %v2711_v8 }
 0x59c   :  { %v2709_v10 = vpop.permute.xlu0 %2708 }
 0x59d   :  { %5416 = vmatprep.subr.msk.mxu1 %vm781_vm5, %v2709_v10 }
 0x59e   :  { %5417 = vmatpush3.xpose.msk.msra.mxu1 %vm781_vm5, %v2709_v10 }
 0x5a0   :  { %2704 = vrot.lane.b32.xlu1 %v6639_v27, %s6053_s29 }
 0x5a4   :  { %2857 = vrot.lane.b32.xlu1 %v8245_v62, %s6053_s29 }
 0x5a9   :  { %1650 = vadd.xlane.f32.xlu0 %v1649_v1  ;;  %v7270_v1 = vpop.f32.mrf.mxu0 }
 0x5aa   :  { %8254 = vst [vmem:[#allocation39_spill] sm:$0xff] %v7270_v1 }
 0x5ad   :  { %1656 = vadd.xlane.f32.xlu0 %v1655_v2 }
 0x5b1   :  { %1662 = vadd.xlane.f32.xlu0 %v1661_v0 }
 0x5b3   :  { %v7243_v16 = vpop.xlane.xlu1 %1578 }
 0x5b7   :  { %v7245_v48 = vpop.xlane.xlu1 %1587 }
 0x5b8   :  { %8246 = vst [vmem:[#allocation35_spill] sm:$0xff] %v7245_v48 }
 0x5bb   :  { %v7247_v19 = vpop.xlane.xlu1 %1593 }
 0x5bc   :  { %8247 = vst [vmem:[#allocation32_spill] sm:$0xff] %v7247_v19 }
 0x5bf   :  { %v1600_v34 = vpop.xlane.xlu1 %1599 }
 0x5c0   :  { %5737 = vrcp.f32 %v1600_v34 }
 0x5c3   :  { %v1606_v4 = vpop.xlane.xlu1 %1605 }
 0x5c7   :  { %v1630_v3 = vpop.xlane.xlu1 %1629 }
 0x5cb   :  { %v1612_v28 = vpop.xlane.xlu1 %1611 }
 0x5cd   :  { %v7253_v31 = vpop.xlane.xlu0 %1581  ;;  %v5738_v61 = vpop.eup %5737 }
 0x5cf   :  { %v1636_v41 = vpop.xlane.xlu1 %1635 }
 0x5d1   :  { %v7257_v18 = vpop.xlane.xlu0 %1584 }
 0x5d2   :  { %8249 = vst [vmem:[#allocation33_spill] sm:$0xff] %v7257_v18 }
 0x5d3   :  { %v7268_v10 = vpop.xlane.xlu1 %1617 }
 0x5d5   :  { %v7261_v60 = vpop.xlane.xlu0 %1590 }
 0x5d6   :  { %8251 = vst [vmem:[#allocation37_spill] sm:$0xff] %v7261_v60 }
 0x5d7   :  { %v5324_v20 = vpop.f32.mrf.mxu1  ;;  %v7272_v34 = vpop.xlane.xlu1 %1641 }
 0x5d8   :  { %v2320_v35 = vmul.f32 %v5738_v61, %v5324_v20  ;;  %v7274_v61 = vpop.f32.mrf.mxu0 }
 0x5d9   :  { %v1624_v26 = vpop.xlane.xlu0 %1623  ;;  %v1934_v0 = vpop.f32.mrf.mxu1  ;;  %8255 = vst [vmem:[#allocation41_spill] sm:$0xff] %v7274_v61 }
 0x5da   :  { %5739 = vrcp.f32 %v1624_v26  ;;  %2353 = vrot.lane.b32.xlu0 %v2320_v35, %s6044_s11  ;;  %v5352_v26 = vpop.f32.mrf.mxu0 }
 0x5db   :  { %v5327_v17 = vpop.f32.mrf.mxu1 }
 0x5dc   :  { %v2087_v58 = vpop.f32.mrf.mxu0 }
 0x5dd   :  { %v1597_v8 = vpop.xlane.xlu0 %1596 }
 0x5de   :  { %5741 = vrcp.f32 %v1597_v8  ;;  %v1648_v8 = vpop.xlane.xlu1 %1647 }
 0x5df   :  { %5743 = vrcp.f32 %v1606_v4 }
 0x5e1   :  { %v1621_v2 = vpop.xlane.xlu0 %1620 }
 0x5e2   :  { %5745 = vrcp.f32 %v1621_v2  ;;  %v1944_v2 = vpop.f32.mrf.mxu1 }
 0x5e3   :  { %5747 = vrcp.f32 %v1630_v3 }
 0x5e4   :  { %v5330_v19 = vpop.f32.mrf.mxu1 }
 0x5e5   :  { %v1603_v20 = vpop.xlane.xlu0 %1602 }
 0x5e6   :  { %5749 = vrcp.f32 %v1603_v20 }
 0x5e7   :  { %v5740_v35 = vpop.eup %5739  ;;  %5751 = vrcp.f32 %v1612_v28  ;;  %v5355_v28 = vpop.f32.mrf.mxu0 }
 0x5e8   :  { %v2328_v63 = vmul.f32 %v5740_v35, %v5352_v26 }
 0x5e9   :  { %v1627_v6 = vpop.xlane.xlu0 %1626 }
 0x5ea   :  { %5753 = vrcp.f32 %v1627_v6  ;;  %2385 = vrot.lane.b32.xlu0 %v2328_v63, %s6055_s9  ;;  %v1954_v6 = vpop.f32.mrf.mxu1 }
 0x5eb   :  { %v5742_v4 = vpop.eup %5741  ;;  %5755 = vrcp.f32 %v1648_v8 }
 0x5ec   :  { %v2319_v1 = vmul.f32 %v5742_v4, %v1934_v0  ;;  %v5744_v3 = vpop.eup %5743  ;;  %v5333_v0 = vpop.f32.mrf.mxu1 }
 0x5ed   :  { %v1609_v61 = vpop.xlane.xlu0 %1608  ;;  %v2322_v35 = vmul.f32 %v5744_v3, %v5327_v17 }
 0x5ee   :  { %5757 = vrcp.f32 %v1609_v61  ;;  %2351 = vrot.lane.b32.xlu1 %v2319_v1, %s6044_s11  ;;  %v1964_v17 = vpop.f32.mrf.mxu1 }
 0x5ef   :  { %v5746_v20 = vpop.eup %5745  ;;  %5759 = vrcp.f32 %v1636_v41  ;;  %v2097_v41 = vpop.f32.mrf.mxu0 }
 0x5f0   :  { %v2327_v26 = vmul.f32 %v5746_v20, %v2087_v58  ;;  %v5748_v48 = vpop.eup %5747 }
 0x5f1   :  { %v1633_v60 = vpop.xlane.xlu0 %1632  ;;  %v2330_v8 = vmul.f32 %v5748_v48, %v5355_v28 }
 0x5f2   :  { %5761 = vrcp.f32 %v1633_v60  ;;  %2357 = vrot.lane.b32.xlu1 %v2322_v35, %s6044_s11  ;;  %2383 = vrot.lane.b32.xlu0 %v2327_v26, %s6055_s9 }
 0x5f3   :  { %v5750_v63 = vpop.eup %5749 }
 0x5f4   :  { %v2321_v4 = vmul.f32 %v5750_v63, %v1944_v2  ;;  %v5752_v18 = vpop.eup %5751  ;;  %v5358_v2 = vpop.f32.mrf.mxu0 }
 0x5f5   :  { %v1615_v61 = vpop.xlane.xlu0 %1614  ;;  %v2324_v1 = vmul.f32 %v5752_v18, %v5330_v19  ;;  %v5380_v3 = vpop.f32.mrf.mxu1 }
 0x5f6   :  { %5763 = vrcp.f32 %v1615_v61  ;;  %2389 = vrot.lane.b32.xlu1 %v2330_v8, %s6055_s9  ;;  %2355 = vrot.lane.b32.xlu0 %v2321_v4, %s6044_s11  ;;  %v2107_v18 = vpop.f32.mrf.mxu0 }
 0x5f7   :  { %v5754_v58 = vpop.eup %5753  ;;  %5765 = vrcp.f32 %v7268_v10 }
 0x5f8   :  { %v2329_v60 = vmul.f32 %v5754_v58, %v2097_v41  ;;  %v5756_v35 = vpop.eup %5755 }
 0x5f9   :  { %v1639_v20 = vpop.xlane.xlu0 %1638  ;;  %v2336_v28 = vmul.f32 %v5756_v35, %v5380_v3  ;;  %v7297_v3 = vpop.permute.xlu1 %2859 }
 0x5fa   :  { %2361 = vrot.lane.b32.xlu1 %v2324_v1, %s6044_s11  ;;  %2387 = vrot.lane.b32.xlu0 %v2329_v60, %s6055_s9  ;;  %v5361_v1 = vpop.f32.mrf.mxu0  ;;  %v2240_v60 = vpop.f32.mrf.mxu1 }
 0x5fb   :  { %v5758_v48 = vpop.eup %5757 }
 0x5fc   :  { %v2323_v26 = vmul.f32 %v5758_v48, %v1954_v6  ;;  %v5760_v8 = vpop.eup %5759 }
 0x5fd   :  { %v1645_v63 = vpop.xlane.xlu0 %1644  ;;  %v2332_v4 = vmul.f32 %v5760_v8, %v5358_v2  ;;  %v2117_v2 = vpop.f32.mrf.mxu0 }
 0x5fe   :  { %5767 = vrcp.f32 %v1645_v63  ;;  %2417 = vrot.lane.b32.xlu1 %v2336_v28, %s6056_s12  ;;  %2359 = vrot.lane.b32.xlu0 %v2323_v26, %s6044_s11 }
 0x5ff   :  { %v5762_v19 = vpop.eup %5761  ;;  %5769 = vrcp.f32 %v1639_v20 }
 0x600   :  { %v2331_v61 = vmul.f32 %v5762_v19, %v2107_v18  ;;  %5771 = vrcp.f32 %v7272_v34 }
 0x601   :  { %v2707_v58 = vpop.permute.xlu0 %2706 }
 0x602   :  { %2393 = vrot.lane.b32.xlu1 %v2332_v4, %s6055_s9  ;;  %2391 = vrot.lane.b32.xlu0 %v2331_v61, %s6055_s9  ;;  %v5383_v4 = vpop.f32.mrf.mxu1 }
 0x603   :  { %v5764_v10 = vpop.eup %5763  ;;  %5418 = vmatprep.subr.msk.mxu1 %vm781_vm5, %v2707_v58 }
 0x604   :  { %5419 = vmatpush3.xpose.msk.msra.mxu1 %vm781_vm5, %v2707_v58  ;;  %v2325_v6 = vmul.f32 %v5764_v10, %v1964_v17  ;;  %v5766_v41 = vpop.eup %5765 }
 0x605   :  { %v2326_v20 = vmul.f32 %v5766_v41, %v5333_v0  ;;  %v2250_v41 = vpop.f32.mrf.mxu1 }
 0x606   :  { %2702 = vrot.lane.b32.xlu1 %v6336_v46, %s6053_s29  ;;  %2363 = vrot.lane.b32.xlu0 %v2325_v6, %s6044_s11 }
 0x60a   :  { %2855 = vrot.lane.b32.xlu1 %v7183_v14, %s6053_s29 }
 0x60b   :  { %v5768_v34 = vpop.eup %5767 }
 0x60c   :  { %v2335_v35 = vmul.f32 %v5768_v34, %v2240_v60  ;;  %v5770_v48 = vpop.eup %5769 }
 0x60d   :  { %v5772_v17 = vpop.eup %5771  ;;  %v2333_v63 = vmul.f32 %v5770_v48, %v2117_v2 }
 0x60e   :  { %2365 = vrot.lane.b32.xlu1 %v2326_v20, %s6044_s11  ;;  %2415 = vrot.lane.b32.xlu0 %v2335_v35, %s6056_s12  ;;  %v2334_v28 = vmul.f32 %v5772_v17, %v5361_v1  ;;  %v5386_v20 = vpop.f32.mrf.mxu1 }
 0x610   :  { %v1654_v26 = vpop.xlane.xlu1 %1653  ;;  %v2260_v17 = vpop.f32.mrf.mxu1 }
 0x611   :  { %5773 = vrcp.f32 %v1654_v26 }
 0x612   :  { %2397 = vrot.lane.b32.xlu1 %v2334_v28, %s6055_s9  ;;  %2395 = vrot.lane.b32.xlu0 %v2333_v63, %s6055_s9 }
 0x614   :  { %v1660_v8 = vpop.xlane.xlu1 %1659 }
 0x616   :  { %2700 = vrot.lane.b32.xlu1 %v6344_v49, %s6053_s29 }
 0x618   :  { %v1666_v0 = vpop.xlane.xlu1 %1665 }
 0x61a   :  { %2853 = vrot.lane.b32.xlu1 %v7136_v7, %s6053_s29 }
 0x61c   :  { %v2705_v19 = vpop.permute.xlu1 %2704 }
 0x61d   :  { %5420 = vmatprep.subr.msk.mxu1 %vm781_vm5, %v2705_v19 }
 0x61e   :  { %v5774_v18 = vpop.eup %5773  ;;  %3173 = vrot.lane.b32.xlu1 %v7142_v43, %s6053_s29  ;;  %5421 = vmatpush3.xpose.msk.msra.mxu1 %vm781_vm5, %v2705_v19 }
 0x61f   :  { %v2338_v61 = vmul.f32 %v5774_v18, %v5383_v4 }
 0x620   :  { %v7351_v18 = vpop.permute.xlu1 %2857 }
 0x621   :  { %2421 = vrot.lane.b32.xlu0 %v2338_v61, %s6056_s12 }
 0x622   :  { %3171 = vrot.lane.b32.xlu1 %v7149_v15, %s6053_s29 }
 0x626   :  { %3169 = vrot.lane.b32.xlu1 %v7153_v42, %s6053_s29 }
 0x62a   :  { %3167 = vrot.lane.b32.xlu1 %v7159_v45, %s6053_s29 }
 0x62e   :  { %3165 = vrot.lane.b32.xlu1 %v7224_v21, %s6053_s29 }
 0x632   :  { %3163 = vrot.lane.b32.xlu1 %v7181_v22, %s6053_s29  ;;  %v1651_v58 = vpop.xlane.xlu0 %1650 }
 0x633   :  { %5775 = vrcp.f32 %v1651_v58 }
 0x634   :  { %5777 = vrcp.f32 %v1660_v8 }
 0x636   :  { %3161 = vrot.lane.b32.xlu1 %v7189_v30, %s6053_s29  ;;  %v1657_v10 = vpop.xlane.xlu0 %1656 }
 0x637   :  { %5779 = vrcp.f32 %v1657_v10 }
 0x638   :  { %5781 = vrcp.f32 %v1666_v0 }
 0x63a   :  { %3159 = vrot.lane.b32.xlu1 %v7214_v11, %s6053_s29  ;;  %v1663_v34 = vpop.xlane.xlu0 %1662 }
 0x63b   :  { %5783 = vrcp.f32 %v1663_v34 }
 0x63c   :  { %5785 = vrcp.f32 %v7175_v56 }
 0x63d   :  { %5787 = vrcp.f32 %v7187_v37 }
 0x63e   :  { %3614 = vrot.lane.b32.xlu1 %v6621_v51, %s6054_s30  ;;  %5789 = vrcp.f32 %v7243_v16  ;;  %v8258_v16 = vld [vmem:[#allocation37_spill] sm:$0xff] }
 0x63f   :  { %5791 = vrcp.f32 %v7253_v31  ;;  %v8259_v31 = vld [vmem:[#allocation36_spill] sm:$0xff] }
 0x640   :  { %v5776_v6 = vpop.eup %5775 }
 0x641   :  { %v2337_v1 = vmul.f32 %v5776_v6, %v2250_v41  ;;  %v5778_v60 = vpop.eup %5777 }
 0x642   :  { %3612 = vrot.lane.b32.xlu1 %v6598_v44, %s6054_s30  ;;  %v2340_v35 = vmul.f32 %v5778_v60, %v5386_v20 }
 0x643   :  { %2419 = vrot.lane.b32.xlu0 %v2337_v1, %s6056_s12 }
 0x644   :  { %v5780_v48 = vpop.eup %5779 }
 0x645   :  { %v2339_v2 = vmul.f32 %v5780_v48, %v2260_v17  ;;  %v5782_v26 = vpop.eup %5781 }
 0x646   :  { %3610 = vrot.lane.b32.xlu1 %v6606_v47, %s6054_s30 }
 0x647   :  { %2425 = vrot.lane.b32.xlu0 %v2340_v35, %s6056_s12 }
 0x648   :  { %v5389_v28 = vpop.f32.mrf.mxu1  ;;  %v5784_v0 = vpop.eup %5783 }
 0x649   :  { %v2342_v63 = vmul.f32 %v5782_v26, %v5389_v28  ;;  %v5786_v37 = vpop.eup %5785 }
 0x64a   :  { %3608 = vrot.lane.b32.xlu1 %v6630_v59, %s6054_s30  ;;  %v2270_v8 = vpop.f32.mrf.mxu1  ;;  %v5788_v28 = vpop.eup %5787  ;;  %v2311_v26 = vmul.f32 %v5786_v37, %v7251_v55 }
 0x64b   :  { %2423 = vrot.lane.b32.xlu0 %v2339_v2, %s6056_s12  ;;  %v2341_v19 = vmul.f32 %v5784_v0, %v2270_v8 }
 0x64c   :  { %v2354_v4 = vpop.permute.xlu0 %2353 }
 0x64e   :  { %3606 = vrot.lane.b32.xlu1 %v6615_v50, %s6054_s30 }
 0x64f   :  { %2429 = vrot.lane.b32.xlu0 %v2342_v63, %s6056_s12  ;;  %v2312_v63 = vmul.f32 %v5788_v28, %v7249_v52 }
 0x651   :  { %v2440_v0 = vsel %vm781_vm5, %v2312_v63, %v2354_v4 }
 0x652   :  { %3604 = vrot.lane.b32.xlu1 %v6639_v27, %s6054_s30 }
 0x653   :  { %2427 = vrot.lane.b32.xlu0 %v2341_v19, %s6056_s12 }
 0x656   :  { %3602 = vrot.lane.b32.xlu1 %v6336_v46, %s6054_s30 }
 0x657   :  { %3020 = vrot.lane.b32.xlu0 %v7191_v36, %s6053_s29 }
 0x65a   :  { %3600 = vrot.lane.b32.xlu1 %v6344_v49, %s6054_s30 }
 0x65b   :  { %3018 = vrot.lane.b32.xlu0 %v7209_v39, %s6053_s29 }
 0x65c   :  { %v2386_v61 = vpop.permute.xlu0 %2385 }
 0x65d   :  { %v2449_v55 = vsel %vm2447_vm7, %v2440_v0, %v2386_v61  ;;  %v8261_v61 = vld [vmem:[#allocation38_spill] sm:$0xff] }
 0x65e   :  { %3920 = vrot.lane.b32.xlu1 %v7191_v36, %s6054_s30 }
 0x65f   :  { %3016 = vrot.lane.b32.xlu0 %v7216_v32, %s6053_s29 }
 0x660   :  { %v2352_v58 = vpop.permute.xlu1 %2351 }
 0x661   :  { %v2439_v8 = vsel %vm781_vm5, %v2311_v26, %v2352_v58 }
 0x662   :  { %4073 = vrot.lane.b32.xlu1 %v7142_v43, %s6054_s30 }
 0x663   :  { %3014 = vrot.lane.b32.xlu0 %v7220_v5, %s6053_s29 }
 0x664   :  { %v7361_v49 = vpop.permute.xlu1 %2357  ;;  %v2384_v10 = vpop.permute.xlu0 %2383 }
 0x665   :  { %v2448_v19 = vsel %vm2447_vm7, %v2439_v8, %v2384_v10 }
 0x666   :  { %3918 = vrot.lane.b32.xlu1 %v7209_v39, %s6054_s30 }
 0x667   :  { %3012 = vrot.lane.b32.xlu0 %v7165_v33, %s6053_s29 }
 0x668   :  { %v7367_v6 = vpop.permute.xlu1 %2389  ;;  %v7369_v41 = vpop.permute.xlu0 %2355 }
 0x66a   :  { %4071 = vrot.lane.b32.xlu1 %v7149_v15, %s6054_s30 }
 0x66b   :  { %3010 = vrot.lane.b32.xlu0 %v7171_v9, %s6053_s29 }
 0x66c   :  { %v7375_v34 = vpop.permute.xlu1 %2361  ;;  %v7377_v1 = vpop.permute.xlu0 %2387 }
 0x66e   :  { %4069 = vrot.lane.b32.xlu1 %v7153_v42, %s6054_s30 }
 0x66f   :  { %3008 = vrot.lane.b32.xlu0 %v7185_v57, %s6053_s29 }
 0x670   :  { %v2418_v60 = vpop.permute.xlu1 %2417  ;;  %v7385_v20 = vpop.permute.xlu0 %2359 }
 0x671   :  { %v2458_v37 = vsel %vm2456_vm8, %v2449_v55, %v2418_v60 }
 0x672   :  { %4067 = vrot.lane.b32.xlu1 %v7159_v45, %s6054_s30 }
 0x673   :  { %3006 = vrot.lane.b32.xlu0 %v7211_v38, %s6053_s29 }
 0x674   :  { %v7391_v35 = vpop.permute.xlu1 %2393  ;;  %v7393_v48 = vpop.permute.xlu0 %2391 }
 0x676   :  { %4065 = vrot.lane.b32.xlu1 %v7224_v21, %s6054_s30 }
 0x677   :  { %3767 = vrot.lane.b32.xlu0 %v6871_v12, %s6054_s30 }
 0x678   :  { %v2703_v56 = vpop.permute.xlu1 %2702  ;;  %v7405_v17 = vpop.permute.xlu0 %2363 }
 0x679   :  { %5422 = vmatprep.subr.msk.mxu1 %vm781_vm5, %v2703_v56 }
 0x67a   :  { %4063 = vrot.lane.b32.xlu1 %v7181_v22, %s6054_s30  ;;  %5423 = vmatpush3.xpose.msk.msra.mxu1 %vm781_vm5, %v2703_v56 }
 0x67b   :  { %3765 = vrot.lane.b32.xlu0 %v6748_v25, %s6054_s30 }
 0x67c   :  { %v2856_v2 = vpop.permute.xlu1 %2855 }
 0x67e   :  { %4061 = vrot.lane.b32.xlu1 %v7189_v30, %s6054_s30 }
 0x67f   :  { %3763 = vrot.lane.b32.xlu0 %v6750_v29, %s6054_s30 }
 0x680   :  { %v7416_v56 = vpop.permute.xlu1 %2365  ;;  %v2416_v43 = vpop.permute.xlu0 %2415 }
 0x681   :  { %v2457_v52 = vsel %vm2456_vm8, %v2448_v19, %v2416_v43 }
 0x682   :  { %5398 = vmatprep.mubr.msk.f32.mxu0 %vm157_vm1, %v2457_v52  ;;  %v8262_v52 = vld [vmem:[#allocation40_spill] sm:$0xff] }
 0x683   :  { %3761 = vrot.lane.b32.xlu0 %v6883_v24, %s6054_s30  ;;  %5399 = vmatmul.mubr.msk.f32.vlgmr.msra.gmra.mxu0 %vm157_vm1, %v2458_v37 }
 0x684   :  { %5439 = vmatpush3.xpose.msk.msra.mxu0 %vm781_vm5, %v7199_v53  ;;  %v7427_v4 = vpop.permute.xlu1 %2397 }
 0x685   :  { %5440 = vmatprep.subr.msk.mxu0 %vm781_vm5, %v7230_v13 }
 0x687   :  { %3759 = vrot.lane.b32.xlu0 %v8243_v23, %s6054_s30 }
 0x688   :  { %5441 = vmatpush3.xpose.msk.msra.mxu0 %vm781_vm5, %v7230_v13  ;;  %v2701_v43 = vpop.permute.xlu1 %2700  ;;  %v5790_v13 = vpop.eup %5789 }
 0x689   :  { %5442 = vmatprep.subr.msk.mxu0 %vm781_vm5, %v7236_v40  ;;  %5424 = vmatprep.subr.msk.mxu1 %vm781_vm5, %v2701_v43 }
 0x68a   :  { %5425 = vmatpush3.xpose.msk.msra.mxu1 %vm781_vm5, %v2701_v43 }
 0x68b   :  { %3757 = vrot.lane.b32.xlu0 %v8245_v62, %s6054_s30 }
 0x68c   :  { %5443 = vmatpush3.xpose.msk.msra.mxu0 %vm781_vm5, %v7236_v40  ;;  %v5792_v40 = vpop.eup %5791 }
 0x68d   :  { %5444 = vmatprep.subr.msk.mxu0 %vm781_vm5, %v7240_v54  ;;  %5427 = vmatmul.mubr.msk.f32.vlgmr.msra.gmra.mxu1 %vm781_vm5, %v6336_v46  ;;  %v2854_v46 = vpop.permute.xlu1 %2853  ;;  %v2314_v58 = vmul.f32 %v5792_v40, %v8261_v61  ;;  %v8265_v61 = vld [vmem:[#allocation39_spill] sm:$0xff] }
 0x68e   :  { %5429 = vmatprep.mubr.msk.f32.mxu1 %vm781_vm5, %v6639_v27  ;;  %v2396_v27 = vpop.permute.xlu0 %2395 }
 0x68f   :  { %3755 = vrot.lane.b32.xlu0 %v7183_v14, %s6054_s30 }
 0x690   :  { %5445 = vmatpush3.xpose.msk.msra.mxu0 %vm781_vm5, %v7240_v54 }
 0x691   :  { %5446 = vmatprep.subr.msk.mxu0 %vm781_vm5, %v7297_v3  ;;  %5430 = vmatmul.mubr.msk.f32.gmra.mxu1 %vm781_vm5, %v6615_v50 }
 0x692   :  { %5432 = vmatprep.mubr.msk.f32.mxu1 %vm781_vm5, %v6630_v59  ;;  %v8257_v59 = vld [vmem:[#allocation35_spill] sm:$0xff] }
 0x693   :  { %3753 = vrot.lane.b32.xlu0 %v7136_v7, %s6054_s30  ;;  %v2422_v54 = vpop.permute.xlu0 %2421 }
 0x694   :  { %5447 = vmatpush3.xpose.msk.msra.mxu0 %vm781_vm5, %v7297_v3  ;;  %v2313_v3 = vmul.f32 %v5790_v13, %v8259_v31 }
 0x695   :  { %5448 = vmatprep.subr.msk.mxu0 %vm781_vm5, %v7351_v18  ;;  %5433 = vmatmul.mubr.msk.f32.gmra.mxu1 %vm781_vm5, %v6606_v47  ;;  %v7480_v47 = vpop.permute.xlu1 %3173 }
 0x696   :  { %5435 = vmatprep.mubr.msk.f32.mxu1 %vm781_vm5, %v6598_v44  ;;  %v2441_v10 = vsel %vm781_vm5, %v2313_v3, %v7369_v41 }
 0x697   :  { %3916 = vrot.lane.b32.xlu0 %v7216_v32, %s6054_s30  ;;  %v2450_v28 = vsel %vm2447_vm7, %v2441_v10, %v7377_v1  ;;  %v8263_v1 = vld [vmem:[#allocation34_spill] sm:$0xff] }
 0x698   :  { %5449 = vmatpush3.xpose.msk.msra.mxu0 %vm781_vm5, %v7351_v18  ;;  %v8260_v18 = vld [vmem:[#allocation32_spill] sm:$0xff] }
 0x699   :  { %5450 = vmatprep.subr.msk.mxu0 %vm781_vm5, %v2856_v2  ;;  %5436 = vmatmul.mubr.msk.f32.gmra.mxu1 %vm781_vm5, %v6621_v51  ;;  %v7490_v44 = vpop.permute.xlu1 %3171  ;;  %v8256_v51 = vld [vmem:[#allocation33_spill] sm:$0xff] }
 0x69a   :  { %5482 = vmatprep.mubr.msk.f32.mxu1 %vm781_vm5, %v7211_v38  ;;  %5793 = vrcp.f32 %v8256_v51 }
 0x69b   :  { %3914 = vrot.lane.b32.xlu0 %v7220_v5, %s6054_s30  ;;  %5795 = vrcp.f32 %v8257_v59 }
 0x69c   :  { %5451 = vmatpush3.xpose.msk.msra.mxu0 %vm781_vm5, %v2856_v2  ;;  %5797 = vrcp.f32 %v8258_v16  ;;  %v2442_v2 = vsel %vm781_vm5, %v2314_v58, %v7361_v49 }
 0x69d   :  { %5452 = vmatprep.subr.msk.mxu0 %vm781_vm5, %v2854_v46  ;;  %v7497_v50 = vpop.permute.xlu1 %3169  ;;  %5799 = vrcp.f32 %v8260_v18  ;;  %v2451_v63 = vsel %vm2447_vm7, %v2442_v2, %v7367_v6 }
 0x69e   :  { %v2460_v19 = vsel %vm2456_vm8, %v2451_v63, %v2422_v54 }
 0x69f   :  { %3912 = vrot.lane.b32.xlu0 %v7165_v33, %s6054_s30 }
 0x6a0   :  { %5453 = vmatpush3.xpose.msk.msra.mxu0 %vm781_vm5, %v2854_v46 }
 0x6a1   :  { %5494 = vmatprep.subr.msk.mxu0 %vm781_vm5, %v7480_v47  ;;  %v7501_v53 = vpop.permute.xlu1 %3167 }
 0x6a3   :  { %3910 = vrot.lane.b32.xlu0 %v7171_v9, %s6054_s30 }
 0x6a5   :  { %v7509_v60 = vpop.permute.xlu1 %3165 }
 0x6a7   :  { %3908 = vrot.lane.b32.xlu0 %v7185_v57, %s6054_s30  ;;  %v5794_v0 = vpop.eup %5793 }
 0x6a8   :  { %v5796_v41 = vpop.eup %5795  ;;  %v2315_v49 = vmul.f32 %v5794_v0, %v8262_v52 }
 0x6a9   :  { %v7522_v37 = vpop.permute.xlu1 %3163  ;;  %v2316_v43 = vmul.f32 %v5796_v41, %v8263_v1  ;;  %v5798_v54 = vpop.eup %5797 }
 0x6aa   :  { %v2443_v6 = vsel %vm781_vm5, %v2315_v49, %v7385_v20  ;;  %v5800_v31 = vpop.eup %5799 }
 0x6ab   :  { %v2444_v46 = vsel %vm781_vm5, %v2316_v43, %v7375_v34  ;;  %v2452_v51 = vsel %vm2447_vm7, %v2443_v6, %v7393_v48  ;;  %v8264_v34 = vld [vmem:[#allocation41_spill] sm:$0xff]  ;;  %v2318_v48 = vmul.f32 %v5800_v31, %v8265_v61 }
 0x6ac   :  { %v2453_v13 = vsel %vm2447_vm7, %v2444_v46, %v7391_v35  ;;  %v2317_v18 = vmul.f32 %v5798_v54, %v8264_v34 }
 0x6ad   :  { %v3162_v3 = vpop.permute.xlu1 %3161  ;;  %v2446_v35 = vsel %vm781_vm5, %v2318_v48, %v7416_v56 }
 0x6ae   :  { %v2445_v58 = vsel %vm781_vm5, %v2317_v18, %v7405_v17 }
 0x6af   :  { %v2454_v10 = vsel %vm2447_vm7, %v2445_v58, %v2396_v27 }
 0x6b5   :  { %v2420_v26 = vpop.permute.xlu0 %2419 }
 0x6b6   :  { %v2459_v8 = vsel %vm2456_vm8, %v2450_v28, %v2420_v26  ;;  %v2455_v28 = vsel %vm2447_vm7, %v2446_v35, %v7427_v4  ;;  %v3160_v26 = vpop.permute.xlu1 %3159 }
 0x6b7   :  { %5401 = vmatprep.mubr.msk.f32.mxu0 %vm157_vm1, %v2459_v8 }
 0x6b8   :  { %5402 = vmatmul.mubr.msk.f32.gmra.mxu0 %vm157_vm1, %v2460_v19 }
 0x6b9   :  { %v2426_v55 = vpop.permute.xlu0 %2425 }
 0x6ba   :  { %v2462_v16 = vsel %vm2456_vm8, %v2453_v13, %v2426_v55  ;;  %v3615_v56 = vpop.permute.xlu1 %3614 }
 0x6bd   :  { %v2424_v59 = vpop.permute.xlu0 %2423 }
 0x6be   :  { %v2461_v40 = vsel %vm2456_vm8, %v2452_v51, %v2424_v59 }
 0x6bf   :  { %5404 = vmatprep.mubr.msk.f32.mxu0 %vm157_vm1, %v2461_v40 }
 0x6c0   :  { %5405 = vmatmul.mubr.msk.f32.gmra.mxu0 %vm157_vm1, %v2462_v16 }
 0x6c1   :  { %v2430_v20 = vpop.permute.xlu0 %2429 }
 0x6c2   :  { %v2464_v8 = vsel %vm2456_vm8, %v2455_v28, %v2430_v20 }
 0x6c5   :  { %v2428_v2 = vpop.permute.xlu0 %2427 }
 0x6c6   :  { %v2463_v63 = vsel %vm2456_vm8, %v2454_v10, %v2428_v2 }
 0x6c7   :  { %5407 = vmatprep.mubr.msk.f32.mxu0 %vm157_vm1, %v2463_v63 }
 0x6c8   :  { %5408 = vmatmul.mubr.msk.f32.gmra.mxu0 %vm157_vm1, %v2464_v8 }
 0x6c9   :  { %5454 = vmatprep.mubr.msk.f32.mxu0 %vm781_vm5, %v7136_v7  ;;  %v3021_v17 = vpop.permute.xlu0 %3020 }
 0x6ca   :  { %5466 = vmatprep.subr.msk.mxu1 %vm781_vm5, %v3021_v17 }
 0x6cb   :  { %5467 = vmatpush3.xpose.msk.msra.mxu1 %vm781_vm5, %v3021_v17 }
 0x6cc   :  { %5455 = vmatmul.mubr.msk.f32.vlgmr.msra.gmra.mxu0 %vm781_vm5, %v7183_v14  ;;  %v3613_v14 = vpop.permute.xlu1 %3612 }
 0x6cd   :  { %5495 = vmatpush3.xpose.msk.msra.mxu0 %vm781_vm5, %v7480_v47  ;;  %5457 = vmatprep.mubr.msk.f32.mxu0 %vm781_vm5, %v8245_v62  ;;  %v3019_v4 = vpop.permute.xlu0 %3018 }
 0x6ce   :  { %5496 = vmatprep.subr.msk.mxu0 %vm781_vm5, %v7490_v44  ;;  %5468 = vmatprep.subr.msk.mxu1 %vm781_vm5, %v3019_v4 }
 0x6cf   :  { %5469 = vmatpush3.xpose.msk.msra.mxu1 %vm781_vm5, %v3019_v4 }
 0x6d0   :  { %5458 = vmatmul.mubr.msk.f32.gmra.mxu0 %vm781_vm5, %v8243_v23 }
 0x6d1   :  { %5497 = vmatpush3.xpose.msk.msra.mxu0 %vm781_vm5, %v7490_v44  ;;  %5460 = vmatprep.mubr.msk.f32.mxu0 %vm781_vm5, %v6883_v24  ;;  %v3017_v7 = vpop.permute.xlu0 %3016  ;;  %v3611_v24 = vpop.permute.xlu1 %3610 }
 0x6d2   :  { %5498 = vmatprep.subr.msk.mxu0 %vm781_vm5, %v7497_v50  ;;  %5470 = vmatprep.subr.msk.mxu1 %vm781_vm5, %v3017_v7 }
 0x6d3   :  { %5471 = vmatpush3.xpose.msk.msra.mxu1 %vm781_vm5, %v3017_v7 }
 0x6d4   :  { %5461 = vmatmul.mubr.msk.f32.gmra.mxu0 %vm781_vm5, %v6750_v29 }
 0x6d5   :  { %5499 = vmatpush3.xpose.msk.msra.mxu0 %vm781_vm5, %v7497_v50  ;;  %5463 = vmatprep.mubr.msk.f32.mxu0 %vm781_vm5, %v6748_v25  ;;  %v3015_v23 = vpop.permute.xlu0 %3014  ;;  %v3609_v62 = vpop.permute.xlu1 %3608 }
 0x6d6   :  { %5500 = vmatprep.subr.msk.mxu0 %vm781_vm5, %v7501_v53  ;;  %5472 = vmatprep.subr.msk.mxu1 %vm781_vm5, %v3015_v23 }
 0x6d7   :  { %5473 = vmatpush3.xpose.msk.msra.mxu1 %vm781_vm5, %v3015_v23 }
 0x6d8   :  { %5464 = vmatmul.mubr.msk.f32.gmra.mxu0 %vm781_vm5, %v6871_v12 }
 0x6d9   :  { %5501 = vmatpush3.xpose.msk.msra.mxu0 %vm781_vm5, %v7501_v53  ;;  %5510 = vmatprep.mubr.msk.f32.mxu0 %vm781_vm5, %v7214_v11  ;;  %v3013_v29 = vpop.permute.xlu0 %3012  ;;  %v3607_v47 = vpop.permute.xlu1 %3606 }
 0x6da   :  { %5502 = vmatprep.subr.msk.mxu0 %vm781_vm5, %v7509_v60  ;;  %5474 = vmatprep.subr.msk.mxu1 %vm781_vm5, %v3013_v29 }
 0x6db   :  { %5475 = vmatpush3.xpose.msk.msra.mxu1 %vm781_vm5, %v3013_v29 }
 0x6dd   :  { %5503 = vmatpush3.xpose.msk.msra.mxu0 %vm781_vm5, %v7509_v60  ;;  %v3011_v25 = vpop.permute.xlu0 %3010  ;;  %v3605_v27 = vpop.permute.xlu1 %3604 }
 0x6de   :  { %5504 = vmatprep.subr.msk.mxu0 %vm781_vm5, %v7522_v37  ;;  %5476 = vmatprep.subr.msk.mxu1 %vm781_vm5, %v3011_v25 }
 0x6df   :  { %5477 = vmatpush3.xpose.msk.msra.mxu1 %vm781_vm5, %v3011_v25 }
 0x6e1   :  { %5505 = vmatpush3.xpose.msk.msra.mxu0 %vm781_vm5, %v7522_v37  ;;  %v3009_v12 = vpop.permute.xlu0 %3008 }
 0x6e2   :  { %5506 = vmatprep.subr.msk.mxu0 %vm781_vm5, %v3162_v3  ;;  %5478 = vmatprep.subr.msk.mxu1 %vm781_vm5, %v3009_v12 }
 0x6e3   :  { %5479 = vmatpush3.xpose.msk.msra.mxu1 %vm781_vm5, %v3009_v12 }
 0x6e5   :  { %5507 = vmatpush3.xpose.msk.msra.mxu0 %vm781_vm5, %v3162_v3  ;;  %v3007_v44 = vpop.permute.xlu0 %3006 }
 0x6e6   :  { %5508 = vmatprep.subr.msk.mxu0 %vm781_vm5, %v3160_v26  ;;  %5480 = vmatprep.subr.msk.mxu1 %vm781_vm5, %v3007_v44 }
 0x6e7   :  { %5481 = vmatpush3.xpose.msk.msra.mxu1 %vm781_vm5, %v3007_v44 }
 0x6e8   :  { %5522 = vmatprep.subr.mxu1 %v3615_v56 }
 0x6e9   :  { %5509 = vmatpush3.xpose.msk.msra.mxu0 %vm781_vm5, %v3160_v26  ;;  %v3768_v50 = vpop.permute.xlu0 %3767 }
 0x6ea   :  { %5483 = vmatmul.mubr.msk.f32.vlgmr.msra.gmra.mxu1 %vm781_vm5, %v7185_v57  ;;  %5550 = vmatprep.subr.mxu0 %v3768_v50  ;;  %v3603_v57 = vpop.permute.xlu1 %3602 }
 0x6eb   :  { %5485 = vmatprep.mubr.msk.f32.mxu1 %vm781_vm5, %v7171_v9  ;;  %5523 = vmatpush3.msra.mxu1 %v3615_v56 }
 0x6ec   :  { %5511 = vmatmul.mubr.msk.f32.vlgmr.msra.gmra.mxu0 %vm781_vm5, %v7189_v30  ;;  %5524 = vmatprep.subr.mxu1 %v3613_v14  ;;  %v8266_v30 = vld [vmem:[#allocation31_spill] sm:$0xff] }
 0x6ed   :  { %5513 = vmatprep.mubr.msk.f32.mxu0 %vm781_vm5, %v7181_v22  ;;  %5551 = vmatpush3.msra.mxu0 %v3768_v50  ;;  %v3766_v53 = vpop.permute.xlu0 %3765 }
 0x6ee   :  { %5525 = vmatpush3.msra.mxu1 %v3613_v14  ;;  %5552 = vmatprep.subr.mxu0 %v3766_v53  ;;  %v3601_v22 = vpop.permute.xlu1 %3600 }
 0x6ef   :  { %5486 = vmatmul.mubr.msk.f32.gmra.mxu1 %vm781_vm5, %v7165_v33  ;;  %5526 = vmatprep.subr.mxu1 %v3611_v24 }
 0x6f0   :  { %5488 = vmatprep.mubr.msk.f32.mxu1 %vm781_vm5, %v7220_v5  ;;  %5514 = vmatmul.mubr.msk.f32.gmra.mxu0 %vm781_vm5, %v7224_v21 }
 0x6f1   :  { %5527 = vmatpush3.msra.mxu1 %v3611_v24  ;;  %5553 = vmatpush3.msra.mxu0 %v3766_v53  ;;  %v3764_v9 = vpop.permute.xlu0 %3763 }
 0x6f2   :  { %5516 = vmatprep.mubr.msk.f32.mxu0 %vm781_vm5, %v7159_v45  ;;  %5528 = vmatprep.subr.mxu1 %v3609_v62 }
 0x6f3   :  { %5529 = vmatpush3.msra.mxu1 %v3609_v62  ;;  %5554 = vmatprep.subr.mxu0 %v3764_v9 }
 0x6f4   :  { %5489 = vmatmul.mubr.msk.f32.gmra.mxu1 %vm781_vm5, %v7216_v32  ;;  %5530 = vmatprep.subr.mxu1 %v3607_v47 }
 0x6f5   :  { %5491 = vmatprep.mubr.msk.f32.mxu1 %vm781_vm5, %v7209_v39  ;;  %5517 = vmatmul.mubr.msk.f32.gmra.mxu0 %vm781_vm5, %v7153_v42  ;;  %v3762_v33 = vpop.permute.xlu0 %3761  ;;  %v7638_v42 = vpop.permute.xlu1 %3920 }
 0x6f6   :  { %5531 = vmatpush3.msra.mxu1 %v3607_v47  ;;  %5555 = vmatpush3.msra.mxu0 %v3764_v9 }
 0x6f7   :  { %5519 = vmatprep.mubr.msk.f32.mxu0 %vm781_vm5, %v7149_v15  ;;  %5532 = vmatprep.subr.mxu1 %v3605_v27 }
 0x6f8   :  { %5533 = vmatpush3.msra.mxu1 %v3605_v27  ;;  %5556 = vmatprep.subr.mxu0 %v3762_v33 }
 0x6f9   :  { %5492 = vmatmul.mubr.msk.f32.gmra.mxu1 %vm781_vm5, %v7191_v36  ;;  %5534 = vmatprep.subr.mxu1 %v3603_v57  ;;  %v3760_v45 = vpop.permute.xlu0 %3759  ;;  %v7641_v32 = vpop.permute.xlu1 %4073 }
 0x6fa   :  { %5520 = vmatmul.mubr.msk.f32.gmra.mxu0 %vm781_vm5, %v8266_v30  ;;  %5535 = vmatpush3.msra.mxu1 %v3603_v57 }
 0x6fb   :  { %5557 = vmatpush3.msra.mxu0 %v3762_v33  ;;  %5536 = vmatprep.subr.mxu1 %v3601_v22 }
 0x6fc   :  { %5537 = vmatpush3.msra.mxu1 %v3601_v22  ;;  %5558 = vmatprep.subr.mxu0 %v3760_v45 }
 0x6fd   :  { %5578 = vmatprep.subr.mxu1 %v7638_v42  ;;  %5559 = vmatpush3.msra.mxu0 %v3760_v45  ;;  %v3758_v15 = vpop.permute.xlu0 %3757  ;;  %v7716_v56 = vpop.permute.xlu1 %3918 }
 0x6fe   :  { %5560 = vmatprep.subr.mxu0 %v3758_v15 }
 0x6ff   :  { %5561 = vmatpush3.msra.mxu0 %v3758_v15 }
 0x701   :  { %v3756_v39 = vpop.permute.xlu0 %3755  ;;  %v7732_v62 = vpop.permute.xlu1 %4071 }
 0x702   :  { %5562 = vmatprep.subr.mxu0 %v3756_v39 }
 0x703   :  { %5563 = vmatpush3.msra.mxu0 %v3756_v39 }
 0x705   :  { %v3754_v36 = vpop.permute.xlu0 %3753  ;;  %v7746_v57 = vpop.permute.xlu1 %4069 }
 0x706   :  { %5564 = vmatprep.subr.mxu0 %v3754_v36 }
 0x707   :  { %5565 = vmatpush3.msra.mxu0 %v3754_v36 }
 0x708   :  { %5606 = vmatprep.subr.mxu0 %v7641_v32 }
 0x709   :  { %v7752_v22 = vpop.permute.xlu0 %3916  ;;  %v7760_v39 = vpop.permute.xlu1 %4067 }
 0x743   :  { %v7676_v13 = vpop.f32.mrf.mxu0 }
 0x745   :  { %v7678_v40 = vpop.f32.mrf.mxu0 }
 0x74d   :  { %v7644_v5 = vpop.f32.mrf.mxu1 }
 0x74e   :  { %v3315_v21 = vsel %vm1378_vm6, %v7644_v5, -inf }
 0x74f   :  { %3316 = vmax.xlane.f32.xlu1 %v3315_v21  ;;  %v7648_v60 = vpop.f32.mrf.mxu1  ;;  %v7764_v21 = vpop.permute.xlu0 %3914 }
 0x750   :  { %v3312_v0 = vsel %vm1378_vm6, %v7648_v60, -inf }
 0x751   :  { %v7652_v19 = vpop.f32.mrf.mxu1  ;;  %3313 = vmax.xlane.f32.xlu0 %v3312_v0 }
 0x752   :  { %v3321_v52 = vsel %vm1378_vm6, %v7652_v19, -inf }
 0x753   :  { %v7654_v41 = vpop.f32.mrf.mxu1 }
 0x754   :  { %v3318_v55 = vsel %vm1378_vm6, %v7654_v41, -inf }
 0x755   :  { %3319 = vmax.xlane.f32.xlu1 %v3318_v55  ;;  %v7660_v49 = vpop.f32.mrf.mxu1  ;;  %3322 = vmax.xlane.f32.xlu0 %v3321_v52 }
 0x756   :  { %v3327_v43 = vsel %vm1378_vm6, %v7660_v49, -inf }
 0x757   :  { %v7662_v37 = vpop.f32.mrf.mxu1 }
 0x758   :  { %v3324_v1 = vsel %vm1378_vm6, %v7662_v37, -inf }
 0x759   :  { %3325 = vmax.xlane.f32.xlu1 %v3324_v1  ;;  %v7668_v6 = vpop.f32.mrf.mxu1  ;;  %3328 = vmax.xlane.f32.xlu0 %v3327_v43  ;;  %v7772_v1 = vpop.permute.xlu1 %4065 }
 0x75a   :  { %v3333_v59 = vsel %vm1378_vm6, %v7668_v6, -inf }
 0x75b   :  { %v7670_v46 = vpop.f32.mrf.mxu1 }
 0x75c   :  { %v3330_v51 = vsel %vm1378_vm6, %v7670_v46, -inf }
 0x75d   :  { %3331 = vmax.xlane.f32.xlu1 %v3330_v51  ;;  %3334 = vmax.xlane.f32.xlu0 %v3333_v59  ;;  %v7778_v59 = vpop.permute.xlu0 %3912 }
 0x778   :  { %v7680_v54 = vpop.f32.mrf.mxu0 }
 0x779   :  { %8267 = vst [vmem:[#allocation33_spill] sm:$0xff] %v7680_v54 }
 0x77a   :  { %v7682_v16 = vpop.f32.mrf.mxu0 }
 0x780   :  { %v7684_v31 = vpop.f32.mrf.mxu0 }
 0x781   :  { %8268 = vst [vmem:[#allocation35_spill] sm:$0xff] %v7684_v31 }
 0x782   :  { %v7686_v3 = vpop.f32.mrf.mxu0 }
 0x783   :  { %8269 = vst [vmem:[#allocation37_spill] sm:$0xff] %v7686_v3 }
 0x788   :  { %v7688_v20 = vpop.f32.mrf.mxu0 }
 0x789   :  { %8270 = vst [vmem:[#allocation36_spill] sm:$0xff] %v7688_v20 }
 0x78a   :  { %v7690_v34 = vpop.f32.mrf.mxu0 }
 0x78b   :  { %8271 = vst [vmem:[#allocation32_spill] sm:$0xff] %v7690_v34 }
 0x78c   :  { %v7692_v18 = vpop.f32.mrf.mxu0 }
 0x78d   :  { %v3339_v45 = vsel %vm1378_vm6, %v7692_v18, -inf }
 0x78e   :  { %v7694_v61 = vpop.f32.mrf.mxu0 }
 0x78f   :  { %v3336_v36 = vsel %vm1378_vm6, %v7694_v61, -inf }
 0x790   :  { %v7696_v48 = vpop.f32.mrf.mxu0 }
 0x791   :  { %v3345_v52 = vsel %vm1378_vm6, %v7696_v48, -inf }
 0x792   :  { %v7698_v58 = vpop.f32.mrf.mxu0 }
 0x793   :  { %v3342_v30 = vsel %vm1378_vm6, %v7698_v58, -inf }
 0x794   :  { %v7700_v35 = vpop.f32.mrf.mxu0 }
 0x796   :  { %v7704_v2 = vpop.f32.mrf.mxu0 }
 0x797   :  { %v3348_v0 = vsel %vm1378_vm6, %v7704_v2, -inf }
 0x798   :  { %v7712_v8 = vpop.f32.mrf.mxu0 }
 0x79a   :  { %v7724_v23 = vpop.f32.mrf.mxu0 }
 0x79b   :  { %v3354_v43 = vsel %vm1378_vm6, %v7724_v23, -inf }
 0x7aa   :  { %v7702_v10 = vpop.f32.mrf.mxu1 }
 0x7ab   :  { %v3363_v28 = vsel %vm1378_vm6, %v7702_v10, -inf }
 0x7ac   :  { %3364 = vmax.xlane.f32.xlu1 %v3363_v28  ;;  %v7708_v26 = vpop.f32.mrf.mxu1  ;;  %v7728_v29 = vpop.f32.mrf.mxu0  ;;  %v3351_v28 = vsel %vm1378_vm6, %v7700_v35, -inf }
 0x7ad   :  { %v3360_v63 = vsel %vm1378_vm6, %v7708_v26, -inf }
 0x7ae   :  { %3361 = vmax.xlane.f32.xlu0 %v3360_v63  ;;  %v7738_v44 = vpop.f32.mrf.mxu0 }
 0x7af   :  { %v7714_v17 = vpop.f32.mrf.mxu1 }
 0x7b0   :  { %v3369_v7 = vsel %vm1378_vm6, %v7714_v17, -inf  ;;  %v7750_v33 = vpop.f32.mrf.mxu0 }
 0x7b1   :  { %v7718_v4 = vpop.f32.mrf.mxu1 }
 0x7b2   :  { %3370 = vmax.xlane.f32.xlu0 %v3369_v7  ;;  %v3366_v14 = vsel %vm1378_vm6, %v7718_v4, -inf  ;;  %v7758_v15 = vpop.f32.mrf.mxu0 }
 0x7b3   :  { %3367 = vmax.xlane.f32.xlu1 %v3366_v14  ;;  %v3390_v63 = vsel %vm1378_vm6, %v7758_v15, -inf  ;;  %v7786_v14 = vpop.permute.xlu1 %4063 }
 0x7b4   :  { %v7726_v24 = vpop.f32.mrf.mxu1 }
 0x7b5   :  { %v3375_v25 = vsel %vm1378_vm6, %v7726_v24, -inf  ;;  %v7768_v55 = vpop.f32.mrf.mxu0 }
 0x7b6   :  { %v7734_v12 = vpop.f32.mrf.mxu1  ;;  %3376 = vmax.xlane.f32.xlu0 %v3375_v25  ;;  %v3357_v25 = vsel %vm1378_vm6, %v7712_v8, -inf }
 0x7b7   :  { %v3372_v47 = vsel %vm1378_vm6, %v7734_v12, -inf  ;;  %v7776_v51 = vpop.f32.mrf.mxu0 }
 0x7b8   :  { %3373 = vmax.xlane.f32.xlu1 %v3372_v47  ;;  %v7790_v47 = vpop.permute.xlu0 %3910 }
 0x7b9   :  { %v7740_v50 = vpop.f32.mrf.mxu1 }
 0x7ba   :  { %v3381_v27 = vsel %vm1378_vm6, %v7740_v50, -inf  ;;  %v7784_v7 = vpop.f32.mrf.mxu0 }
 0x7bb   :  { %v7744_v53 = vpop.f32.mrf.mxu1  ;;  %3382 = vmax.xlane.f32.xlu0 %v3381_v27  ;;  %v3396_v27 = vsel %vm1378_vm6, %v7776_v51, -inf }
 0x7bc   :  { %v3378_v9 = vsel %vm1378_vm6, %v7744_v53, -inf }
 0x7bd   :  { %3379 = vmax.xlane.f32.xlu1 %v3378_v9  ;;  %v7794_v9 = vpop.f32.mrf.mxu0 }
 0x7bf   :  { %3340 = vmax.xlane.f32.xlu0 %v3339_v45  ;;  %v3387_v45 = vsel %vm1378_vm6, %v7728_v29, -inf }
 0x7c1   :  { %3343 = vmax.xlane.f32.xlu1 %v3342_v30  ;;  %v7798_v30 = vpop.permute.xlu1 %4061 }
 0x7c3   :  { %3337 = vmax.xlane.f32.xlu0 %v3336_v36  ;;  %v3402_v36 = vsel %vm1378_vm6, %v7794_v9, -inf }
 0x7c5   :  { %3349 = vmax.xlane.f32.xlu1 %v3348_v0  ;;  %v7802_v0 = vpop.permute.xlu0 %3908 }
 0x7c7   :  { %3346 = vmax.xlane.f32.xlu0 %v3345_v52  ;;  %v3384_v52 = vsel %vm1378_vm6, %v7738_v44, -inf }
 0x7c9   :  { %3355 = vmax.xlane.f32.xlu1 %v3354_v43 }
 0x7cb   :  { %3352 = vmax.xlane.f32.xlu0 %v3351_v28 }
 0x7cd   :  { %3391 = vmax.xlane.f32.xlu1 %v3390_v63  ;;  %v3393_v63 = vsel %vm1378_vm6, %v7750_v33, -inf }
 0x7cf   :  { %3358 = vmax.xlane.f32.xlu0 %v3357_v25 }
 0x7d1   :  { %3397 = vmax.xlane.f32.xlu1 %v3396_v27 }
 0x7d3   :  { %3388 = vmax.xlane.f32.xlu0 %v3387_v45 }
 0x7d5   :  { %3403 = vmax.xlane.f32.xlu1 %v3402_v36  ;;  %v3399_v36 = vsel %vm1378_vm6, %v7768_v55, -inf }
 0x7d7   :  { %3385 = vmax.xlane.f32.xlu0 %v3384_v52 }
 0x7d8   :  { %v3317_v43 = vpop.xlane.xlu1 %3316 }
 0x7d9   :  { %v3409_v28 = vsub.f32 %v7644_v5, %v3317_v43 }
 0x7da   :  { %v3314_v25 = vpop.xlane.xlu0 %3313 }
 0x7db   :  { %3394 = vmax.xlane.f32.xlu0 %v3393_v63  ;;  %v3408_v27 = vsub.f32 %v7648_v60, %v3314_v25  ;;  %v3442_v45 = vmul.f32 1.442695, %v3409_v28  ;;  %v3405_v60 = vsel %vm1378_vm6, %v7784_v7, -inf }
 0x7dd   :  { %v3440_v20 = vmul.f32 1.442695, %v3408_v27 }
 0x7de   :  { %v3320_v34 = vpop.xlane.xlu1 %3319  ;;  %v3323_v31 = vpop.xlane.xlu0 %3322 }
 0x7df   :  { %5801 = vpow2.f32 %v3440_v20  ;;  %v3410_v52 = vsub.f32 %v7654_v41, %v3320_v34  ;;  %3400 = vmax.xlane.f32.xlu0 %v3399_v36  ;;  %v3411_v5 = vsub.f32 %v7652_v19, %v3323_v31 }
 0x7e0   :  { %5803 = vpow2.f32 %v3442_v45 }
 0x7e1   :  { %v3444_v43 = vmul.f32 1.442695, %v3410_v52  ;;  %v3446_v3 = vmul.f32 1.442695, %v3411_v5 }
 0x7e2   :  { %v3326_v54 = vpop.xlane.xlu1 %3325  ;;  %v3329_v28 = vpop.xlane.xlu0 %3328 }
 0x7e3   :  { %5805 = vpow2.f32 %v3444_v43  ;;  %v3412_v63 = vsub.f32 %v7662_v37, %v3326_v54  ;;  %3406 = vmax.xlane.f32.xlu0 %v3405_v60  ;;  %v3413_v25 = vsub.f32 %v7660_v49, %v3329_v28 }
 0x7e4   :  { %5807 = vpow2.f32 %v3446_v3 }
 0x7e5   :  { %v3448_v20 = vmul.f32 1.442695, %v3412_v63  ;;  %v3450_v41 = vmul.f32 1.442695, %v3413_v25 }
 0x7e6   :  { %4059 = vrot.lane.b32.xlu1 %v7214_v11, %s6054_s30  ;;  %v3332_v19 = vpop.xlane.xlu1 %3331  ;;  %v3335_v31 = vpop.xlane.xlu0 %3334 }
 0x7e7   :  { %5809 = vpow2.f32 %v3448_v20  ;;  %v3414_v34 = vsub.f32 %v7670_v46, %v3332_v19  ;;  %v3415_v27 = vsub.f32 %v7668_v6, %v3335_v31 }
 0x7e8   :  { %5811 = vpow2.f32 %v3450_v41 }
 0x7e9   :  { %v3452_v45 = vmul.f32 1.442695, %v3414_v34  ;;  %v3454_v36 = vmul.f32 1.442695, %v3415_v27 }
 0x7eb   :  { %5813 = vpow2.f32 %v3452_v45 }
 0x7ec   :  { %v7822_v37 = vpop.eup %5801  ;;  %5815 = vpow2.f32 %v3454_v36 }
 0x7ed   :  { %v7824_v49 = vpop.eup %5803  ;;  %5538 = vmatprep.mubr.msk.f32.mxu1 %vm1378_vm6, %v7822_v37 }
 0x7ee   :  { %5539 = vmatmul.mubr.msk.f32.vlgmr.msra.gmra.mxu1 %vm1378_vm6, %v7824_v49 }
 0x7ef   :  { %5579 = vmatpush3.msra.mxu1 %v7638_v42 }
 0x7f0   :  { %v7831_v11 = vpop.eup %5805  ;;  %5580 = vmatprep.subr.mxu1 %v7716_v56 }
 0x7f1   :  { %v7834_v6 = vpop.eup %5807  ;;  %5581 = vmatpush3.msra.mxu1 %v7716_v56  ;;  %5541 = vmatprep.mubr.msk.f32.mxu1 %vm1378_vm6, %v7831_v11 }
 0x7f2   :  { %5582 = vmatprep.subr.mxu1 %v7752_v22  ;;  %5542 = vmatmul.mubr.msk.f32.gmra.mxu1 %vm1378_vm6, %v7834_v6 }
 0x7f3   :  { %5583 = vmatpush3.msra.mxu1 %v7752_v22 }
 0x7f4   :  { %v7843_v46 = vpop.eup %5809  ;;  %5584 = vmatprep.subr.mxu1 %v7764_v21 }
 0x7f5   :  { %v7846_v42 = vpop.eup %5811  ;;  %5585 = vmatpush3.msra.mxu1 %v7764_v21  ;;  %5544 = vmatprep.mubr.msk.f32.mxu1 %vm1378_vm6, %v7843_v46 }
 0x7f6   :  { %5586 = vmatprep.subr.mxu1 %v7778_v59  ;;  %5545 = vmatmul.mubr.msk.f32.gmra.mxu1 %vm1378_vm6, %v7846_v42 }
 0x7f7   :  { %5587 = vmatpush3.msra.mxu1 %v7778_v59 }
 0x7f8   :  { %v7855_v54 = vpop.eup %5813  ;;  %5588 = vmatprep.subr.mxu1 %v7790_v47 }
 0x7f9   :  { %v7858_v3 = vpop.eup %5815  ;;  %3906 = vrot.lane.b32.xlu0 %v7211_v38, %s6054_s30  ;;  %5589 = vmatpush3.msra.mxu1 %v7790_v47 }
 0x7fa   :  { %5547 = vmatprep.mubr.msk.f32.mxu1 %vm1378_vm6, %v7855_v54  ;;  %5590 = vmatprep.subr.mxu1 %v7802_v0 }
 0x7fb   :  { %5548 = vmatmul.mubr.msk.f32.gmra.mxu1 %vm1378_vm6, %v7858_v3 }
 0x7fc   :  { %5591 = vmatpush3.msra.mxu1 %v7802_v0 }
 0x835   :  { %v3365_v56 = vpop.xlane.xlu1 %3364 }
 0x836   :  { %v3425_v22 = vsub.f32 %v7702_v10, %v3365_v56 }
 0x837   :  { %v3362_v21 = vpop.xlane.xlu0 %3361 }
 0x838   :  { %v3424_v59 = vsub.f32 %v7708_v26, %v3362_v21  ;;  %v3474_v52 = vmul.f32 1.442695, %v3425_v22 }
 0x83a   :  { %v3472_v38 = vmul.f32 1.442695, %v3424_v59 }
 0x83b   :  { %v3371_v5 = vpop.xlane.xlu0 %3370 }
 0x83c   :  { %5817 = vpow2.f32 %v3472_v38  ;;  %v3368_v47 = vpop.xlane.xlu1 %3367  ;;  %v3427_v43 = vsub.f32 %v7714_v17, %v3371_v5 }
 0x83d   :  { %v3426_v60 = vsub.f32 %v7718_v4, %v3368_v47  ;;  %5819 = vpow2.f32 %v3474_v52 }
 0x83e   :  { %v3478_v28 = vmul.f32 1.442695, %v3427_v43 }
 0x83f   :  { %v3476_v63 = vmul.f32 1.442695, %v3426_v60  ;;  %v3377_v25 = vpop.xlane.xlu0 %3376 }
 0x840   :  { %v3429_v0 = vsub.f32 %v7726_v24, %v3377_v25 }
 0x841   :  { %5821 = vpow2.f32 %v3476_v63  ;;  %v3374_v10 = vpop.xlane.xlu1 %3373 }
 0x842   :  { %5823 = vpow2.f32 %v3478_v28  ;;  %v3428_v26 = vsub.f32 %v7734_v12, %v3374_v10  ;;  %v3482_v20 = vmul.f32 1.442695, %v3429_v0 }
 0x844   :  { %v3480_v41 = vmul.f32 1.442695, %v3428_v26  ;;  %v3383_v19 = vpop.xlane.xlu0 %3382  ;;  %5825 = vpow2.f32 %v3482_v20 }
 0x845   :  { %v3431_v31 = vsub.f32 %v7740_v50, %v3383_v19 }
 0x846   :  { %5827 = vpow2.f32 %v3480_v41  ;;  %v3380_v17 = vpop.xlane.xlu1 %3379 }
 0x847   :  { %v3430_v4 = vsub.f32 %v7744_v53, %v3380_v17  ;;  %v3486_v34 = vmul.f32 1.442695, %v3431_v31 }
 0x848   :  { %v3341_v27 = vpop.xlane.xlu0 %3340 }
 0x849   :  { %v5818_v45 = vpop.eup %5817  ;;  %v3484_v36 = vmul.f32 1.442695, %v3430_v4  ;;  %v3417_v24 = vsub.f32 %v7692_v18, %v3341_v27  ;;  %5829 = vpow2.f32 %v3486_v34 }
 0x84a   :  { %v3344_v56 = vpop.xlane.xlu1 %3343  ;;  %5594 = vmatprep.mubr.msk.f32.mxu1 %vm1378_vm6, %v5818_v45  ;;  %v3552_v12 = vsel %vm1378_vm6, %v5818_v45, 0.0  ;;  %v7880_v22 = vpop.eup %5819 }
 0x84b   :  { %5831 = vpow2.f32 %v3484_v36  ;;  %v3418_v50 = vsub.f32 %v7698_v58, %v3344_v56  ;;  %3553 = vadd.xlane.f32.xlu0 %v3552_v12  ;;  %v3458_v21 = vmul.f32 1.442695, %v3417_v24  ;;  %v3555_v18 = vsel %vm1378_vm6, %v7880_v22, 0.0 }
 0x84c   :  { %v3338_v53 = vpop.xlane.xlu0 %3337 }
 0x84d   :  { %v3416_v59 = vsub.f32 %v7694_v61, %v3338_v53  ;;  %v3460_v47 = vmul.f32 1.442695, %v3418_v50  ;;  %5833 = vpow2.f32 %v3458_v21  ;;  %v3504_v21 = vsel %vm1378_vm6, %v7822_v37, 0.0 }
 0x84e   :  { %v7884_v52 = vpop.eup %5821  ;;  %v3350_v38 = vpop.xlane.xlu1 %3349 }
 0x84f   :  { %v7888_v5 = vpop.eup %5823  ;;  %v3456_v43 = vmul.f32 1.442695, %v3416_v59  ;;  %v3558_v60 = vsel %vm1378_vm6, %v7884_v52, 0.0  ;;  %3556 = vadd.xlane.f32.xlu0 %v3555_v18  ;;  %v3420_v58 = vsub.f32 %v7704_v2, %v3350_v38 }
 0x850   :  { %3559 = vadd.xlane.f32.xlu1 %v3558_v60  ;;  %v3347_v28 = vpop.xlane.xlu0 %3346  ;;  %v3561_v0 = vsel %vm1378_vm6, %v7888_v5, 0.0 }
 0x851   :  { %5835 = vpow2.f32 %v3456_v43  ;;  %v3419_v61 = vsub.f32 %v7696_v48, %v3347_v28  ;;  %v7894_v63 = vpop.eup %5825  ;;  %v3464_v20 = vmul.f32 1.442695, %v3420_v58 }
 0x852   :  { %v3356_v25 = vpop.xlane.xlu1 %3355  ;;  %5837 = vpow2.f32 %v3460_v47  ;;  %v3567_v31 = vsel %vm1378_vm6, %v7894_v63, 0.0 }
 0x853   :  { %v7898_v10 = vpop.eup %5827  ;;  %v3462_v26 = vmul.f32 1.442695, %v3419_v61  ;;  %3562 = vadd.xlane.f32.xlu0 %v3561_v0  ;;  %v3422_v41 = vsub.f32 %v7724_v23, %v3356_v25 }
 0x854   :  { %v3564_v2 = vsel %vm1378_vm6, %v7898_v10, 0.0  ;;  %v3353_v19 = vpop.xlane.xlu0 %3352 }
 0x855   :  { %5839 = vpow2.f32 %v3462_v26  ;;  %3565 = vadd.xlane.f32.xlu1 %v3564_v2  ;;  %v3421_v48 = vsub.f32 %v7700_v35, %v3353_v19  ;;  %v3468_v27 = vmul.f32 1.442695, %v3422_v41 }
 0x856   :  { %v7906_v17 = vpop.eup %5829  ;;  %5841 = vpow2.f32 %v3464_v20  ;;  %v3392_v45 = vpop.xlane.xlu1 %3391 }
 0x857   :  { %v3466_v4 = vmul.f32 1.442695, %v3421_v48  ;;  %3568 = vadd.xlane.f32.xlu0 %v3567_v31  ;;  %v3573_v35 = vsel %vm1378_vm6, %v7906_v17, 0.0  ;;  %v3434_v38 = vsub.f32 %v7758_v15, %v3392_v45 }
 0x858   :  { %v7908_v34 = vpop.eup %5831  ;;  %v3359_v23 = vpop.xlane.xlu0 %3358 }
 0x859   :  { %5843 = vpow2.f32 %v3466_v4  ;;  %v3570_v36 = vsel %vm1378_vm6, %v7908_v34, 0.0  ;;  %v3423_v24 = vsub.f32 %v7712_v8, %v3359_v23  ;;  %v3492_v58 = vmul.f32 1.442695, %v3434_v38  ;;  %v5930_v38 = vld [vmem:[#allocation8 + $0x10] sm:$0xff] }
 0x85a   :  { %3571 = vadd.xlane.f32.xlu1 %v3570_v36  ;;  %5845 = vpow2.f32 %v3468_v27  ;;  %v5834_v50 = vpop.eup %5833  ;;  %v3398_v8 = vpop.xlane.xlu1 %3397 }
 0x85b   :  { %v3470_v56 = vmul.f32 1.442695, %v3423_v24  ;;  %3574 = vadd.xlane.f32.xlu0 %v3573_v35  ;;  %v3531_v37 = vsel %vm1378_vm6, %v5834_v50, 0.0  ;;  %v3436_v28 = vsub.f32 %v7776_v51, %v3398_v8 }
 0x85c   :  { %v3389_v12 = vpop.xlane.xlu0 %3388 }
 0x85d   :  { %5847 = vpow2.f32 %v3470_v56  ;;  %v3433_v53 = vsub.f32 %v7728_v29, %v3389_v12 }
 0x85e   :  { %v5836_v59 = vpop.eup %5835  ;;  %3505 = vadd.xlane.f32.xlu1 %v3504_v21  ;;  %v3404_v0 = vpop.xlane.xlu1 %3403 }
 0x85f   :  { %v3490_v18 = vmul.f32 1.442695, %v3433_v53  ;;  %5566 = vmatprep.mubr.msk.f32.mxu0 %vm1378_vm6, %v5836_v59  ;;  %v3528_v47 = vsel %vm1378_vm6, %v5836_v59, 0.0  ;;  %v5838_v43 = vpop.eup %5837  ;;  %v3438_v2 = vsub.f32 %v7794_v9, %v3404_v0 }
 0x860   :  { %5567 = vmatmul.mubr.msk.f32.vlgmr.msra.gmra.mxu0 %vm1378_vm6, %v5834_v50  ;;  %3529 = vadd.xlane.f32.xlu0 %v3528_v47  ;;  %v3386_v60 = vpop.xlane.xlu0 %3385  ;;  %v3534_v26 = vsel %vm1378_vm6, %v5838_v43, 0.0  ;;  %v5929_v50 = vld [vmem:[#allocation8 + $0x18] sm:$0xff]  ;;  %v5931_v47 = vld [vmem:[#allocation8 + $0x8] sm:$0xff] }
 0x861   :  { %5849 = vpow2.f32 %v3490_v18  ;;  %5607 = vmatpush3.msra.mxu0 %v7641_v32  ;;  %v3432_v29 = vsub.f32 %v7738_v44, %v3386_v60  ;;  %5569 = vmatprep.mubr.msk.f32.mxu0 %vm1378_vm6, %v5838_v43  ;;  %v3500_v9 = vmul.f32 1.442695, %v3438_v2  ;;  %v3516_v43 = vsel %vm1378_vm6, %v7843_v46, 0.0 }
 0x862   :  { %v5840_v15 = vpop.eup %5839  ;;  %3532 = vadd.xlane.f32.xlu1 %v3531_v37  ;;  %5608 = vmatprep.subr.mxu0 %v7732_v62  ;;  %v4060_v24 = vpop.permute.xlu1 %4059  ;;  %v3513_v60 = vsel %vm1378_vm6, %v7834_v6, 0.0  ;;  %v3522_v37 = vsel %vm1378_vm6, %v7855_v54, 0.0 }
 0x863   :  { %v3488_v61 = vmul.f32 1.442695, %v3432_v29  ;;  %5609 = vmatpush3.msra.mxu0 %v7732_v62  ;;  %v3537_v25 = vsel %vm1378_vm6, %v5840_v15, 0.0  ;;  %v5842_v44 = vpop.eup %5841  ;;  %v3496_v62 = vmul.f32 1.442695, %v3436_v28  ;;  %v3519_v29 = vsel %vm1378_vm6, %v7846_v42, 0.0 }
 0x864   :  { %5610 = vmatprep.subr.mxu0 %v7746_v57  ;;  %5570 = vmatmul.mubr.msk.f32.gmra.mxu0 %vm1378_vm6, %v5840_v15  ;;  %v3395_v32 = vpop.xlane.xlu0 %3394 }
 0x865   :  { %5851 = vpow2.f32 %v3488_v61  ;;  %5611 = vmatpush3.msra.mxu0 %v7746_v57  ;;  %3538 = vadd.xlane.f32.xlu0 %v3537_v25  ;;  %v3435_v51 = vsub.f32 %v7750_v33, %v3395_v32  ;;  %v3540_v33 = vsel %vm1378_vm6, %v5842_v44, 0.0 }
 0x866   :  { %v5844_v20 = vpop.eup %5843  ;;  %3535 = vadd.xlane.f32.xlu1 %v3534_v26  ;;  %5572 = vmatprep.mubr.msk.f32.mxu0 %vm1378_vm6, %v5842_v44  ;;  %5853 = vpow2.f32 %v3492_v58 }
 0x867   :  { %v3494_v41 = vmul.f32 1.442695, %v3435_v51  ;;  %5612 = vmatprep.subr.mxu0 %v7760_v39  ;;  %v3543_v19 = vsel %vm1378_vm6, %v5844_v20, 0.0  ;;  %v5846_v57 = vpop.eup %5845 }
 0x868   :  { %5613 = vmatpush3.msra.mxu0 %v7760_v39  ;;  %v3401_v48 = vpop.xlane.xlu0 %3400 }
 0x869   :  { %5855 = vpow2.f32 %v3494_v41  ;;  %5614 = vmatprep.subr.mxu0 %v7772_v1  ;;  %5573 = vmatmul.mubr.msk.f32.gmra.mxu0 %vm1378_vm6, %v5844_v20  ;;  %v3437_v31 = vsub.f32 %v7768_v55, %v3401_v48  ;;  %v3546_v55 = vsel %vm1378_vm6, %v5846_v57, 0.0 }
 0x86a   :  { %v5848_v4 = vpop.eup %5847  ;;  %3541 = vadd.xlane.f32.xlu1 %v3540_v33  ;;  %5615 = vmatpush3.msra.mxu0 %v7772_v1  ;;  %5857 = vpow2.f32 %v3496_v62 }
 0x86b   :  { %3544 = vadd.xlane.f32.xlu0 %v3543_v19  ;;  %v3498_v39 = vmul.f32 1.442695, %v3437_v31  ;;  %5575 = vmatprep.mubr.msk.f32.mxu0 %vm1378_vm6, %v5846_v57  ;;  %v3549_v27 = vsel %vm1378_vm6, %v5848_v4, 0.0 }
 0x86c   :  { %5616 = vmatprep.subr.mxu0 %v7786_v14  ;;  %v3407_v23 = vpop.xlane.xlu0 %3406 }
 0x86d   :  { %5859 = vpow2.f32 %v3498_v39  ;;  %5617 = vmatpush3.msra.mxu0 %v7786_v14  ;;  %v3439_v45 = vsub.f32 %v7784_v7, %v3407_v23 }
 0x86e   :  { %v5850_v36 = vpop.eup %5849  ;;  %5618 = vmatprep.subr.mxu0 %v7798_v30  ;;  %3547 = vadd.xlane.f32.xlu1 %v3546_v55  ;;  %5861 = vpow2.f32 %v3500_v9 }
 0x86f   :  { %5576 = vmatmul.mubr.msk.f32.gmra.mxu0 %vm1378_vm6, %v5848_v4  ;;  %3550 = vadd.xlane.f32.xlu0 %v3549_v27  ;;  %v3502_v1 = vmul.f32 1.442695, %v3439_v45  ;;  %v3579_v35 = vsel %vm1378_vm6, %v5850_v36, 0.0 }
 0x870   :  { %5619 = vmatpush3.msra.mxu0 %v7798_v30  ;;  %v3907_v56 = vpop.permute.xlu0 %3906 }
 0x871   :  { %5863 = vpow2.f32 %v3502_v1  ;;  %5620 = vmatprep.subr.mxu0 %v4060_v24  ;;  %5592 = vmatprep.subr.mxu1 %v3907_v56 }
 0x872   :  { %v5852_v14 = vpop.eup %5851  ;;  %5621 = vmatpush3.msra.mxu0 %v4060_v24  ;;  %5593 = vmatpush3.msra.mxu1 %v3907_v56 }
 0x873   :  { %3580 = vadd.xlane.f32.xlu0 %v3579_v35  ;;  %5595 = vmatmul.mubr.msk.f32.vlgmr.msra.gmra.mxu1 %vm1378_vm6, %v7880_v22  ;;  %v3576_v7 = vsel %vm1378_vm6, %v5852_v14, 0.0  ;;  %v5854_v12 = vpop.eup %5853 }
 0x874   :  { %5622 = vmatprep.mubr.msk.f32.mxu0 %vm1378_vm6, %v5852_v14  ;;  %3577 = vadd.xlane.f32.xlu1 %v3576_v7  ;;  %v3582_v22 = vsel %vm1378_vm6, %v5854_v12, 0.0 }
 0x875   :  { %5623 = vmatmul.mubr.msk.f32.vlgmr.msra.gmra.mxu0 %vm1378_vm6, %v5850_v36  ;;  %5597 = vmatprep.mubr.msk.f32.mxu1 %vm1378_vm6, %v7884_v52 }
 0x876   :  { %v5856_v30 = vpop.eup %5855  ;;  %5625 = vmatprep.mubr.msk.f32.mxu0 %vm1378_vm6, %v5854_v12  ;;  %5634 = vmatprep.subr.mxu1 %v5929_v50 }
 0x877   :  { %5598 = vmatmul.mubr.msk.f32.gmra.mxu1 %vm1378_vm6, %v7888_v5  ;;  %v3585_v21 = vsel %vm1378_vm6, %v5856_v30, 0.0  ;;  %v5858_v53 = vpop.eup %5857 }
 0x878   :  { %3583 = vadd.xlane.f32.xlu1 %v3582_v22  ;;  %3586 = vadd.xlane.f32.xlu0 %v3585_v21  ;;  %v3588_v5 = vsel %vm1378_vm6, %v5858_v53, 0.0 }
 0x879   :  { %5626 = vmatmul.mubr.msk.f32.gmra.mxu0 %vm1378_vm6, %v5856_v30  ;;  %5600 = vmatprep.mubr.msk.f32.mxu1 %vm1378_vm6, %v7898_v10 }
 0x87a   :  { %v5860_v52 = vpop.eup %5859  ;;  %5628 = vmatprep.mubr.msk.f32.mxu0 %vm1378_vm6, %v5858_v53  ;;  %5635 = vmatpush3.msra.mxu1 %v5929_v50 }
 0x87b   :  { %5601 = vmatmul.mubr.msk.f32.gmra.mxu1 %vm1378_vm6, %v7894_v63  ;;  %v3591_v59 = vsel %vm1378_vm6, %v5860_v52, 0.0  ;;  %5636 = vmatprep.subr.mxu1 %v5930_v38  ;;  %v5862_v8 = vpop.eup %5861  ;;  %v3510_v63 = vsel %vm1378_vm6, %v7831_v11, 0.0 }
 0x87c   :  { %3589 = vadd.xlane.f32.xlu1 %v3588_v5  ;;  %3592 = vadd.xlane.f32.xlu0 %v3591_v59  ;;  %v3594_v11 = vsel %vm1378_vm6, %v5862_v8, 0.0 }
 0x87d   :  { %5629 = vmatmul.mubr.msk.f32.gmra.mxu0 %vm1378_vm6, %v5860_v52  ;;  %5603 = vmatprep.mubr.msk.f32.mxu1 %vm1378_vm6, %v7908_v34  ;;  %v5932_v34 = vld [vmem:[#allocation8] sm:$0xff] }
 0x87e   :  { %v5864_v10 = vpop.eup %5863  ;;  %5631 = vmatprep.mubr.msk.f32.mxu0 %vm1378_vm6, %v5862_v8  ;;  %5637 = vmatpush3.msra.mxu1 %v5930_v38 }
 0x87f   :  { %5604 = vmatmul.mubr.msk.f32.gmra.mxu1 %vm1378_vm6, %v7906_v17  ;;  %v3597_v18 = vsel %vm1378_vm6, %v5864_v10, 0.0  ;;  %5638 = vmatprep.subr.mxu1 %v5931_v47  ;;  %v3507_v17 = vsel %vm1378_vm6, %v7824_v49, 0.0  ;;  %v3525_v49 = vsel %vm1378_vm6, %v7858_v3, 0.0 }
 0x880   :  { %3511 = vadd.xlane.f32.xlu1 %v3510_v63  ;;  %3598 = vadd.xlane.f32.xlu0 %v3597_v18 }
 0x881   :  { %5632 = vmatmul.mubr.msk.f32.gmra.mxu0 %vm1378_vm6, %v5864_v10  ;;  %5639 = vmatpush3.msra.mxu1 %v5931_v47 }
 0x882   :  { %5640 = vmatprep.subr.mxu1 %v5932_v34 }
 0x883   :  { %5641 = vmatpush3.msra.mxu1 %v5932_v34 }
 0x884   :  { %3517 = vadd.xlane.f32.xlu1 %v3516_v43  ;;  %3508 = vadd.xlane.f32.xlu0 %v3507_v17 }
 0x888   :  { %3595 = vadd.xlane.f32.xlu1 %v3594_v11  ;;  %3514 = vadd.xlane.f32.xlu0 %v3513_v60 }
 0x88c   :  { %3523 = vadd.xlane.f32.xlu1 %v3522_v37  ;;  %3520 = vadd.xlane.f32.xlu0 %v3519_v29 }
 0x890   :  { %3526 = vadd.xlane.f32.xlu0 %v3525_v49 }
 0x8ae   :  { %v7998_v6 = vpop.f32.mrf.mxu1 }
 0x8b0   :  { %v8002_v32 = vpop.f32.mrf.mxu1 }
 0x8b2   :  { %v8004_v42 = vpop.f32.mrf.mxu1 }
 0x8b4   :  { %v8006_v26 = vpop.f32.mrf.mxu1 }
 0x8b6   :  { %v8008_v51 = vpop.f32.mrf.mxu1 }
 0x8b8   :  { %v8012_v2 = vpop.f32.mrf.mxu1 }
 0x8bb   :  { %v8016_v57 = vpop.f32.mrf.mxu1 }
 0x8bd   :  { %v8020_v4 = vpop.f32.mrf.mxu1 }
 0x8d4   :  { %v3554_v58 = vpop.xlane.xlu0 %3553 }
 0x8d5   :  { %5865 = vrcp.f32 %v3554_v58 }
 0x8d8   :  { %v3557_v61 = vpop.xlane.xlu0 %3556 }
 0x8d9   :  { %v3560_v46 = vpop.xlane.xlu1 %3559  ;;  %5867 = vrcp.f32 %v3557_v61 }
 0x8da   :  { %5869 = vrcp.f32 %v3560_v46 }
 0x8dc   :  { %v3563_v54 = vpop.xlane.xlu0 %3562 }
 0x8dd   :  { %5871 = vrcp.f32 %v3563_v54 }
 0x8de   :  { %v3566_v15 = vpop.xlane.xlu1 %3565 }
 0x8df   :  { %5873 = vrcp.f32 %v3566_v15 }
 0x8e0   :  { %v3569_v0 = vpop.xlane.xlu0 %3568 }
 0x8e1   :  { %5875 = vrcp.f32 %v3569_v0 }
 0x8e2   :  { %v5866_v55 = vpop.eup %5865 }
 0x8e3   :  { %v3572_v28 = vpop.xlane.xlu1 %3571 }
 0x8e4   :  { %v3575_v62 = vpop.xlane.xlu0 %3574  ;;  %5877 = vrcp.f32 %v3572_v28 }
 0x8e5   :  { %5879 = vrcp.f32 %v3575_v62 }
 0x8e6   :  { %v5868_v35 = vpop.eup %5867 }
 0x8e7   :  { %v8000_v25 = vpop.xlane.xlu1 %3505  ;;  %v5870_v7 = vpop.eup %5869 }
 0x8e9   :  { %v3530_v48 = vpop.xlane.xlu0 %3529 }
 0x8ea   :  { %v5872_v53 = vpop.eup %5871 }
 0x8eb   :  { %v3533_v44 = vpop.xlane.xlu1 %3532 }
 0x8ec   :  { %5881 = vrcp.f32 %v3533_v44  ;;  %v5874_v52 = vpop.eup %5873 }
 0x8ed   :  { %5883 = vrcp.f32 %v3530_v48 }
 0x8ee   :  { %v3539_v9 = vpop.xlane.xlu0 %3538  ;;  %v5876_v47 = vpop.eup %5875 }
 0x8ef   :  { %v3536_v3 = vpop.xlane.xlu1 %3535 }
 0x8f0   :  { %5885 = vrcp.f32 %v3536_v3 }
 0x8f1   :  { %5887 = vrcp.f32 %v3539_v9  ;;  %v5878_v34 = vpop.eup %5877 }
 0x8f2   :  { %v5880_v29 = vpop.eup %5879 }
 0x8f3   :  { %v3542_v41 = vpop.xlane.xlu1 %3541 }
 0x8f4   :  { %v3545_v56 = vpop.xlane.xlu0 %3544  ;;  %5889 = vrcp.f32 %v3542_v41 }
 0x8f5   :  { %5891 = vrcp.f32 %v3545_v56 }
 0x8f7   :  { %v3548_v31 = vpop.xlane.xlu1 %3547 }
 0x8f8   :  { %v3551_v38 = vpop.xlane.xlu0 %3550  ;;  %5893 = vrcp.f32 %v3548_v31 }
 0x8f9   :  { %v5882_v49 = vpop.eup %5881  ;;  %5895 = vrcp.f32 %v3551_v38 }
 0x8fa   :  { %v5884_v54 = vpop.eup %5883 }
 0x8fc   :  { %v3581_v46 = vpop.xlane.xlu0 %3580 }
 0x8fd   :  { %v3578_v27 = vpop.xlane.xlu1 %3577  ;;  %v5886_v44 = vpop.eup %5885 }
 0x8fe   :  { %5897 = vrcp.f32 %v3578_v27 }
 0x8ff   :  { %5899 = vrcp.f32 %v3581_v46 }
 0x901   :  { %v3584_v14 = vpop.xlane.xlu1 %3583  ;;  %v3587_v0 = vpop.xlane.xlu0 %3586 }
 0x902   :  { %5901 = vrcp.f32 %v3584_v14 }
 0x903   :  { %5903 = vrcp.f32 %v3587_v0  ;;  %v8276_v0 = vld [vmem:[#allocation22_spill] sm:$0xff] }
 0x905   :  { %v3590_v63 = vpop.xlane.xlu1 %3589 }
 0x906   :  { %5905 = vrcp.f32 %v3590_v63 }
 0x909   :  { %v8035_v15 = vpop.xlane.xlu1 %3511 }
 0x90d   :  { %v8042_v41 = vpop.xlane.xlu1 %3517 }
 0x920   :  { %v8010_v20 = vpop.f32.mrf.mxu0 }
 0x921   :  { %v4253_v58 = vmul.f32 %v5882_v49, %v8010_v20  ;;  %v5888_v20 = vpop.eup %5887  ;;  %v8273_v49 = vld [vmem:[#allocation18_spill] sm:$0xff] }
 0x922   :  { %v8014_v19 = vpop.f32.mrf.mxu0  ;;  %v5890_v31 = vpop.eup %5889 }
 0x923   :  { %v4252_v3 = vmul.f32 %v5884_v54, %v8014_v19  ;;  %v5892_v19 = vpop.eup %5891  ;;  %v8275_v54 = vld [vmem:[#allocation20_spill] sm:$0xff] }
 0x924   :  { %v8018_v33 = vpop.f32.mrf.mxu0 }
 0x925   :  { %v4255_v9 = vmul.f32 %v5888_v20, %v8018_v33  ;;  %v8279_v20 = vld [vmem:[#allocation24_spill] sm:$0xff] }
 0x926   :  { %v8022_v39 = vpop.f32.mrf.mxu0 }
 0x927   :  { %v4254_v62 = vmul.f32 %v5886_v44, %v8022_v39  ;;  %v5894_v39 = vpop.eup %5893 }
 0x928   :  { %v5896_v56 = vpop.eup %5895 }
 0x929   :  { %v8024_v45 = vpop.f32.mrf.mxu0  ;;  %v5898_v33 = vpop.eup %5897 }
 0x92b   :  { %v3887_v12 = vpop.f32.mrf.mxu0 }
 0x92c   :  { %v4256_v27 = vmul.f32 %v5890_v31, %v3887_v12 }
 0x92f   :  { %v8029_v5 = vpop.f32.mrf.mxu0 }
 0x931   :  { %v3897_v43 = vpop.f32.mrf.mxu0 }
 0x933   :  { %v5596_v23 = vpop.f32.mrf.mxu1 }
 0x934   :  { %v4261_v50 = vmul.f32 %v5868_v35, %v5596_v23  ;;  %v3593_v23 = vpop.xlane.xlu0 %3592 }
 0x935   :  { %v4020_v36 = vpop.f32.mrf.mxu1  ;;  %v5624_v37 = vpop.f32.mrf.mxu0  ;;  %5907 = vrcp.f32 %v3593_v23 }
 0x936   :  { %v4260_v1 = vmul.f32 %v5866_v55, %v4020_v36  ;;  %v3596_v36 = vpop.xlane.xlu1 %3595 }
 0x937   :  { %v5599_v24 = vpop.f32.mrf.mxu1  ;;  %v4173_v61 = vpop.f32.mrf.mxu0  ;;  %5909 = vrcp.f32 %v3596_v36 }
 0x938   :  { %4316 = vrot.lane.b32.xlu1 %v4260_v1, %s6055_s9  ;;  %v4263_v8 = vmul.f32 %v5872_v53, %v5599_v24  ;;  %v4257_v1 = vmul.f32 %v5892_v19, %v8024_v45  ;;  %v4258_v24 = vmul.f32 %v5894_v39, %v3897_v43  ;;  %v3599_v14 = vpop.xlane.xlu0 %3598  ;;  %v4268_v12 = vmul.f32 %v5898_v33, %v4173_v61  ;;  %v8283_v39 = vld [vmem:[#allocation28_spill] sm:$0xff] }
 0x939   :  { %v4030_v30 = vpop.f32.mrf.mxu1  ;;  %v5627_v48 = vpop.f32.mrf.mxu0  ;;  %5911 = vrcp.f32 %v3599_v14 }
 0x93a   :  { %v4262_v22 = vmul.f32 %v5870_v7, %v4030_v30  ;;  %v4259_v7 = vmul.f32 %v5896_v56, %v8029_v5  ;;  %v3524_v14 = vpop.xlane.xlu1 %3523  ;;  %5913 = vrcp.f32 %v8000_v25 }
 0x93b   :  { %v5602_v21 = vpop.f32.mrf.mxu1  ;;  %v4183_v55 = vpop.f32.mrf.mxu0  ;;  %5915 = vrcp.f32 %v8035_v15 }
 0x93c   :  { %4320 = vrot.lane.b32.xlu0 %v4262_v22, %s6055_s9  ;;  %4318 = vrot.lane.b32.xlu1 %v4261_v50, %s6055_s9  ;;  %v4265_v11 = vmul.f32 %v5876_v47, %v5602_v21  ;;  %v5900_v50 = vpop.eup %5899 }
 0x93d   :  { %v4040_v59 = vpop.f32.mrf.mxu1  ;;  %v5630_v35 = vpop.f32.mrf.mxu0  ;;  %v4269_v22 = vmul.f32 %v5900_v50, %v5624_v37  ;;  %v8272_v37 = vld [vmem:[#allocation16_spill] sm:$0xff] }
 0x93e   :  { %v4264_v10 = vmul.f32 %v5874_v52, %v4040_v59  ;;  %v5902_v45 = vpop.eup %5901 }
 0x93f   :  { %v5605_v18 = vpop.f32.mrf.mxu1  ;;  %v4193_v30 = vpop.f32.mrf.mxu0  ;;  %v4270_v21 = vmul.f32 %v5902_v45, %v4183_v55  ;;  %v8282_v55 = vld [vmem:[#allocation36_spill] sm:$0xff] }
 0x940   :  { %4324 = vrot.lane.b32.xlu0 %v4264_v10, %s6055_s9  ;;  %4322 = vrot.lane.b32.xlu1 %v4263_v8, %s6055_s9  ;;  %v4267_v28 = vmul.f32 %v5880_v29, %v5605_v18  ;;  %v5904_v52 = vpop.eup %5903 }
 0x941   :  { %v4050_v17 = vpop.f32.mrf.mxu1  ;;  %v5633_v53 = vpop.f32.mrf.mxu0  ;;  %v4271_v38 = vmul.f32 %v5904_v52, %v5627_v48 }
 0x942   :  { %v4266_v60 = vmul.f32 %v5878_v34, %v4050_v17  ;;  %v5906_v59 = vpop.eup %5905  ;;  %v8065_v17 = vld [vmem:[%s8180_s7] ss:$0 sm:$0xff]  ;;  %s6057_s7 = smov [#allocation10]  }
 0x943   :  { %v4272_v5 = vmul.f32 %v5906_v59, %v4193_v30  ;;  %v4203_v8 = vpop.f32.mrf.mxu0  ;;  %v5908_v10 = vpop.eup %5907  ;;  %v2597_v19 = vadd.f32 %v8282_v55, %v8065_v17  ;;  %s4575_s15 = sshll.u32 %s6057_s7, 4  ;;  %s4576_s15 = int_to_ptr.vmem [resolvable:$true] %s4575_s15 }
 0x944   :  { %4328 = vrot.lane.b32.xlu0 %v4266_v60, %s6055_s9  ;;  %4326 = vrot.lane.b32.xlu1 %v4265_v11, %s6055_s9  ;;  %v5910_v63 = vpop.eup %5909  ;;  %v4273_v18 = vmul.f32 %v5908_v10, %v5630_v35  ;;  %v2562_v11 = vadd.f32 %v8065_v17, %v7678_v40  ;;  %v2567_v60 = vadd.f32 %v7676_v13, %v8065_v17  ;;  %s6013_s16 = scalar_lea.vmem %s4576_s15, 1024  ;;  %p6018_p7 = scmp.lt.s32.totalorder %s4576_s15, %s4576_s15 }
 0x945   :  { %v4274_v47 = vmul.f32 %v5910_v63, %v4203_v8  ;;  %p6014_p6 = scmp.ne.s32.totalorder %s4576_s15, %s6013_s16  ;;  %p6019_p8 = scmp.lt.s32.totalorder %s6013_s16, %s6013_s16 }
 0x946   :  { %v5912_v34 = vpop.eup %5911  ;;  %v2600_v29 = vadd.f32 %v2562_v11, %v8272_v37  ;;  %v2601_v46 = vadd.f32 %v2567_v60, %v8273_v49 }
 0x947   :  { %v4275_v43 = vmul.f32 %v5912_v34, %v5633_v53  ;;  %v5914_v8 = vpop.eup %5913  ;;  %p6020_p9 = por %p6019_p8, %p6018_p7 }
 0x948   :  { %4286 = vrot.lane.b32.xlu0 %v4253_v58, %s6044_s11  ;;  %4330 = vrot.lane.b32.xlu1 %v4267_v28, %s6055_s9  ;;  %v2572_v58 = vadd.f32 %v8065_v17, %v7682_v16  ;;  %v8274_v28 = vld [vmem:[#allocation33_spill] sm:$0xff]  ;;  %v8280_v16 = vld [vmem:[#allocation26_spill] sm:$0xff]  ;;  %v5916_v63 = vpop.eup %5915 }
 0x949   :  { %v2577_v61 = vadd.f32 %v8274_v28, %v8065_v17  ;;  %v4246_v60 = vmul.f32 %v5916_v63, %v8006_v26  ;;  %p6021_p10 = pnand %p6020_p9, %p6014_p6 }
 0x94a   :  { %v2602_v44 = vadd.f32 %v2572_v58, %v8275_v54 }
 0x94b   :  { %v2603_v40 = vadd.f32 %v2577_v61, %v8276_v0 }
 0x94c   :  { %4288 = vrot.lane.b32.xlu0 %v4254_v62, %s6044_s11  ;;  %4284 = vrot.lane.b32.xlu1 %v4252_v3, %s6044_s11  ;;  %v8277_v3 = vld [vmem:[#allocation37_spill] sm:$0xff]  ;;  %v8278_v62 = vld [vmem:[#allocation35_spill] sm:$0xff] }
 0x94d   :  { %v2582_v13 = vadd.f32 %v8065_v17, %v8277_v3  ;;  %v2587_v48 = vadd.f32 %v8278_v62, %v8065_v17 }
 0x94f   :  { %v2604_v31 = vadd.f32 %v2582_v13, %v8279_v20 }
 0x950   :  { %4292 = vrot.lane.b32.xlu0 %v4256_v27, %s6044_s11  ;;  %4290 = vrot.lane.b32.xlu1 %v4255_v9, %s6044_s11  ;;  %v2605_v9 = vadd.f32 %v2587_v48, %v8280_v16  ;;  %v8281_v27 = vld [vmem:[#allocation32_spill] sm:$0xff] }
 0x951   :  { %v2592_v23 = vadd.f32 %v8065_v17, %v8281_v27 }
 0x953   :  { %v2606_v36 = vadd.f32 %v2592_v23, %v8283_v39 }
 0x954   :  { %4296 = vrot.lane.b32.xlu0 %v4258_v24, %s6044_s11  ;;  %4294 = vrot.lane.b32.xlu1 %v4257_v1, %s6044_s11  ;;  %v3509_v1 = vpop.xlane.xlu0 %3508  ;;  %v8284_v24 = vld [vmem:[#allocation30_spill] sm:$0xff] }
 0x955   :  { %v2607_v35 = vadd.f32 %v2597_v19, %v8284_v24  ;;  %5917 = vrcp.f32 %v3509_v1 }
 0x956   :  { %5919 = vrcp.f32 %v8042_v41 }
 0x958   :  { %4348 = vrot.lane.b32.xlu0 %v4268_v12, %s6056_s12  ;;  %4298 = vrot.lane.b32.xlu1 %v4259_v7, %s6044_s11  ;;  %v3515_v56 = vpop.xlane.xlu0 %3514 }
 0x959   :  { %5921 = vrcp.f32 %v3515_v56 }
 0x95a   :  { %5923 = vrcp.f32 %v3524_v14 }
 0x95c   :  { %4352 = vrot.lane.b32.xlu0 %v4270_v21, %s6056_s12  ;;  %4350 = vrot.lane.b32.xlu1 %v4269_v22, %s6056_s12  ;;  %v3521_v33 = vpop.xlane.xlu0 %3520 }
 0x95d   :  { %5925 = vrcp.f32 %v3521_v33 }
 0x960   :  { %4356 = vrot.lane.b32.xlu0 %v4272_v5, %s6056_s12  ;;  %4354 = vrot.lane.b32.xlu1 %v4271_v38, %s6056_s12  ;;  %v3527_v7 = vpop.xlane.xlu0 %3526 }
 0x961   :  { %5927 = vrcp.f32 %v3527_v7 }
 0x964   :  { %4360 = vrot.lane.b32.xlu0 %v4274_v47, %s6056_s12  ;;  %4358 = vrot.lane.b32.xlu1 %v4273_v18, %s6056_s12  ;;  %v4244_v18 = vmul.f32 %v5914_v8, %v8002_v32  ;;  %v5918_v47 = vpop.eup %5917 }
 0x965   :  { %v5920_v11 = vpop.eup %5919  ;;  %v4245_v41 = vmul.f32 %v5918_v47, %v7998_v6 }
 0x966   :  { %v5922_v37 = vpop.eup %5921  ;;  %v4248_v6 = vmul.f32 %v5920_v11, %v8012_v2 }
 0x967   :  { %v5924_v61 = vpop.eup %5923  ;;  %v4247_v54 = vmul.f32 %v5922_v37, %v8004_v42 }
 0x968   :  { %4362 = vrot.lane.b32.xlu1 %v4275_v43, %s6056_s12  ;;  %v4250_v2 = vmul.f32 %v5924_v61, %v8020_v4 }
 0x982   :  { %2608 = vxpose.xlu0.b32.start [1/8] (short) (narrow) %v2600_v29, 32 }
 0x986   :  { %2609 = vxpose.xlu0.b32.cont [2/8] (short) (narrow) %v2601_v46, 32 }
 0x98a   :  { %2610 = vxpose.xlu0.b32.cont [3/8] (short) (narrow) %v2602_v44, 32  ;;  %v5926_v44 = vpop.eup %5925 }
 0x98b   :  { %v4249_v42 = vmul.f32 %v5926_v44, %v8008_v51  ;;  %v8291_v44 = vld [vmem:[#allocation27_spill] sm:$0xff] }
 0x98e   :  { %2611 = vxpose.xlu0.b32.cont [4/8] (short) (narrow) %v2603_v40, 32 }
 0x992   :  { %2612 = vxpose.xlu0.b32.cont [5/8] (short) (narrow) %v2604_v31, 32  ;;  %v5928_v31 = vpop.eup %5927 }
 0x993   :  { %v4251_v51 = vmul.f32 %v5928_v31, %v8016_v57 }
 0x996   :  { %2613 = vxpose.xlu0.b32.cont [6/8] (short) (narrow) %v2605_v9, 32 }
 0x99a   :  { %2614 = vxpose.xlu0.b32.cont [7/8] (short) (narrow) %v2606_v36, 32 }
 0x99e   :  { %2615 = vxpose.xlu0.b32.end [8/8] (short) (narrow) %v2607_v35, 32 }
 0x9aa   :  { %v4317_v12 = vpop.permute.xlu1 %4316 }
 0x9ae   :  { %v4319_v30 = vpop.permute.xlu1 %4318  ;;  %v4321_v50 = vpop.permute.xlu0 %4320 }
 0x9b2   :  { %v4323_v45 = vpop.permute.xlu1 %4322  ;;  %v4325_v22 = vpop.permute.xlu0 %4324 }
 0x9b6   :  { %v8092_v21 = vpop.permute.xlu1 %4326  ;;  %v8094_v53 = vpop.permute.xlu0 %4328 }
 0x9ba   :  { %v8097_v52 = vpop.permute.xlu1 %4330  ;;  %v4287_v59 = vpop.permute.xlu0 %4286 }
 0x9bb   :  { %v4373_v58 = vsel %vm781_vm5, %v4245_v41, %v4287_v59  ;;  %v8285_v59 = vld [vmem:[#allocation15_spill] sm:$0xff]  ;;  %v8288_v41 = vld [vmem:[#allocation21_spill] sm:$0xff] }
 0x9bc   :  { %v4381_v0 = vsel %vm2447_vm7, %v4373_v58, %v4319_v30 }
 0x9be   :  { %v4285_v38 = vpop.permute.xlu1 %4284  ;;  %v4289_v5 = vpop.permute.xlu0 %4288 }
 0x9bf   :  { %v4372_v43 = vsel %vm781_vm5, %v4244_v18, %v4285_v38  ;;  %v4374_v28 = vsel %vm781_vm5, %v4246_v60, %v4289_v5 }
 0x9c0   :  { %v4380_v49 = vsel %vm2447_vm7, %v4372_v43, %v4317_v12  ;;  %v4382_v40 = vsel %vm2447_vm7, %v4374_v28, %v4321_v50 }
 0x9c2   :  { %v4291_v10 = vpop.permute.xlu1 %4290  ;;  %v4293_v25 = vpop.permute.xlu0 %4292 }
 0x9c3   :  { %v4375_v13 = vsel %vm781_vm5, %v4247_v54, %v4291_v10  ;;  %v4376_v62 = vsel %vm781_vm5, %v4248_v6, %v4293_v25 }
 0x9c4   :  { %v4383_v9 = vsel %vm2447_vm7, %v4375_v13, %v4323_v45  ;;  %v4384_v27 = vsel %vm2447_vm7, %v4376_v62, %v4325_v22 }
 0x9c6   :  { %v4295_v15 = vpop.permute.xlu1 %4294  ;;  %v4297_v34 = vpop.permute.xlu0 %4296 }
 0x9c7   :  { %v4377_v55 = vsel %vm781_vm5, %v4249_v42, %v4295_v15  ;;  %v4378_v19 = vsel %vm781_vm5, %v4250_v2, %v4297_v34  ;;  %v8287_v15 = vld [vmem:[#allocation19_spill] sm:$0xff] }
 0x9c8   :  { %v4385_v1 = vsel %vm2447_vm7, %v4377_v55, %v8092_v21  ;;  %v4386_v24 = vsel %vm2447_vm7, %v4378_v19, %v8094_v53 }
 0x9ca   :  { %v4299_v29 = vpop.permute.xlu1 %4298  ;;  %v4349_v46 = vpop.permute.xlu0 %4348 }
 0x9cb   :  { %v4388_v32 = vsel %vm2456_vm8, %v4380_v49, %v4349_v46  ;;  %v4379_v56 = vsel %vm781_vm5, %v4251_v51, %v4299_v29  ;;  %v8289_v46 = vld [vmem:[#allocation23_spill] sm:$0xff] }
 0x9cc   :  { %5642 = vmatprep.mubr.msk.f32.mxu1 %vm157_vm1, %v4388_v32  ;;  %v4387_v7 = vsel %vm2447_vm7, %v4379_v56, %v8097_v52  ;;  %v8286_v52 = vld [vmem:[#allocation17_spill] sm:$0xff] }
 0x9cd   :  { %v8290_v32 = vld [vmem:[#allocation25_spill] sm:$0xff] }
 0x9ce   :  { %v4351_v26 = vpop.permute.xlu1 %4350  ;;  %v4353_v3 = vpop.permute.xlu0 %4352 }
 0x9cf   :  { %v4389_v48 = vsel %vm2456_vm8, %v4381_v0, %v4351_v26  ;;  %v4390_v20 = vsel %vm2456_vm8, %v4382_v40, %v4353_v3  ;;  %v8292_v0 = vld [vmem:[#allocation29_spill] sm:$0xff] }
 0x9d0   :  { %5643 = vmatmul.mubr.msk.f32.vlgmr.msra.gmra.mxu1 %vm157_vm1, %v4389_v48 }
 0x9d1   :  { %5645 = vmatprep.mubr.msk.f32.mxu1 %vm157_vm1, %v4390_v20 }
 0x9d2   :  { %v4355_v16 = vpop.permute.xlu1 %4354  ;;  %v4357_v23 = vpop.permute.xlu0 %4356 }
 0x9d3   :  { %v4391_v39 = vsel %vm2456_vm8, %v4383_v9, %v4355_v16  ;;  %v4392_v36 = vsel %vm2456_vm8, %v4384_v27, %v4357_v23 }
 0x9d4   :  { %5646 = vmatmul.mubr.msk.f32.gmra.mxu1 %vm157_vm1, %v4391_v39 }
 0x9d5   :  { %5648 = vmatprep.mubr.msk.f32.mxu1 %vm157_vm1, %v4392_v36 }
 0x9d6   :  { %v4359_v4 = vpop.permute.xlu1 %4358  ;;  %v4361_v35 = vpop.permute.xlu0 %4360 }
 0x9d7   :  { %v4393_v33 = vsel %vm2456_vm8, %v4385_v1, %v4359_v4  ;;  %v4394_v14 = vsel %vm2456_vm8, %v4386_v24, %v4361_v35 }
 0x9d8   :  { %5649 = vmatmul.mubr.msk.f32.gmra.mxu1 %vm157_vm1, %v4393_v33 }
 0x9d9   :  { %5651 = vmatprep.mubr.msk.f32.mxu1 %vm157_vm1, %v4394_v14 }
 0x9da   :  { %v4363_v57 = vpop.permute.xlu1 %4362 }
 0x9db   :  { %v4395_v12 = vsel %vm2456_vm8, %v4387_v7, %v4363_v57 }
 0x9dc   :  { %5652 = vmatmul.mubr.msk.f32.gmra.mxu1 %vm157_vm1, %v4395_v12 }
 0x9fe   :  { %v2624_v21 = vpop.trf.xlu0 }
 0x9ff   :  { %2640 = vst.msk [vmem:[#allocation10] sm:$0xff] %vm1378_vm6, %v2624_v21 }
 0xa02   :  { %v2625_v8 = vpop.trf.xlu0 }
 0xa03   :  { %2641 = vst.msk [vmem:[#allocation10 + $0x8] sm:$0xff] %vm1378_vm6, %v2625_v8 }
 0xa06   :  { %v2626_v18 = vpop.trf.xlu0 }
 0xa07   :  { %2642 = vst.msk [vmem:[#allocation10 + $0x10] sm:$0xff] %vm1378_vm6, %v2626_v18 }
 0xa0a   :  { %v2627_v11 = vpop.trf.xlu0 }
 0xa0b   :  { %2643 = vst.msk [vmem:[#allocation10 + $0x18] sm:$0xff] %vm1378_vm6, %v2627_v11 }
 0xa90   :  { %v5644_v30 = vpop.f32.mrf.mxu1 }
 0xa91   :  { %v4492_v53 = vadd.f32 %v5644_v30, %v8065_v17 }
 0xa92   :  { %v4486_v50 = vpop.f32.mrf.mxu1 }
 0xa93   :  { %v4487_v45 = vadd.f32 %v8065_v17, %v4486_v50  ;;  %v4526_v10 = vadd.f32 %v4492_v53, %v8286_v52 }
 0xa94   :  { %v5647_v22 = vpop.f32.mrf.mxu1 }
 0xa95   :  { %v4525_v38 = vadd.f32 %v4487_v45, %v8285_v59  ;;  %v4502_v47 = vadd.f32 %v5647_v22, %v8065_v17 }
 0xa96   :  { %v4496_v5 = vpop.f32.mrf.mxu1 }
 0xa97   :  { %4533 = vxpose.xlu1.b32.start [1/8] (short) (narrow) %v4525_v38, 32  ;;  %v4497_v25 = vadd.f32 %v8065_v17, %v4496_v5  ;;  %v4528_v60 = vadd.f32 %v4502_v47, %v8288_v41 }
 0xa98   :  { %v5650_v63 = vpop.f32.mrf.mxu1 }
 0xa99   :  { %v4527_v34 = vadd.f32 %v4497_v25, %v8287_v15  ;;  %v4512_v49 = vadd.f32 %v5650_v63, %v8065_v17 }
 0xa9a   :  { %v4506_v43 = vpop.f32.mrf.mxu1 }
 0xa9b   :  { %4534 = vxpose.xlu1.b32.cont [2/8] (short) (narrow) %v4526_v10, 32  ;;  %v4507_v37 = vadd.f32 %v8065_v17, %v4506_v43  ;;  %v4530_v61 = vadd.f32 %v4512_v49, %v8290_v32 }
 0xa9c   :  { %v5653_v29 = vpop.f32.mrf.mxu1 }
 0xa9d   :  { %v4529_v58 = vadd.f32 %v4507_v37, %v8289_v46  ;;  %v4522_v6 = vadd.f32 %v5653_v29, %v8065_v17 }
 0xa9e   :  { %v4516_v28 = vpop.f32.mrf.mxu1 }
 0xa9f   :  { %4535 = vxpose.xlu1.b32.cont [3/8] (short) (narrow) %v4527_v34, 32  ;;  %v4517_v54 = vadd.f32 %v8065_v17, %v4516_v28  ;;  %v4532_v40 = vadd.f32 %v4522_v6, %v8292_v0 }
 0xaa1   :  { %v4531_v26 = vadd.f32 %v4517_v54, %v8291_v44 }
 0xaa3   :  { %4536 = vxpose.xlu1.b32.cont [4/8] (short) (narrow) %v4528_v60, 32 }
 0xaa7   :  { %4537 = vxpose.xlu1.b32.cont [5/8] (short) (narrow) %v4529_v58, 32 }
 0xaab   :  { %4538 = vxpose.xlu1.b32.cont [6/8] (short) (narrow) %v4530_v61, 32 }
 0xaaf   :  { %4539 = vxpose.xlu1.b32.cont [7/8] (short) (narrow) %v4531_v26, 32 }
 0xab3   :  { %4540 = vxpose.xlu1.b32.end [8/8] (short) (narrow) %v4532_v40, 32 }
 0xb13   :  { %v4549_v3 = vpop.trf.xlu1 }
 0xb14   :  { %4566 = vst.msk [vmem:[#allocation10 + $0x20] sm:$0xff] %vm1378_vm6, %v4549_v3 }
 0xb17   :  { %v4550_v13 = vpop.trf.xlu1 }
 0xb18   :  { %4567 = vst.msk [vmem:[#allocation10 + $0x28] sm:$0xff] %vm1378_vm6, %v4550_v13 }
 0xb1b   :  { %v4551_v62 = vpop.trf.xlu1 }
 0xb1c   :  { %4568 = vst.msk [vmem:[#allocation10 + $0x30] sm:$0xff] %vm1378_vm6, %v4551_v62 }
 0xb1f   :  { %v4552_v48 = vpop.trf.xlu1 }
 0xb20   :  { %4569 = vst.msk [vmem:[#allocation10 + $0x38] sm:$0xff] %vm1378_vm6, %v4552_v48 }
 0xb21   :  { %6024 = shalt.err (!%p6021_p10)
}
 0xb22   :  { %4581 = dma.vmem_to_hbm [thread:$0]  %s4576_s15, 1024, %s8181_s8, [#allocation4], %s6043_s10, %s6043_s10, %s6044_s11  }
 0xb23   :  { %6039 = dma.done.wait [#allocation4], 1024  }
 0xb24   :  { %6040 = vsyncadd [#allocation4], 4294966272 }
 0xb25   :  { %4585 = vsyncpa [#allocation3], 1 }
 0xb26   :  { %4586 = vsyncpa [#allocation6], 1 }
 0xb27   :  { %4587 = vsyncpa [#allocation9], 1 }
 0xb28   :  { %4588 = vsyncpa [#allocation4], 1 }

</bundles_post_ra>
